<compile_context>
chip_gen: v5e
topology: v5e:2x2
jax: 0.10.0
libtpu: 0.0.40
codegen_flags: <defaults>
</compile_context>

<pallas_src>
import jax
import jax.numpy as jnp
from jax import lax
from jax.experimental import pallas as pl
from jax.experimental.pallas import tpu as pltpu


# ---------------------------------------------------------------------------
# Pallas kernels
# ---------------------------------------------------------------------------

def _conv1_kernel(x_ref, w_ref, b_ref, o_ref):
    """First conv (k4 s2 p1, folded to k2 s1 'valid') + bias + ReLU.

    x_ref: (IH, IW, 4*Cin)   space-to-depth folded, padded input (f32)
    w_ref: (2, 2, 4*Cin, C1) bf16
    b_ref: (1, C1)           f32
    o_ref: (OH, OW, C1)      f32
    """
    oh, ow, c1 = o_ref.shape
    cin = x_ref.shape[-1]
    m = oh * ow

    acc = jnp.zeros((m, c1), jnp.float32)
    for kh in range(2):
        for kw in range(2):
            xs = x_ref[kh:kh + oh, kw:kw + ow, :].reshape(m, cin).astype(jnp.bfloat16)
            acc = acc + jnp.dot(xs, w_ref[kh, kw],
                                preferred_element_type=jnp.float32)
    acc = jnp.maximum(acc + b_ref[...], 0.0)
    o_ref[...] = acc.reshape(oh, ow, c1)


def _tail_kernel(x_ref, w2_ref, b2_ref, w3_ref, b3_ref,
                 r1a_ref, r1b_ref, r2a_ref, r2b_ref, o_ref, pad_ref):
    """Fused: conv2 (k4 s2 p1, folded) + ReLU -> conv3 (3x3 p1) + bias
              -> ResidualBlock x 2 -> final ReLU.

    x_ref:   (OH+1, OW+1, 4*C1)  folded conv2 input (f32)
    w2_ref:  (4*4*C1, C) bf16      (conv2 weight, im2col-flattened)
    b2_ref:  (1, C) f32
    w3_ref:  (9*C, C) bf16         (conv3 weight, im2col-flattened)
    b3_ref:  (1, C) f32
    r1a_ref / r2a_ref: (9*C, C) bf16   (residual 3x3 weights)
    r1b_ref / r2b_ref: (C, C) bf16     (residual 1x1 weights)
    o_ref:   (OH, OW, C) f32
    pad_ref: (OH+2, OW+2, C) f32 VMEM scratch (zero-bordered pad buffer)
    """
    oh, ow, c = o_ref.shape
    m = oh * ow

    def im2col(ref, k, cin):
        # One deep matmul per conv: concatenate k*k Ref-slice taps along the lane axis.
        cols = [ref[kh:kh + oh, kw:kw + ow, :].reshape(m, cin)
                for kh in range(k) for kw in range(k)]
        return jnp.concatenate(cols, axis=-1).astype(jnp.bfloat16)   # (m, k*k*cin)

    def conv3x3(h_interior, w_flat_ref):
        # Write interior into the persistent zero-bordered pad buffer, then 3x3 'valid'.
        pad_ref[1:oh + 1, 1:ow + 1, :] = h_interior.reshape(oh, ow, c)
        return jnp.dot(im2col(pad_ref, 3, c), w_flat_ref[...],
                       preferred_element_type=jnp.float32)           # (m, c) f32

    # Zero the pad buffer once (keeps the halo border at zero for every 3x3 below).
    pad_ref[...] = jnp.zeros_like(pad_ref)

    # conv2 (folded k2 'valid') + bias + ReLU
    h = jnp.dot(im2col(x_ref, 2, x_ref.shape[-1]), w2_ref[...],
                preferred_element_type=jnp.float32)
    h = jnp.maximum(h + b2_ref[...], 0.0)

    # conv3 (3x3 p1) + bias, no activation -> residual stream
    h = conv3x3(h, w3_ref) + b3_ref[...]

    # ResidualBlock 1: x + Conv1x1(ReLU(Conv3x3(ReLU(x))))
    t = jnp.maximum(conv3x3(jnp.maximum(h, 0.0), r1a_ref), 0.0)
    h = h + jnp.dot(t.astype(jnp.bfloat16), r1b_ref[...],
                    preferred_element_type=jnp.float32)

    # ResidualBlock 2 + final encoder ReLU
    t = jnp.maximum(conv3x3(jnp.maximum(h, 0.0), r2a_ref), 0.0)
    h = h + jnp.dot(t.astype(jnp.bfloat16), r2b_ref[...],
                    preferred_element_type=jnp.float32)
    o_ref[...] = jnp.maximum(h, 0.0).reshape(oh, ow, c)


# ---------------------------------------------------------------------------
# Wrappers (layout plumbing + pallas_call plumbing)
# ---------------------------------------------------------------------------

def _vmem_limit(act_block_bytes, weight_bytes, scratch_bytes=0):
    """Double-buffered blocks + weights + scratch + slack; stays well under 32 MiB."""
    need = 2 * int(act_block_bytes) + 2 * int(weight_bytes) + int(scratch_bytes) + (8 << 20)
    return int(min(need, 28 << 20))


def _fold_stride2(x, w):
    """Fold a (k=4, s=2, p=1) conv into a (k=2, s=1, 'valid') conv via space-to-depth.

    x: (B, H, W, C) with H, W even; w: (4, 4, C, Cout) in HWIO layout.
    Returns xd (B, H/2+1, W/2+1, 4C) and wd (2, 2, 4C, Cout).
    """
    B, H, W, C = x.shape
    Cout = w.shape[-1]
    xp = jnp.pad(x, ((0, 0), (1, 1), (1, 1), (0, 0)))
    xd = xp.reshape(B, (H + 2) // 2, 2, (W + 2) // 2, 2, C)
    xd = xd.transpose(0, 1, 3, 2, 4, 5).reshape(B, (H + 2) // 2, (W + 2) // 2, 4 * C)
    wd = w.reshape(2, 2, 2, 2, C, Cout).transpose(0, 2, 1, 3, 4, 5)
    wd = wd.reshape(2, 2, 4 * C, Cout)
    return xd, wd


@jax.jit
def encoder_forward(x, params):
    """Functional equivalent of Encoder.forward on NHWC (channels-last) input."""
    B, H, W, Cin = x.shape
    C1 = params["w1"].shape[-1]       # hidden_dim // 2
    C = params["w2"].shape[-1]        # hidden_dim

    # --------- Stage 1: Conv(Cin -> C/2, k4 s2 p1) + ReLU (one pallas_call) ---------
    xd1, wd1 = _fold_stride2(x, params["w1"])
    _, IH1, IW1, Cin4 = xd1.shape
    OH1, OW1 = H // 2, W // 2
    wd1 = wd1.astype(jnp.bfloat16)
    b1 = params["b1"].reshape(1, C1).astype(jnp.float32)

    flops1 = 2 * B * OH1 * OW1 * (4 * Cin4) * C1
    bytes1 = 4 * xd1.size + 2 * wd1.size + 4 * b1.size + 4 * B * OH1 * OW1 * C1

    h1 = pl.pallas_call(
        _conv1_kernel,
        out_shape=jax.ShapeDtypeStruct((B, OH1, OW1, C1), jnp.float32),
        grid=(B,),
        in_specs=[
            pl.BlockSpec((None, IH1, IW1, Cin4), lambda b: (b, 0, 0, 0)),
            pl.BlockSpec((2, 2, Cin4, C1), lambda b: (0, 0, 0, 0)),
            pl.BlockSpec((1, C1), lambda b: (0, 0)),
        ],
        out_specs=pl.BlockSpec((None, OH1, OW1, C1), lambda b: (b, 0, 0, 0)),
        compiler_params=pltpu.CompilerParams(
            dimension_semantics=("parallel",),
            vmem_limit_bytes=_vmem_limit(
                4 * (IH1 * IW1 * Cin4 + OH1 * OW1 * C1),
                2 * wd1.size + 4 * b1.size),
        ),
        cost_estimate=pl.CostEstimate(flops=int(flops1), transcendentals=0,
                                      bytes_accessed=int(bytes1)),
    )(xd1, wd1, b1)

    # --------- Stage 2: conv2+ReLU -> conv3+bias -> ResBlock x2 -> ReLU (one call) ---------
    xd2, wd2 = _fold_stride2(h1, params["w2"])
    _, IH2, IW2, Cin2 = xd2.shape
    OH, OW = H // 4, W // 4
    K2, K3 = 4 * Cin2, 9 * C
    m = OH * OW

    w2 = wd2.reshape(K2, C).astype(jnp.bfloat16)
    b2 = params["b2"].reshape(1, C).astype(jnp.float32)
    w3 = params["w3"].reshape(K3, C).astype(jnp.bfloat16)
    b3 = params["b3"].reshape(1, C).astype(jnp.float32)
    r1a = params["rb1_w3"].reshape(K3, C).astype(jnp.bfloat16)
    r1b = params["rb1_w1"].reshape(C, C).astype(jnp.bfloat16)
    r2a = params["rb2_w3"].reshape(K3, C).astype(jnp.bfloat16)
    r2b = params["rb2_w1"].reshape(C, C).astype(jnp.bfloat16)

    w_bytes = 2 * (w2.size + w3.size + r1a.size + r1b.size + r2a.size + r2b.size) \
        + 4 * (b2.size + b3.size)
    flops2 = 2 * B * m * (K2 * C + K3 * C + 2 * (K3 * C + C * C))
    bytes2 = 4 * xd2.size + w_bytes + 4 * B * m * C
    scratch_bytes = 4 * (OH + 2) * (OW + 2) * C

    out = pl.pallas_call(
        _tail_kernel,
        out_shape=jax.ShapeDtypeStruct((B, OH, OW, C), jnp.float32),
        grid=(B,),
        in_specs=[
            pl.BlockSpec((None, IH2, IW2, Cin2), lambda b: (b, 0, 0, 0)),
            pl.BlockSpec((K2, C), lambda b: (0, 0)),
            pl.BlockSpec((1, C), lambda b: (0, 0)),
            pl.BlockSpec((K3, C), lambda b: (0, 0)),
            pl.BlockSpec((1, C), lambda b: (0, 0)),
            pl.BlockSpec((K3, C), lambda b: (0, 0)),
            pl.BlockSpec((C, C), lambda b: (0, 0)),
            pl.BlockSpec((K3, C), lambda b: (0, 0)),
            pl.BlockSpec((C, C), lambda b: (0, 0)),
        ],
        out_specs=pl.BlockSpec((None, OH, OW, C), lambda b: (b, 0, 0, 0)),
        scratch_shapes=[pltpu.VMEM((OH + 2, OW + 2, C), jnp.float32)],
        compiler_params=pltpu.CompilerParams(
            dimension_semantics=("parallel",),
            vmem_limit_bytes=_vmem_limit(
                4 * (IH2 * IW2 * Cin2 + m * C), w_bytes, scratch_bytes),
        ),
        cost_estimate=pl.CostEstimate(flops=int(flops2), transcendentals=0,
                                      bytes_accessed=int(bytes2)),
    )(xd2, w2, b2, w3, b3, r1a, r1b, r2a, r2b)

    return out


# ---------------------------------------------------------------------------
# Pure-JAX reference (mirrors the PyTorch module) and demo
# ---------------------------------------------------------------------------

def _conv_ref(x, w, b, stride, padding):
    out = lax.conv_general_dilated(
        x, w, window_strides=(stride, stride),
        padding=((padding, padding), (padding, padding)),
        dimension_numbers=("NHWC", "HWIO", "NHWC"),
        precision=lax.Precision.HIGHEST)
    return out if b is None else out + b


def encoder_reference(x, p):
    h = jax.nn.relu(_conv_ref(x, p["w1"], p["b1"], 2, 1))
    h = jax.nn.relu(_conv_ref(h, p["w2"], p["b2"], 2, 1))
    h = _conv_ref(h, p["w3"], p["b3"], 1, 1)
    for name in ("rb1", "rb2"):
        r = jax.nn.relu(h)
        r = _conv_ref(r, p[f"{name}_w3"], None, 1, 1)
        r = jax.nn.relu(r)
        r = _conv_ref(r, p[f"{name}_w1"], None, 1, 0)
        h = h + r
    return jax.nn.relu(h)


def init_params(key, in_channels=3, hidden_dim=128):
    """Deterministic weights in HWIO layout (PyTorch OIHW weight == w.transpose(2,3,1,0))."""
    c1 = hidden_dim // 2
    keys = jax.random.split(key, 10)

    def u(k, shape, fan_in):
        s = float(fan_in) ** -0.5
        return jax.random.uniform(k, shape, jnp.float32, -s, s)

    return {
        "w1": u(keys[0], (4, 4, in_channels, c1), 4 * 4 * in_channels),
        "b1": u(keys[1], (c1,), 4 * 4 * in_channels),
        "w2": u(keys[2], (4, 4, c1, hidden_dim), 4 * 4 * c1),
        "b2": u(keys[3], (hidden_dim,), 4 * 4 * c1),
        "w3": u(keys[4], (3, 3, hidden_dim, hidden_dim), 3 * 3 * hidden_dim),
        "b3": u(keys[5], (hidden_dim,), 3 * 3 * hidden_dim),
        "rb1_w3": u(keys[6], (3, 3, hidden_dim, hidden_dim), 3 * 3 * hidden_dim),
        "rb1_w1": u(keys[7], (1, 1, hidden_dim, hidden_dim), hidden_dim),
        "rb2_w3": u(keys[8], (3, 3, hidden_dim, hidden_dim), 3 * 3 * hidden_dim),
        "rb2_w1": u(keys[9], (1, 1, hidden_dim, hidden_dim), hidden_dim),
    }


if __name__ == "__main__":
    key = jax.random.PRNGKey(0)
    k_param, k_x = jax.random.split(key)

    in_channels, hidden_dim = 3, 128
    B, H, W = 2, 32, 32                       # small, lane-friendly demo shapes

    params = init_params(k_param, in_channels, hidden_dim)
    x = jax.random.normal(k_x, (B, H, W, in_channels), jnp.float32)   # NHWC

    out = jax.block_until_ready(encoder_forward(x, params))
    assert out.shape == (B, H // 4, W // 4, hidden_dim), out.shape

    ref = encoder_reference(x, params)
    err = float(jnp.max(jnp.abs(out - ref)))
    assert err < 5e-2, f"max abs err vs reference: {err}"   # bf16-MXU / f32-reference gap

    print("KERNEL_OK")
</pallas_src>

<mosaic_0001>
module attributes {stable_mosaic.version = 11 : i64} {
  func.func @_conv1_kernel(%arg0: i32, %arg1: memref<1x17x17x12xf32, #tpu.memory_space<vmem>>, %arg2: memref<2x2x12x64xbf16, #tpu.memory_space<vmem>>, %arg3: memref<1x64xf32, #tpu.memory_space<vmem>>, %arg4: memref<1x16x16x64xf32, #tpu.memory_space<vmem>>) attributes {dimension_semantics = [#tpu.dimension_semantics<parallel>], iteration_bounds = array<i64: 2>, scalar_prefetch = 0 : i64, scratch_operands = 0 : i64, tpu.core_type = #tpu.core_type<tc>, window_params = [{transform_indices = @transform_0, window_bounds = array<i64: 1, 17, 17, 12>}, {pipeline_mode = #tpu.pipeline_mode<synchronous>, transform_indices = @transform_1, window_bounds = array<i64: 2, 2, 12, 64>}, {pipeline_mode = #tpu.pipeline_mode<synchronous>, transform_indices = @transform_2, window_bounds = array<i64: 1, 64>}, {transform_indices = @transform_3, window_bounds = array<i64: 1, 16, 16, 64>}]} {
    %cst = arith.constant 0.000000e+00 : f32
    %0 = vector.broadcast %cst : f32 to vector<256x64xf32>
    %c0 = arith.constant 0 : index
    %c0_0 = arith.constant 0 : index
    %c0_1 = arith.constant 0 : index
    %c0_2 = arith.constant 0 : index
    %1 = vector.load %arg1[%c0, %c0_0, %c0_1, %c0_2] : memref<1x17x17x12xf32, #tpu.memory_space<vmem>>, vector<1x16x16x12xf32>
    %2 = vector.shape_cast %1 : vector<1x16x16x12xf32> to vector<16x16x12xf32>
    %3 = vector.shape_cast %2 : vector<16x16x12xf32> to vector<256x12xf32>
    %4 = arith.truncf %3 : vector<256x12xf32> to vector<256x12xbf16>
    %c0_3 = arith.constant 0 : index
    %c0_4 = arith.constant 0 : index
    %c0_5 = arith.constant 0 : index
    %c0_6 = arith.constant 0 : index
    %5 = vector.load %arg2[%c0_3, %c0_4, %c0_5, %c0_6] : memref<2x2x12x64xbf16, #tpu.memory_space<vmem>>, vector<1x1x12x64xbf16>
    %6 = vector.shape_cast %5 : vector<1x1x12x64xbf16> to vector<12x64xbf16>
    %cst_7 = arith.constant dense<0.000000e+00> : vector<256x64xf32>
    %7 = tpu.matmul %4, %6, %cst_7 {dimension_numbers = #tpu.dot_dimension_numbers<[1], [0], [0], [1], [0, 0, 1, 1], [], []>} : vector<256x12xbf16>, vector<12x64xbf16>, vector<256x64xf32> -> vector<256x64xf32>
    %8 = arith.addf %0, %7 : vector<256x64xf32>
    %c0_8 = arith.constant 0 : index
    %c0_9 = arith.constant 0 : index
    %c1 = arith.constant 1 : index
    %c0_10 = arith.constant 0 : index
    %9 = vector.load %arg1[%c0_8, %c0_9, %c1, %c0_10] : memref<1x17x17x12xf32, #tpu.memory_space<vmem>>, vector<1x16x16x12xf32>
    %10 = vector.shape_cast %9 : vector<1x16x16x12xf32> to vector<16x16x12xf32>
    %11 = vector.shape_cast %10 : vector<16x16x12xf32> to vector<256x12xf32>
    %12 = arith.truncf %11 : vector<256x12xf32> to vector<256x12xbf16>
    %c0_11 = arith.constant 0 : index
    %c1_12 = arith.constant 1 : index
    %c0_13 = arith.constant 0 : index
    %c0_14 = arith.constant 0 : index
    %13 = vector.load %arg2[%c0_11, %c1_12, %c0_13, %c0_14] : memref<2x2x12x64xbf16, #tpu.memory_space<vmem>>, vector<1x1x12x64xbf16>
    %14 = vector.shape_cast %13 : vector<1x1x12x64xbf16> to vector<12x64xbf16>
    %cst_15 = arith.constant dense<0.000000e+00> : vector<256x64xf32>
    %15 = tpu.matmul %12, %14, %cst_15 {dimension_numbers = #tpu.dot_dimension_numbers<[1], [0], [0], [1], [0, 0, 1, 1], [], []>} : vector<256x12xbf16>, vector<12x64xbf16>, vector<256x64xf32> -> vector<256x64xf32>
    %16 = arith.addf %8, %15 : vector<256x64xf32>
    %c0_16 = arith.constant 0 : index
    %c1_17 = arith.constant 1 : index
    %c0_18 = arith.constant 0 : index
    %c0_19 = arith.constant 0 : index
    %17 = vector.load %arg1[%c0_16, %c1_17, %c0_18, %c0_19] : memref<1x17x17x12xf32, #tpu.memory_space<vmem>>, vector<1x16x16x12xf32>
    %18 = vector.shape_cast %17 : vector<1x16x16x12xf32> to vector<16x16x12xf32>
    %19 = vector.shape_cast %18 : vector<16x16x12xf32> to vector<256x12xf32>
    %20 = arith.truncf %19 : vector<256x12xf32> to vector<256x12xbf16>
    %c1_20 = arith.constant 1 : index
    %c0_21 = arith.constant 0 : index
    %c0_22 = arith.constant 0 : index
    %c0_23 = arith.constant 0 : index
    %21 = vector.load %arg2[%c1_20, %c0_21, %c0_22, %c0_23] : memref<2x2x12x64xbf16, #tpu.memory_space<vmem>>, vector<1x1x12x64xbf16>
    %22 = vector.shape_cast %21 : vector<1x1x12x64xbf16> to vector<12x64xbf16>
    %cst_24 = arith.constant dense<0.000000e+00> : vector<256x64xf32>
    %23 = tpu.matmul %20, %22, %cst_24 {dimension_numbers = #tpu.dot_dimension_numbers<[1], [0], [0], [1], [0, 0, 1, 1], [], []>} : vector<256x12xbf16>, vector<12x64xbf16>, vector<256x64xf32> -> vector<256x64xf32>
    %24 = arith.addf %16, %23 : vector<256x64xf32>
    %c0_25 = arith.constant 0 : index
    %c1_26 = arith.constant 1 : index
    %c1_27 = arith.constant 1 : index
    %c0_28 = arith.constant 0 : index
    %25 = vector.load %arg1[%c0_25, %c1_26, %c1_27, %c0_28] : memref<1x17x17x12xf32, #tpu.memory_space<vmem>>, vector<1x16x16x12xf32>
    %26 = vector.shape_cast %25 : vector<1x16x16x12xf32> to vector<16x16x12xf32>
    %27 = vector.shape_cast %26 : vector<16x16x12xf32> to vector<256x12xf32>
    %28 = arith.truncf %27 : vector<256x12xf32> to vector<256x12xbf16>
    %c1_29 = arith.constant 1 : index
    %c1_30 = arith.constant 1 : index
    %c0_31 = arith.constant 0 : index
    %c0_32 = arith.constant 0 : index
    %29 = vector.load %arg2[%c1_29, %c1_30, %c0_31, %c0_32] : memref<2x2x12x64xbf16, #tpu.memory_space<vmem>>, vector<1x1x12x64xbf16>
    %30 = vector.shape_cast %29 : vector<1x1x12x64xbf16> to vector<12x64xbf16>
    %cst_33 = arith.constant dense<0.000000e+00> : vector<256x64xf32>
    %31 = tpu.matmul %28, %30, %cst_33 {dimension_numbers = #tpu.dot_dimension_numbers<[1], [0], [0], [1], [0, 0, 1, 1], [], []>} : vector<256x12xbf16>, vector<12x64xbf16>, vector<256x64xf32> -> vector<256x64xf32>
    %32 = arith.addf %24, %31 : vector<256x64xf32>
    %c0_34 = arith.constant 0 : index
    %c0_35 = arith.constant 0 : index
    %33 = vector.load %arg3[%c0_34, %c0_35] : memref<1x64xf32, #tpu.memory_space<vmem>>, vector<1x64xf32>
    %34 = vector.broadcast %33 : vector<1x64xf32> to vector<256x64xf32>
    %35 = arith.addf %32, %34 : vector<256x64xf32>
    %cst_36 = arith.constant 0.000000e+00 : f32
    %36 = vector.broadcast %cst_36 : f32 to vector<256x64xf32>
    %37 = arith.maximumf %35, %36 : vector<256x64xf32>
    %38 = vector.shape_cast %37 : vector<256x64xf32> to vector<16x16x64xf32>
    %c0_37 = arith.constant 0 : index
    %c0_38 = arith.constant 0 : index
    %c0_39 = arith.constant 0 : index
    %c0_40 = arith.constant 0 : index
    %39 = vector.load %arg4[%c0_37, %c0_38, %c0_39, %c0_40] : memref<1x16x16x64xf32, #tpu.memory_space<vmem>>, vector<1x16x16x64xf32>
    %40 = vector.shape_cast %39 : vector<1x16x16x64xf32> to vector<16x16x64xf32>
    %41 = vector.shape_cast %38 : vector<16x16x64xf32> to vector<1x16x16x64xf32>
    tpu.vector_store %arg4[%c0_37, %c0_38, %c0_39, %c0_40], %41 {strides = array<i32>} : memref<1x16x16x64xf32, #tpu.memory_space<vmem>>, vector<1x16x16x64xf32>,
    return
  }
  func.func @transform_0(%arg0: i32) -> (i32, i32, i32, i32) {
    %c0_i32 = arith.constant 0 : i32
    %c0_i32_0 = arith.constant 0 : i32
    %c0_i32_1 = arith.constant 0 : i32
    %c0_i32_2 = arith.constant 0 : i32
    return %arg0, %c0_i32, %c0_i32_0, %c0_i32_1 : i32, i32, i32, i32
  }
  func.func @transform_1(%arg0: i32) -> (i32, i32, i32, i32) {
    %c0_i32 = arith.constant 0 : i32
    %c0_i32_0 = arith.constant 0 : i32
    %c0_i32_1 = arith.constant 0 : i32
    %c0_i32_2 = arith.constant 0 : i32
    %c0_i32_3 = arith.constant 0 : i32
    return %c0_i32, %c0_i32_0, %c0_i32_1, %c0_i32_2 : i32, i32, i32, i32
  }
  func.func @transform_2(%arg0: i32) -> (i32, i32) {
    %c0_i32 = arith.constant 0 : i32
    %c0_i32_0 = arith.constant 0 : i32
    %c0_i32_1 = arith.constant 0 : i32
    return %c0_i32, %c0_i32_0 : i32, i32
  }
  func.func @transform_3(%arg0: i32) -> (i32, i32, i32, i32) {
    %c0_i32 = arith.constant 0 : i32
    %c0_i32_0 = arith.constant 0 : i32
    %c0_i32_1 = arith.constant 0 : i32
    %c0_i32_2 = arith.constant 0 : i32
    return %arg0, %c0_i32, %c0_i32_0, %c0_i32_1 : i32, i32, i32, i32
  }
}

module attributes {stable_mosaic.version = 11 : i64} {
  func.func @_tail_kernel(%arg0: i32, %arg1: memref<1x9x9x256xf32, #tpu.memory_space<vmem>>, %arg2: memref<1024x128xbf16, #tpu.memory_space<vmem>>, %arg3: memref<1x128xf32, #tpu.memory_space<vmem>>, %arg4: memref<1152x128xbf16, #tpu.memory_space<vmem>>, %arg5: memref<1x128xf32, #tpu.memory_space<vmem>>, %arg6: memref<1152x128xbf16, #tpu.memory_space<vmem>>, %arg7: memref<128x128xbf16, #tpu.memory_space<vmem>>, %arg8: memref<1152x128xbf16, #tpu.memory_space<vmem>>, %arg9: memref<128x128xbf16, #tpu.memory_space<vmem>>, %arg10: memref<1x8x8x128xf32, #tpu.memory_space<vmem>>, %arg11: memref<10x10x128xf32, #tpu.memory_space<vmem>>) attributes {dimension_semantics = [#tpu.dimension_semantics<parallel>], iteration_bounds = array<i64: 2>, scalar_prefetch = 0 : i64, scratch_operands = 1 : i64, tpu.core_type = #tpu.core_type<tc>, window_params = [{transform_indices = @transform_0, window_bounds = array<i64: 1, 9, 9, 256>}, {pipeline_mode = #tpu.pipeline_mode<synchronous>, transform_indices = @transform_1, window_bounds = array<i64: 1024, 128>}, {pipeline_mode = #tpu.pipeline_mode<synchronous>, transform_indices = @transform_2, window_bounds = array<i64: 1, 128>}, {pipeline_mode = #tpu.pipeline_mode<synchronous>, transform_indices = @transform_3, window_bounds = array<i64: 1152, 128>}, {pipeline_mode = #tpu.pipeline_mode<synchronous>, transform_indices = @transform_4, window_bounds = array<i64: 1, 128>}, {pipeline_mode = #tpu.pipeline_mode<synchronous>, transform_indices = @transform_5, window_bounds = array<i64: 1152, 128>}, {pipeline_mode = #tpu.pipeline_mode<synchronous>, transform_indices = @transform_6, window_bounds = array<i64: 128, 128>}, {pipeline_mode = #tpu.pipeline_mode<synchronous>, transform_indices = @transform_7, window_bounds = array<i64: 1152, 128>}, {pipeline_mode = #tpu.pipeline_mode<synchronous>, transform_indices = @transform_8, window_bounds = array<i64: 128, 128>}, {transform_indices = @transform_9, window_bounds = array<i64: 1, 8, 8, 128>}]} {
    %cst = arith.constant 0.000000e+00 : f32
    %0 = vector.broadcast %cst : f32 to vector<10x10x128xf32>
    %c0 = arith.constant 0 : index
    %c0_0 = arith.constant 0 : index
    %c0_1 = arith.constant 0 : index
    %1 = vector.load %arg11[%c0, %c0_0, %c0_1] : memref<10x10x128xf32, #tpu.memory_space<vmem>>, vector<10x10x128xf32>
    tpu.vector_store %arg11[%c0, %c0_0, %c0_1], %0 {strides = array<i32>} : memref<10x10x128xf32, #tpu.memory_space<vmem>>, vector<10x10x128xf32>,
    %c0_2 = arith.constant 0 : index
    %c0_3 = arith.constant 0 : index
    %c0_4 = arith.constant 0 : index
    %c0_5 = arith.constant 0 : index
    %2 = vector.load %arg1[%c0_2, %c0_3, %c0_4, %c0_5] : memref<1x9x9x256xf32, #tpu.memory_space<vmem>>, vector<1x8x8x256xf32>
    %3 = vector.shape_cast %2 : vector<1x8x8x256xf32> to vector<8x8x256xf32>
    %4 = vector.shape_cast %3 : vector<8x8x256xf32> to vector<64x256xf32>
    %c0_6 = arith.constant 0 : index
    %c0_7 = arith.constant 0 : index
    %c1 = arith.constant 1 : index
    %c0_8 = arith.constant 0 : index
    %5 = vector.load %arg1[%c0_6, %c0_7, %c1, %c0_8] : memref<1x9x9x256xf32, #tpu.memory_space<vmem>>, vector<1x8x8x256xf32>
    %6 = vector.shape_cast %5 : vector<1x8x8x256xf32> to vector<8x8x256xf32>
    %7 = vector.shape_cast %6 : vector<8x8x256xf32> to vector<64x256xf32>
    %c0_9 = arith.constant 0 : index
    %c1_10 = arith.constant 1 : index
    %c0_11 = arith.constant 0 : index
    %c0_12 = arith.constant 0 : index
    %8 = vector.load %arg1[%c0_9, %c1_10, %c0_11, %c0_12] : memref<1x9x9x256xf32, #tpu.memory_space<vmem>>, vector<1x8x8x256xf32>
    %9 = vector.shape_cast %8 : vector<1x8x8x256xf32> to vector<8x8x256xf32>
    %10 = vector.shape_cast %9 : vector<8x8x256xf32> to vector<64x256xf32>
    %c0_13 = arith.constant 0 : index
    %c1_14 = arith.constant 1 : index
    %c1_15 = arith.constant 1 : index
    %c0_16 = arith.constant 0 : index
    %11 = vector.load %arg1[%c0_13, %c1_14, %c1_15, %c0_16] : memref<1x9x9x256xf32, #tpu.memory_space<vmem>>, vector<1x8x8x256xf32>
    %12 = vector.shape_cast %11 : vector<1x8x8x256xf32> to vector<8x8x256xf32>
    %13 = vector.shape_cast %12 : vector<8x8x256xf32> to vector<64x256xf32>
    %14 = tpu.concatenate %4, %7, %10, %13 in 1 : vector<64x256xf32>, vector<64x256xf32>, vector<64x256xf32>, vector<64x256xf32> -> vector<64x1024xf32>
    %15 = arith.truncf %14 : vector<64x1024xf32> to vector<64x1024xbf16>
    %c0_17 = arith.constant 0 : index
    %c0_18 = arith.constant 0 : index
    %16 = vector.load %arg2[%c0_17, %c0_18] : memref<1024x128xbf16, #tpu.memory_space<vmem>>, vector<1024x128xbf16>
    %cst_19 = arith.constant dense<0.000000e+00> : vector<64x128xf32>
    %17 = tpu.matmul %15, %16, %cst_19 {dimension_numbers = #tpu.dot_dimension_numbers<[1], [0], [0], [1], [0, 0, 1, 1], [], []>} : vector<64x1024xbf16>, vector<1024x128xbf16>, vector<64x128xf32> -> vector<64x128xf32>
    %c0_20 = arith.constant 0 : index
    %c0_21 = arith.constant 0 : index
    %18 = vector.load %arg3[%c0_20, %c0_21] : memref<1x128xf32, #tpu.memory_space<vmem>>, vector<1x128xf32>
    %19 = vector.broadcast %18 : vector<1x128xf32> to vector<64x128xf32>
    %20 = arith.addf %17, %19 : vector<64x128xf32>
    %cst_22 = arith.constant 0.000000e+00 : f32
    %21 = vector.broadcast %cst_22 : f32 to vector<64x128xf32>
    %22 = arith.maximumf %20, %21 : vector<64x128xf32>
    %23 = vector.shape_cast %22 : vector<64x128xf32> to vector<8x8x128xf32>
    %c1_23 = arith.constant 1 : index
    %c1_24 = arith.constant 1 : index
    %c0_25 = arith.constant 0 : index
    %24 = vector.load %arg11[%c1_23, %c1_24, %c0_25] : memref<10x10x128xf32, #tpu.memory_space<vmem>>, vector<8x8x128xf32>
    tpu.vector_store %arg11[%c1_23, %c1_24, %c0_25], %23 {strides = array<i32>} : memref<10x10x128xf32, #tpu.memory_space<vmem>>, vector<8x8x128xf32>,
    %c0_26 = arith.constant 0 : index
    %c0_27 = arith.constant 0 : index
    %c0_28 = arith.constant 0 : index
    %25 = vector.load %arg11[%c0_26, %c0_27, %c0_28] : memref<10x10x128xf32, #tpu.memory_space<vmem>>, vector<8x8x128xf32>
    %26 = vector.shape_cast %25 : vector<8x8x128xf32> to vector<64x128xf32>
    %c0_29 = arith.constant 0 : index
    %c1_30 = arith.constant 1 : index
    %c0_31 = arith.constant 0 : index
    %27 = vector.load %arg11[%c0_29, %c1_30, %c0_31] : memref<10x10x128xf32, #tpu.memory_space<vmem>>, vector<8x8x128xf32>
    %28 = vector.shape_cast %27 : vector<8x8x128xf32> to vector<64x128xf32>
    %c0_32 = arith.constant 0 : index
    %c2 = arith.constant 2 : index
    %c0_33 = arith.constant 0 : index
    %29 = vector.load %arg11[%c0_32, %c2, %c0_33] : memref<10x10x128xf32, #tpu.memory_space<vmem>>, vector<8x8x128xf32>
    %30 = vector.shape_cast %29 : vector<8x8x128xf32> to vector<64x128xf32>
    %c1_34 = arith.constant 1 : index
    %c0_35 = arith.constant 0 : index
    %c0_36 = arith.constant 0 : index
    %31 = vector.load %arg11[%c1_34, %c0_35, %c0_36] : memref<10x10x128xf32, #tpu.memory_space<vmem>>, vector<8x8x128xf32>
    %32 = vector.shape_cast %31 : vector<8x8x128xf32> to vector<64x128xf32>
    %c1_37 = arith.constant 1 : index
    %c1_38 = arith.constant 1 : index
    %c0_39 = arith.constant 0 : index
    %33 = vector.load %arg11[%c1_37, %c1_38, %c0_39] : memref<10x10x128xf32, #tpu.memory_space<vmem>>, vector<8x8x128xf32>
    %34 = vector.shape_cast %33 : vector<8x8x128xf32> to vector<64x128xf32>
    %c1_40 = arith.constant 1 : index
    %c2_41 = arith.constant 2 : index
    %c0_42 = arith.constant 0 : index
    %35 = vector.load %arg11[%c1_40, %c2_41, %c0_42] : memref<10x10x128xf32, #tpu.memory_space<vmem>>, vector<8x8x128xf32>
    %36 = vector.shape_cast %35 : vector<8x8x128xf32> to vector<64x128xf32>
    %c2_43 = arith.constant 2 : index
    %c0_44 = arith.constant 0 : index
    %c0_45 = arith.constant 0 : index
    %37 = vector.load %arg11[%c2_43, %c0_44, %c0_45] : memref<10x10x128xf32, #tpu.memory_space<vmem>>, vector<8x8x128xf32>
    %38 = vector.shape_cast %37 : vector<8x8x128xf32> to vector<64x128xf32>
    %c2_46 = arith.constant 2 : index
    %c1_47 = arith.constant 1 : index
    %c0_48 = arith.constant 0 : index
    %39 = vector.load %arg11[%c2_46, %c1_47, %c0_48] : memref<10x10x128xf32, #tpu.memory_space<vmem>>, vector<8x8x128xf32>
    %40 = vector.shape_cast %39 : vector<8x8x128xf32> to vector<64x128xf32>
    %c2_49 = arith.constant 2 : index
    %c2_50 = arith.constant 2 : index
    %c0_51 = arith.constant 0 : index
    %41 = vector.load %arg11[%c2_49, %c2_50, %c0_51] : memref<10x10x128xf32, #tpu.memory_space<vmem>>, vector<8x8x128xf32>
    %42 = vector.shape_cast %41 : vector<8x8x128xf32> to vector<64x128xf32>
    %43 = tpu.concatenate %26, %28, %30, %32, %34, %36, %38, %40, %42 in 1 : vector<64x128xf32>, vector<64x128xf32>, vector<64x128xf32>, vector<64x128xf32>, vector<64x128xf32>, vector<64x128xf32>, vector<64x128xf32>, vector<64x128xf32>, vector<64x128xf32> -> vector<64x1152xf32>
    %44 = arith.truncf %43 : vector<64x1152xf32> to vector<64x1152xbf16>
    %c0_52 = arith.constant 0 : index
    %c0_53 = arith.constant 0 : index
    %45 = vector.load %arg4[%c0_52, %c0_53] : memref<1152x128xbf16, #tpu.memory_space<vmem>>, vector<1152x128xbf16>
    %cst_54 = arith.constant dense<0.000000e+00> : vector<64x128xf32>
    %46 = tpu.matmul %44, %45, %cst_54 {dimension_numbers = #tpu.dot_dimension_numbers<[1], [0], [0], [1], [0, 0, 1, 1], [], []>} : vector<64x1152xbf16>, vector<1152x128xbf16>, vector<64x128xf32> -> vector<64x128xf32>
    %c0_55 = arith.constant 0 : index
    %c0_56 = arith.constant 0 : index
    %47 = vector.load %arg5[%c0_55, %c0_56] : memref<1x128xf32, #tpu.memory_space<vmem>>, vector<1x128xf32>
    %48 = vector.broadcast %47 : vector<1x128xf32> to vector<64x128xf32>
    %49 = arith.addf %46, %48 : vector<64x128xf32>
    %cst_57 = arith.constant 0.000000e+00 : f32
    %50 = vector.broadcast %cst_57 : f32 to vector<64x128xf32>
    %51 = arith.maximumf %49, %50 : vector<64x128xf32>
    %52 = vector.shape_cast %51 : vector<64x128xf32> to vector<8x8x128xf32>
    %c1_58 = arith.constant 1 : index
    %c1_59 = arith.constant 1 : index
    %c0_60 = arith.constant 0 : index
    %53 = vector.load %arg11[%c1_58, %c1_59, %c0_60] : memref<10x10x128xf32, #tpu.memory_space<vmem>>, vector<8x8x128xf32>
    tpu.vector_store %arg11[%c1_58, %c1_59, %c0_60], %52 {strides = array<i32>} : memref<10x10x128xf32, #tpu.memory_space<vmem>>, vector<8x8x128xf32>,
    %c0_61 = arith.constant 0 : index
    %c0_62 = arith.constant 0 : index
    %c0_63 = arith.constant 0 : index
    %54 = vector.load %arg11[%c0_61, %c0_62, %c0_63] : memref<10x10x128xf32, #tpu.memory_space<vmem>>, vector<8x8x128xf32>
    %55 = vector.shape_cast %54 : vector<8x8x128xf32> to vector<64x128xf32>
    %c0_64 = arith.constant 0 : index
    %c1_65 = arith.constant 1 : index
    %c0_66 = arith.constant 0 : index
    %56 = vector.load %arg11[%c0_64, %c1_65, %c0_66] : memref<10x10x128xf32, #tpu.memory_space<vmem>>, vector<8x8x128xf32>
    %57 = vector.shape_cast %56 : vector<8x8x128xf32> to vector<64x128xf32>
    %c0_67 = arith.constant 0 : index
    %c2_68 = arith.constant 2 : index
    %c0_69 = arith.constant 0 : index
    %58 = vector.load %arg11[%c0_67, %c2_68, %c0_69] : memref<10x10x128xf32, #tpu.memory_space<vmem>>, vector<8x8x128xf32>
    %59 = vector.shape_cast %58 : vector<8x8x128xf32> to vector<64x128xf32>
    %c1_70 = arith.constant 1 : index
    %c0_71 = arith.constant 0 : index
    %c0_72 = arith.constant 0 : index
    %60 = vector.load %arg11[%c1_70, %c0_71, %c0_72] : memref<10x10x128xf32, #tpu.memory_space<vmem>>, vector<8x8x128xf32>
    %61 = vector.shape_cast %60 : vector<8x8x128xf32> to vector<64x128xf32>
    %c1_73 = arith.constant 1 : index
    %c1_74 = arith.constant 1 : index
    %c0_75 = arith.constant 0 : index
    %62 = vector.load %arg11[%c1_73, %c1_74, %c0_75] : memref<10x10x128xf32, #tpu.memory_space<vmem>>, vector<8x8x128xf32>
    %63 = vector.shape_cast %62 : vector<8x8x128xf32> to vector<64x128xf32>
    %c1_76 = arith.constant 1 : index
    %c2_77 = arith.constant 2 : index
    %c0_78 = arith.constant 0 : index
    %64 = vector.load %arg11[%c1_76, %c2_77, %c0_78] : memref<10x10x128xf32, #tpu.memory_space<vmem>>, vector<8x8x128xf32>
    %65 = vector.shape_cast %64 : vector<8x8x128xf32> to vector<64x128xf32>
    %c2_79 = arith.constant 2 : index
    %c0_80 = arith.constant 0 : index
    %c0_81 = arith.constant 0 : index
    %66 = vector.load %arg11[%c2_79, %c0_80, %c0_81] : memref<10x10x128xf32, #tpu.memory_space<vmem>>, vector<8x8x128xf32>
    %67 = vector.shape_cast %66 : vector<8x8x128xf32> to vector<64x128xf32>
    %c2_82 = arith.constant 2 : index
    %c1_83 = arith.constant 1 : index
    %c0_84 = arith.constant 0 : index
    %68 = vector.load %arg11[%c2_82, %c1_83, %c0_84] : memref<10x10x128xf32, #tpu.memory_space<vmem>>, vector<8x8x128xf32>
    %69 = vector.shape_cast %68 : vector<8x8x128xf32> to vector<64x128xf32>
    %c2_85 = arith.constant 2 : index
    %c2_86 = arith.constant 2 : index
    %c0_87 = arith.constant 0 : index
    %70 = vector.load %arg11[%c2_85, %c2_86, %c0_87] : memref<10x10x128xf32, #tpu.memory_space<vmem>>, vector<8x8x128xf32>
    %71 = vector.shape_cast %70 : vector<8x8x128xf32> to vector<64x128xf32>
    %72 = tpu.concatenate %55, %57, %59, %61, %63, %65, %67, %69, %71 in 1 : vector<64x128xf32>, vector<64x128xf32>, vector<64x128xf32>, vector<64x128xf32>, vector<64x128xf32>, vector<64x128xf32>, vector<64x128xf32>, vector<64x128xf32>, vector<64x128xf32> -> vector<64x1152xf32>
    %73 = arith.truncf %72 : vector<64x1152xf32> to vector<64x1152xbf16>
    %c0_88 = arith.constant 0 : index
    %c0_89 = arith.constant 0 : index
    %74 = vector.load %arg6[%c0_88, %c0_89] : memref<1152x128xbf16, #tpu.memory_space<vmem>>, vector<1152x128xbf16>
    %cst_90 = arith.constant dense<0.000000e+00> : vector<64x128xf32>
    %75 = tpu.matmul %73, %74, %cst_90 {dimension_numbers = #tpu.dot_dimension_numbers<[1], [0], [0], [1], [0, 0, 1, 1], [], []>} : vector<64x1152xbf16>, vector<1152x128xbf16>, vector<64x128xf32> -> vector<64x128xf32>
    %cst_91 = arith.constant 0.000000e+00 : f32
    %76 = vector.broadcast %cst_91 : f32 to vector<64x128xf32>
    %77 = arith.maximumf %75, %76 : vector<64x128xf32>
    %78 = arith.truncf %77 : vector<64x128xf32> to vector<64x128xbf16>
    %c0_92 = arith.constant 0 : index
    %c0_93 = arith.constant 0 : index
    %79 = vector.load %arg7[%c0_92, %c0_93] : memref<128x128xbf16, #tpu.memory_space<vmem>>, vector<128x128xbf16>
    %cst_94 = arith.constant dense<0.000000e+00> : vector<64x128xf32>
    %80 = tpu.matmul %78, %79, %cst_94 {dimension_numbers = #tpu.dot_dimension_numbers<[1], [0], [0], [1], [0, 0, 1, 1], [], []>} : vector<64x128xbf16>, vector<128x128xbf16>, vector<64x128xf32> -> vector<64x128xf32>
    %81 = arith.addf %49, %80 : vector<64x128xf32>
    %cst_95 = arith.constant 0.000000e+00 : f32
    %82 = vector.broadcast %cst_95 : f32 to vector<64x128xf32>
    %83 = arith.maximumf %81, %82 : vector<64x128xf32>
    %84 = vector.shape_cast %83 : vector<64x128xf32> to vector<8x8x128xf32>
    %c1_96 = arith.constant 1 : index
    %c1_97 = arith.constant 1 : index
    %c0_98 = arith.constant 0 : index
    %85 = vector.load %arg11[%c1_96, %c1_97, %c0_98] : memref<10x10x128xf32, #tpu.memory_space<vmem>>, vector<8x8x128xf32>
    tpu.vector_store %arg11[%c1_96, %c1_97, %c0_98], %84 {strides = array<i32>} : memref<10x10x128xf32, #tpu.memory_space<vmem>>, vector<8x8x128xf32>,
    %c0_99 = arith.constant 0 : index
    %c0_100 = arith.constant 0 : index
    %c0_101 = arith.constant 0 : index
    %86 = vector.load %arg11[%c0_99, %c0_100, %c0_101] : memref<10x10x128xf32, #tpu.memory_space<vmem>>, vector<8x8x128xf32>
    %87 = vector.shape_cast %86 : vector<8x8x128xf32> to vector<64x128xf32>
    %c0_102 = arith.constant 0 : index
    %c1_103 = arith.constant 1 : index
    %c0_104 = arith.constant 0 : index
    %88 = vector.load %arg11[%c0_102, %c1_103, %c0_104] : memref<10x10x128xf32, #tpu.memory_space<vmem>>, vector<8x8x128xf32>
    %89 = vector.shape_cast %88 : vector<8x8x128xf32> to vector<64x128xf32>
    %c0_105 = arith.constant 0 : index
    %c2_106 = arith.constant 2 : index
    %c0_107 = arith.constant 0 : index
    %90 = vector.load %arg11[%c0_105, %c2_106, %c0_107] : memref<10x10x128xf32, #tpu.memory_space<vmem>>, vector<8x8x128xf32>
    %91 = vector.shape_cast %90 : vector<8x8x128xf32> to vector<64x128xf32>
    %c1_108 = arith.constant 1 : index
    %c0_109 = arith.constant 0 : index
    %c0_110 = arith.constant 0 : index
    %92 = vector.load %arg11[%c1_108, %c0_109, %c0_110] : memref<10x10x128xf32, #tpu.memory_space<vmem>>, vector<8x8x128xf32>
    %93 = vector.shape_cast %92 : vector<8x8x128xf32> to vector<64x128xf32>
    %c1_111 = arith.constant 1 : index
    %c1_112 = arith.constant 1 : index
    %c0_113 = arith.constant 0 : index
    %94 = vector.load %arg11[%c1_111, %c1_112, %c0_113] : memref<10x10x128xf32, #tpu.memory_space<vmem>>, vector<8x8x128xf32>
    %95 = vector.shape_cast %94 : vector<8x8x128xf32> to vector<64x128xf32>
    %c1_114 = arith.constant 1 : index
    %c2_115 = arith.constant 2 : index
    %c0_116 = arith.constant 0 : index
    %96 = vector.load %arg11[%c1_114, %c2_115, %c0_116] : memref<10x10x128xf32, #tpu.memory_space<vmem>>, vector<8x8x128xf32>
    %97 = vector.shape_cast %96 : vector<8x8x128xf32> to vector<64x128xf32>
    %c2_117 = arith.constant 2 : index
    %c0_118 = arith.constant 0 : index
    %c0_119 = arith.constant 0 : index
    %98 = vector.load %arg11[%c2_117, %c0_118, %c0_119] : memref<10x10x128xf32, #tpu.memory_space<vmem>>, vector<8x8x128xf32>
    %99 = vector.shape_cast %98 : vector<8x8x128xf32> to vector<64x128xf32>
    %c2_120 = arith.constant 2 : index
    %c1_121 = arith.constant 1 : index
    %c0_122 = arith.constant 0 : index
    %100 = vector.load %arg11[%c2_120, %c1_121, %c0_122] : memref<10x10x128xf32, #tpu.memory_space<vmem>>, vector<8x8x128xf32>
    %101 = vector.shape_cast %100 : vector<8x8x128xf32> to vector<64x128xf32>
    %c2_123 = arith.constant 2 : index
    %c2_124 = arith.constant 2 : index
    %c0_125 = arith.constant 0 : index
    %102 = vector.load %arg11[%c2_123, %c2_124, %c0_125] : memref<10x10x128xf32, #tpu.memory_space<vmem>>, vector<8x8x128xf32>
    %103 = vector.shape_cast %102 : vector<8x8x128xf32> to vector<64x128xf32>
    %104 = tpu.concatenate %87, %89, %91, %93, %95, %97, %99, %101, %103 in 1 : vector<64x128xf32>, vector<64x128xf32>, vector<64x128xf32>, vector<64x128xf32>, vector<64x128xf32>, vector<64x128xf32>, vector<64x128xf32>, vector<64x128xf32>, vector<64x128xf32> -> vector<64x1152xf32>
    %105 = arith.truncf %104 : vector<64x1152xf32> to vector<64x1152xbf16>
    %c0_126 = arith.constant 0 : index
    %c0_127 = arith.constant 0 : index
    %106 = vector.load %arg8[%c0_126, %c0_127] : memref<1152x128xbf16, #tpu.memory_space<vmem>>, vector<1152x128xbf16>
    %cst_128 = arith.constant dense<0.000000e+00> : vector<64x128xf32>
    %107 = tpu.matmul %105, %106, %cst_128 {dimension_numbers = #tpu.dot_dimension_numbers<[1], [0], [0], [1], [0, 0, 1, 1], [], []>} : vector<64x1152xbf16>, vector<1152x128xbf16>, vector<64x128xf32> -> vector<64x128xf32>
    %cst_129 = arith.constant 0.000000e+00 : f32
    %108 = vector.broadcast %cst_129 : f32 to vector<64x128xf32>
    %109 = arith.maximumf %107, %108 : vector<64x128xf32>
    %110 = arith.truncf %109 : vector<64x128xf32> to vector<64x128xbf16>
    %c0_130 = arith.constant 0 : index
    %c0_131 = arith.constant 0 : index
    %111 = vector.load %arg9[%c0_130, %c0_131] : memref<128x128xbf16, #tpu.memory_space<vmem>>, vector<128x128xbf16>
    %cst_132 = arith.constant dense<0.000000e+00> : vector<64x128xf32>
    %112 = tpu.matmul %110, %111, %cst_132 {dimension_numbers = #tpu.dot_dimension_numbers<[1], [0], [0], [1], [0, 0, 1, 1], [], []>} : vector<64x128xbf16>, vector<128x128xbf16>, vector<64x128xf32> -> vector<64x128xf32>
    %113 = arith.addf %81, %112 : vector<64x128xf32>
    %cst_133 = arith.constant 0.000000e+00 : f32
    %114 = vector.broadcast %cst_133 : f32 to vector<64x128xf32>
    %115 = arith.maximumf %113, %114 : vector<64x128xf32>
    %116 = vector.shape_cast %115 : vector<64x128xf32> to vector<8x8x128xf32>
    %c0_134 = arith.constant 0 : index
    %c0_135 = arith.constant 0 : index
    %c0_136 = arith.constant 0 : index
    %c0_137 = arith.constant 0 : index
    %117 = vector.load %arg10[%c0_134, %c0_135, %c0_136, %c0_137] : memref<1x8x8x128xf32, #tpu.memory_space<vmem>>, vector<1x8x8x128xf32>
    %118 = vector.shape_cast %117 : vector<1x8x8x128xf32> to vector<8x8x128xf32>
    %119 = vector.shape_cast %116 : vector<8x8x128xf32> to vector<1x8x8x128xf32>
    tpu.vector_store %arg10[%c0_134, %c0_135, %c0_136, %c0_137], %119 {strides = array<i32>} : memref<1x8x8x128xf32, #tpu.memory_space<vmem>>, vector<1x8x8x128xf32>,
    return
  }
  func.func @transform_0(%arg0: i32) -> (i32, i32, i32, i32) {
    %c0_i32 = arith.constant 0 : i32
    %c0_i32_0 = arith.constant 0 : i32
    %c0_i32_1 = arith.constant 0 : i32
    %c0_i32_2 = arith.constant 0 : i32
    return %arg0, %c0_i32, %c0_i32_0, %c0_i32_1 : i32, i32, i32, i32
  }
  func.func @transform_1(%arg0: i32) -> (i32, i32) {
    %c0_i32 = arith.constant 0 : i32
    %c0_i32_0 = arith.constant 0 : i32
    %c0_i32_1 = arith.constant 0 : i32
    return %c0_i32, %c0_i32_0 : i32, i32
  }
  func.func @transform_2(%arg0: i32) -> (i32, i32) {
    %c0_i32 = arith.constant 0 : i32
    %c0_i32_0 = arith.constant 0 : i32
    %c0_i32_1 = arith.constant 0 : i32
    return %c0_i32, %c0_i32_0 : i32, i32
  }
  func.func @transform_3(%arg0: i32) -> (i32, i32) {
    %c0_i32 = arith.constant 0 : i32
    %c0_i32_0 = arith.constant 0 : i32
    %c0_i32_1 = arith.constant 0 : i32
    return %c0_i32, %c0_i32_0 : i32, i32
  }
  func.func @transform_4(%arg0: i32) -> (i32, i32) {
    %c0_i32 = arith.constant 0 : i32
    %c0_i32_0 = arith.constant 0 : i32
    %c0_i32_1 = arith.constant 0 : i32
    return %c0_i32, %c0_i32_0 : i32, i32
  }
  func.func @transform_5(%arg0: i32) -> (i32, i32) {
    %c0_i32 = arith.constant 0 : i32
    %c0_i32_0 = arith.constant 0 : i32
    %c0_i32_1 = arith.constant 0 : i32
    return %c0_i32, %c0_i32_0 : i32, i32
  }
  func.func @transform_6(%arg0: i32) -> (i32, i32) {
    %c0_i32 = arith.constant 0 : i32
    %c0_i32_0 = arith.constant 0 : i32
    %c0_i32_1 = arith.constant 0 : i32
    return %c0_i32, %c0_i32_0 : i32, i32
  }
  func.func @transform_7(%arg0: i32) -> (i32, i32) {
    %c0_i32 = arith.constant 0 : i32
    %c0_i32_0 = arith.constant 0 : i32
    %c0_i32_1 = arith.constant 0 : i32
    return %c0_i32, %c0_i32_0 : i32, i32
  }
  func.func @transform_8(%arg0: i32) -> (i32, i32) {
    %c0_i32 = arith.constant 0 : i32
    %c0_i32_0 = arith.constant 0 : i32
    %c0_i32_1 = arith.constant 0 : i32
    return %c0_i32, %c0_i32_0 : i32, i32
  }
  func.func @transform_9(%arg0: i32) -> (i32, i32, i32, i32) {
    %c0_i32 = arith.constant 0 : i32
    %c0_i32_0 = arith.constant 0 : i32
    %c0_i32_1 = arith.constant 0 : i32
    %c0_i32_2 = arith.constant 0 : i32
    return %arg0, %c0_i32, %c0_i32_0, %c0_i32_1 : i32, i32, i32, i32
  }
}

</mosaic_0001>

<bundles_post_ra>
// kernel: encoder_forward.2
= control target key start
LH: loop header
LB: loop body
LE: loop exit
PB: predicated region body
PF: predicated region fallthrough
CT: control target
= control target key end

     0   :  { %s1381_s12 = smov 0   ;;  %s1667_s0 = inlined_call_operand.vmem [shape: f32[2,17,17,12], index: 0, kind: input, shape index: {}]   ;;  %s1668_s1 = inlined_call_operand.vmem [shape: bf16[2,2,12,64], index: 1, kind: input, shape index: {}]   ;;  %s1669_s2 = inlined_call_operand.vmem [shape: f32[1,64], index: 2, kind: input, shape index: {}]   ;;  %s1670_s3 = inlined_call_operand.vmem [shape: f32[2,16,16,64], index: 3, kind: output, shape index: {}]  }
   0x1 LB: > { %s1178_s13 = sadd.s32 4294967295, %s1359_s12   ;;  %p1182_p0 = scmp.ge.s32.totalorder %s1359_s12, 1  ;;  %s1359_s12 = sphi %s1381_s12, %s13_s12  }
   0x2   : > { %p137_p1 = scmp.lt.s32.totalorder %s1359_s12, 3 }
   0x4   : > { %p138_p2 = pnand %p1182_p0, %p137_p1 }
   0x5   : > { %p161_p3 = scmp.lt.s32.totalorder (!%p138_p2), %s1178_s13, 1 }
   0x6   : > { %141 = sbr.rel (%p138_p2) target bundleno = 411 (0x19b), region = 32 }
   0xb   : > { %v1190_v0 = vld [vmem:[%s1668_s1 + $0x8] sm:$0xf]  ;;  %v1340_v1 = vld [vmem:[%s1668_s1 + $0x8] sm:$0x30]  ;;  %vm327_vm0 = vcmask 1045504   ;;  %s1672_s13 = smov (!%p161_p3, %s1178_s13), 1 }
   0xc   : > { %v1191_v2 = vor.u32 %v1340_v1, %v1190_v0  ;;  %v1210_v3 = vld [vmem:[%s1668_s1] sm:$0xf]  ;;  %v1339_v4 = vld [vmem:[%s1668_s1] sm:$0x30]  ;;  %v1264_v5 = vld [vmem:[%s1668_s1 + $0x10] sm:$0xf] }
   0xd   : > { %v1211_v6 = vor.u32 %v1339_v4, %v1210_v3  ;;  %v1341_v7 = vld [vmem:[%s1668_s1 + $0x10] sm:$0x30]  ;;  %v1318_v8 = vld [vmem:[%s1668_s1 + $0x18] sm:$0xf]  ;;  %v1342_v9 = vld [vmem:[%s1668_s1 + $0x18] sm:$0x30] }
   0xe   : > { %v329_v10 = vsel %vm327_vm0, %v1191_v2, 0  ;;  %v1265_v11 = vor.u32 %v1341_v7, %v1264_v5  ;;  %v1319_v12 = vor.u32 %v1342_v9, %v1318_v8  ;;  %s1343_s30 = smul.u32 408, %s1672_s13  ;;  %vm278_vm1 = vcmask 97280   ;;  %s1338_s9 = sshll.u32 %s1672_s13, 8 }
   0xf   : > { %338 = vmatpush.bf16.msra.mxu0 %v329_v10  ;;  %v474_v13 = vsel %vm327_vm0, %v1211_v6, 0  ;;  %s1511_s14 = scalar_lea.vmem %s1670_s3, %s1338_s9  ;;  %vm1090_vm2 = vcmask 523264  }
  0x10   : > { %483 = vmatpush.bf16.msra.mxu1 %v474_v13  ;;  %v671_v14 = vsel %vm327_vm0, %v1265_v11, 0  ;;  %v899_v15 = vsel %vm327_vm0, %v1319_v12, 0  ;;  %s1423_s6 = scalar_lea.vmem %s1667_s0, %s1343_s30 }
  0x11   : > { %680 = vmatpush.bf16.msra.mxu2 %v671_v14  ;;  %908 = vmatpush.bf16.msra.mxu3 %v899_v15  ;;  %v222_v16 = vld [vmem:[%s1423_s6 + $0x1] sm:$0xff]  ;;  %v223_v17 = vld [vmem:[%s1423_s6 + $0x9] sm:$0xff]  ;;  %v1228_v21 = vld [vmem:[%s1423_s6 + $0x18] sm:$0xff] }
  0x12   : > { %v172_v18 = vld [vmem:[%s1423_s6] sm:$0xff]  ;;  %v254_v19 = vpack.c.bf16 %v223_v17, %v222_v16  ;;  %v173_v20 = vld [vmem:[%s1423_s6 + $0x8] sm:$0xff]  ;;  %v1230_v28 = vld [vmem:[%s1423_s6 + $0x30] sm:$0xff] }
  0x13   : > { %v1229_v22 = vld [vmem:[%s1423_s6 + $0x20] sm:$0xff]  ;;  %v204_v23 = vpack.c.bf16 %v173_v20, %v172_v18  ;;  %v1231_v29 = vld [vmem:[%s1423_s6 + $0x38] sm:$0xff]  ;;  %v1232_v34 = vld [vmem:[%s1423_s6 + $0x48] sm:$0xff] }
  0x14   : > { %v598_v24 = vpack.c.bf16 %v1229_v22, %v1228_v21  ;;  %v1282_v25 = vld [vmem:[%s1423_s6 + $0x19] sm:$0xff]  ;;  %v1283_v26 = vld [vmem:[%s1423_s6 + $0x21] sm:$0xff]  ;;  %1192 = vmatmul.msk.bf16.vlgmr.msra.gmra.mxu0 %vm278_vm1, %v254_v19  ;;  %v1284_v30 = vld [vmem:[%s1423_s6 + $0x31] sm:$0xff]  ;;  %v599_v32 = vpack.c.bf16 %v1231_v29, %v1230_v28 }
  0x15   : > { %v826_v27 = vpack.c.bf16 %v1283_v26, %v1282_v25  ;;  %1212 = vmatmul.msk.bf16.vlgmr.msra.gmra.mxu1 %vm278_vm1, %v204_v23  ;;  %v1285_v31 = vld [vmem:[%s1423_s6 + $0x39] sm:$0xff]  ;;  %v1233_v35 = vld [vmem:[%s1423_s6 + $0x50] sm:$0xff]  ;;  %v1235_v41 = vld [vmem:[%s1423_s6 + $0x68] sm:$0xff] }
  0x16   : > { %1266 = vmatmul.msk.bf16.vlgmr.msra.gmra.mxu2 %vm278_vm1, %v598_v24  ;;  %v827_v33 = vpack.c.bf16 %v1285_v31, %v1284_v30  ;;  %v1286_v36 = vld [vmem:[%s1423_s6 + $0x49] sm:$0xff]  ;;  %v1287_v37 = vld [vmem:[%s1423_s6 + $0x51] sm:$0xff]  ;;  %v600_v38 = vpack.c.bf16 %v1233_v35, %v1232_v34  ;;  %v1234_v40 = vld [vmem:[%s1423_s6 + $0x60] sm:$0xff] }
  0x17   : > { %1320 = vmatmul.msk.bf16.vlgmr.msra.gmra.mxu3 %vm278_vm1, %v826_v27  ;;  %v828_v39 = vpack.c.bf16 %v1287_v37, %v1286_v36  ;;  %v1288_v42 = vld [vmem:[%s1423_s6 + $0x61] sm:$0xff]  ;;  %v1289_v43 = vld [vmem:[%s1423_s6 + $0x69] sm:$0xff]  ;;  %v601_v44 = vpack.c.bf16 %v1235_v41, %v1234_v40  ;;  %v1236_v46 = vld [vmem:[%s1423_s6 + $0x78] sm:$0xff] }
  0x18   : > { %v829_v45 = vpack.c.bf16 %v1289_v43, %v1288_v42  ;;  %v1237_v47 = vld [vmem:[%s1423_s6 + $0x80] sm:$0xff]  ;;  %v1238_v52 = vld [vmem:[%s1423_s6 + $0x90] sm:$0xff]  ;;  %v1239_v53 = vld [vmem:[%s1423_s6 + $0x98] sm:$0xff] }
  0x19   : > { %v1290_v48 = vld [vmem:[%s1423_s6 + $0x79] sm:$0xff]  ;;  %v1291_v49 = vld [vmem:[%s1423_s6 + $0x81] sm:$0xff]  ;;  %v602_v50 = vpack.c.bf16 %v1237_v47, %v1236_v46  ;;  %v1292_v54 = vld [vmem:[%s1423_s6 + $0x91] sm:$0xff]  ;;  %v603_v56 = vpack.c.bf16 %v1239_v53, %v1238_v52 }
  0x1a   : > { %v830_v51 = vpack.c.bf16 %v1291_v49, %v1290_v48  ;;  %v1293_v55 = vld [vmem:[%s1423_s6 + $0x99] sm:$0xff]  ;;  %v1240_v58 = vld [vmem:[%s1423_s6 + $0xa8] sm:$0xff]  ;;  %v1241_v59 = vld [vmem:[%s1423_s6 + $0xb0] sm:$0xff] }
  0x1b   : > { %v831_v57 = vpack.c.bf16 %v1293_v55, %v1292_v54  ;;  %v1294_v60 = vld [vmem:[%s1423_s6 + $0xa9] sm:$0xff]  ;;  %v1295_v61 = vld [vmem:[%s1423_s6 + $0xb1] sm:$0xff]  ;;  %v604_v62 = vpack.c.bf16 %v1241_v59, %v1240_v58  ;;  %v1242_v0 = vld [vmem:[%s1423_s6 + $0xc0] sm:$0xff] }
  0x1c   : > { %v832_v63 = vpack.c.bf16 %v1295_v61, %v1294_v60  ;;  %v1243_v1 = vld [vmem:[%s1423_s6 + $0xc8] sm:$0xff]  ;;  %v1244_v6 = vld [vmem:[%s1423_s6 + $0xd8] sm:$0xff]  ;;  %v1245_v7 = vld [vmem:[%s1423_s6 + $0xe0] sm:$0xff] }
  0x1d   : > { %v1296_v2 = vld [vmem:[%s1423_s6 + $0xc1] sm:$0xff]  ;;  %v1297_v3 = vld [vmem:[%s1423_s6 + $0xc9] sm:$0xff]  ;;  %v605_v4 = vpack.c.bf16 %v1243_v1, %v1242_v0  ;;  %v1298_v8 = vld [vmem:[%s1423_s6 + $0xd9] sm:$0xff]  ;;  %v606_v11 = vpack.c.bf16 %v1245_v7, %v1244_v6 }
  0x1e   : > { %v833_v5 = vpack.c.bf16 %v1297_v3, %v1296_v2  ;;  %v1299_v9 = vld [vmem:[%s1423_s6 + $0xe1] sm:$0xff]  ;;  %v1504_v18 = vld [vmem:[%s1669_s2] ss:$0 sm:$0xff]  ;;  %v1246_v23 = vld [vmem:[%s1423_s6 + $0xf0] sm:$0xff] }
  0x1f   : > { %v834_v13 = vpack.c.bf16 %v1299_v9, %v1298_v8  ;;  %v1301_v28 = vld [vmem:[%s1423_s6 + $0xf9] sm:$0xff]  ;;  %v1248_v47 = vld [vmem:[%s1423_s6 + $0x108] sm:$0xff]  ;;  %v1249_v48 = vld [vmem:[%s1423_s6 + $0x110] sm:$0xff] }
  0x20   : > { %v1303_v52 = vld [vmem:[%s1423_s6 + $0x111] sm:$0xff]  ;;  %v1250_v7 = vld [vmem:[%s1423_s6 + $0x120] sm:$0xff]  ;;  %v1251_v8 = vld [vmem:[%s1423_s6 + $0x128] sm:$0xff] }
  0x24   : > { %1193 = vmatmul.msk.bf16.gmra.mxu0 %vm278_vm1, %v826_v27  ;;  %v1300_v27 = vld [vmem:[%s1423_s6 + $0xf1] sm:$0xff] }
  0x25   : > { %1213 = vmatmul.msk.bf16.gmra.mxu1 %vm278_vm1, %v598_v24  ;;  %v1247_v24 = vld [vmem:[%s1423_s6 + $0xf8] sm:$0xff]  ;;  %v835_v35 = vpack.c.bf16 %v1301_v28, %v1300_v27 }
  0x26   : > { %1267 = vmatmul.msk.bf16.gmra.mxu2 %vm278_vm1, %v599_v32 }
  0x27   : > { %1321 = vmatmul.msk.bf16.gmra.mxu3 %vm278_vm1, %v827_v33 }
  0x34   : > { %1194 = vmatmul.msk.bf16.gmra.mxu0 %vm278_vm1, %v827_v33  ;;  %v607_v33 = vpack.c.bf16 %v1247_v24, %v1246_v23 }
  0x35   : > { %1214 = vmatmul.msk.bf16.gmra.mxu1 %vm278_vm1, %v599_v32 }
  0x36   : > { %1268 = vmatmul.msk.bf16.gmra.mxu2 %vm278_vm1, %v600_v38 }
  0x37   : > { %1322 = vmatmul.msk.bf16.gmra.mxu3 %vm278_vm1, %v828_v39 }
  0x44   : > { %1195 = vmatmul.msk.bf16.gmra.mxu0 %vm278_vm1, %v828_v39 }
  0x45   : > { %1215 = vmatmul.msk.bf16.gmra.mxu1 %vm278_vm1, %v600_v38 }
  0x46   : > { %1269 = vmatmul.msk.bf16.gmra.mxu2 %vm278_vm1, %v601_v44 }
  0x47   : > { %1323 = vmatmul.msk.bf16.gmra.mxu3 %vm278_vm1, %v829_v45 }
  0x54   : > { %1196 = vmatmul.msk.bf16.gmra.mxu0 %vm278_vm1, %v829_v45 }
  0x55   : > { %1216 = vmatmul.msk.bf16.gmra.mxu1 %vm278_vm1, %v601_v44 }
  0x56   : > { %1270 = vmatmul.msk.bf16.gmra.mxu2 %vm278_vm1, %v602_v50 }
  0x57   : > { %1324 = vmatmul.msk.bf16.gmra.mxu3 %vm278_vm1, %v830_v51 }
  0x64   : > { %1197 = vmatmul.msk.bf16.gmra.mxu0 %vm278_vm1, %v830_v51  ;;  %v1302_v51 = vld [vmem:[%s1423_s6 + $0x109] sm:$0xff] }
  0x65   : > { %1217 = vmatmul.msk.bf16.gmra.mxu1 %vm278_vm1, %v602_v50  ;;  %v836_v59 = vpack.c.bf16 %v1303_v52, %v1302_v51 }
  0x66   : > { %1271 = vmatmul.msk.bf16.gmra.mxu2 %vm278_vm1, %v603_v56 }
  0x67   : > { %1325 = vmatmul.msk.bf16.gmra.mxu3 %vm278_vm1, %v831_v57 }
  0x74   : > { %1198 = vmatmul.msk.bf16.gmra.mxu0 %vm278_vm1, %v831_v57  ;;  %v608_v57 = vpack.c.bf16 %v1249_v48, %v1248_v47 }
  0x75   : > { %1218 = vmatmul.msk.bf16.gmra.mxu1 %vm278_vm1, %v603_v56 }
  0x76   : > { %1272 = vmatmul.msk.bf16.gmra.mxu2 %vm278_vm1, %v604_v62 }
  0x77   : > { %1326 = vmatmul.msk.bf16.gmra.mxu3 %vm278_vm1, %v832_v63 }
  0x84   : > { %1199 = vmatmul.msk.bf16.gmra.mxu0 %vm278_vm1, %v832_v63 }
  0x85   : > { %1219 = vmatmul.msk.bf16.gmra.mxu1 %vm278_vm1, %v604_v62 }
  0x86   : > { %1273 = vmatmul.msk.bf16.gmra.mxu2 %vm278_vm1, %v605_v4 }
  0x87   : > { %1327 = vmatmul.msk.bf16.gmra.mxu3 %vm278_vm1, %v833_v5 }
  0x91   : > { %v340_v10 = vpop.f32.mrf.mxu0 }
  0x92   : > { %v485_v12 = vpop.f32.mrf.mxu1 }
  0x93   : > { %v486_v14 = vadd.f32 %v485_v12, %v340_v10  ;;  %v1305_v12 = vld [vmem:[%s1423_s6 + $0x129] sm:$0xff] }
  0x94   : > { %1200 = vmatmul.msk.bf16.gmra.mxu0 %vm278_vm1, %v833_v5 }
  0x95   : > { %1220 = vmatmul.msk.bf16.gmra.mxu1 %vm278_vm1, %v605_v4 }
  0x96   : > { %1274 = vmatmul.msk.bf16.gmra.mxu2 %vm278_vm1, %v606_v11 }
  0x97   : > { %1328 = vmatmul.msk.bf16.gmra.mxu3 %vm278_vm1, %v834_v13 }
  0x99   : > { %v682_v15 = vpop.f32.mrf.mxu2  ;;  %v342_v19 = vpop.f32.mrf.mxu0 }
  0x9a   : > { %v762_v16 = vadd.f32 %v682_v15, %v486_v14  ;;  %v910_v17 = vpop.f32.mrf.mxu3  ;;  %v487_v20 = vpop.f32.mrf.mxu1 }
  0x9b   : > { %v488_v26 = vadd.f32 %v487_v20, %v342_v19 }
  0x9c   : > { %v990_v21 = vadd.f32 %v910_v17, %v762_v16  ;;  %v609_v17 = vpack.c.bf16 %v1251_v8, %v1250_v7 }
  0x9e   : > { %v1026_v22 = vadd.f32 %v1504_v18, %v990_v21 }
  0xa0   : > { %v1058_v25 = vmax.f32 %v1026_v22, 0.0 }
  0xa1   : > { %v684_v29 = vpop.f32.mrf.mxu2  ;;  %v345_v32 = vpop.f32.mrf.mxu0 }
  0xa2   : > { %1091 = vst.msk [vmem:[%s1511_s14] sm:$0xff] %vm1090_vm2, %v1058_v25  ;;  %v763_v30 = vadd.f32 %v684_v29, %v488_v26  ;;  %v912_v31 = vpop.f32.mrf.mxu3  ;;  %v490_v34 = vpop.f32.mrf.mxu1 }
  0xa3   : > { %v491_v38 = vadd.f32 %v490_v34, %v345_v32  ;;  %v1252_v32 = vld [vmem:[%s1423_s6 + $0x138] sm:$0xff] }
  0xa4   : > { %v991_v36 = vadd.f32 %v912_v31, %v763_v30  ;;  %1201 = vmatmul.msk.bf16.gmra.mxu0 %vm278_vm1, %v834_v13 }
  0xa5   : > { %1221 = vmatmul.msk.bf16.gmra.mxu1 %vm278_vm1, %v606_v11  ;;  %v1304_v11 = vld [vmem:[%s1423_s6 + $0x121] sm:$0xff] }
  0xa6   : > { %v1027_v37 = vadd.f32 %v1504_v18, %v991_v36  ;;  %1275 = vmatmul.msk.bf16.gmra.mxu2 %vm278_vm1, %v607_v33  ;;  %v837_v20 = vpack.c.bf16 %v1305_v12, %v1304_v11  ;;  %v1306_v36 = vld [vmem:[%s1423_s6 + $0x139] sm:$0xff] }
  0xa7   : > { %1329 = vmatmul.msk.bf16.gmra.mxu3 %vm278_vm1, %v835_v35 }
  0xa8   : > { %v1059_v39 = vmax.f32 %v1027_v37, 0.0  ;;  %v1307_v37 = vld [vmem:[%s1423_s6 + $0x141] sm:$0xff] }
  0xa9   : > { %v687_v40 = vpop.f32.mrf.mxu2  ;;  %v347_v43 = vpop.f32.mrf.mxu0 }
  0xaa   : > { %1092 = vst.msk [vmem:[%s1511_s14 + $0x8] sm:$0xff] %vm1090_vm2, %v1059_v39  ;;  %v764_v41 = vadd.f32 %v687_v40, %v491_v38  ;;  %v915_v42 = vpop.f32.mrf.mxu3  ;;  %v492_v44 = vpop.f32.mrf.mxu1 }
  0xab   : > { %v493_v50 = vadd.f32 %v492_v44, %v347_v43  ;;  %v838_v44 = vpack.c.bf16 %v1307_v37, %v1306_v36 }
  0xac   : > { %v992_v45 = vadd.f32 %v915_v42, %v764_v41 }
  0xae   : > { %v1028_v46 = vadd.f32 %v1504_v18, %v992_v45 }
  0xb0   : > { %v1060_v49 = vmax.f32 %v1028_v46, 0.0 }
  0xb1   : > { %v689_v53 = vpop.f32.mrf.mxu2  ;;  %v350_v56 = vpop.f32.mrf.mxu0 }
  0xb2   : > { %1093 = vst.msk [vmem:[%s1511_s14 + $0x10] sm:$0xff] %vm1090_vm2, %v1060_v49  ;;  %v765_v54 = vadd.f32 %v689_v53, %v493_v50  ;;  %v917_v55 = vpop.f32.mrf.mxu3  ;;  %v495_v58 = vpop.f32.mrf.mxu1 }
  0xb3   : > { %v496_v62 = vadd.f32 %v495_v58, %v350_v56  ;;  %v1254_v56 = vld [vmem:[%s1423_s6 + $0x150] sm:$0xff] }
  0xb4   : > { %v993_v60 = vadd.f32 %v917_v55, %v765_v54  ;;  %1202 = vmatmul.msk.bf16.gmra.mxu0 %vm278_vm1, %v835_v35 }
  0xb5   : > { %1222 = vmatmul.msk.bf16.gmra.mxu1 %vm278_vm1, %v607_v33  ;;  %v1253_v33 = vld [vmem:[%s1423_s6 + $0x140] sm:$0xff] }
  0xb6   : > { %v1029_v61 = vadd.f32 %v1504_v18, %v993_v60  ;;  %1276 = vmatmul.msk.bf16.gmra.mxu2 %vm278_vm1, %v608_v57  ;;  %v610_v42 = vpack.c.bf16 %v1253_v33, %v1252_v32  ;;  %v1308_v60 = vld [vmem:[%s1423_s6 + $0x151] sm:$0xff] }
  0xb7   : > { %1330 = vmatmul.msk.bf16.gmra.mxu3 %vm278_vm1, %v836_v59 }
  0xb8   : > { %v1061_v63 = vmax.f32 %v1029_v61, 0.0  ;;  %v1309_v61 = vld [vmem:[%s1423_s6 + $0x159] sm:$0xff] }
  0xb9   : > { %v692_v0 = vpop.f32.mrf.mxu2  ;;  %v352_v3 = vpop.f32.mrf.mxu0 }
  0xba   : > { %1094 = vst.msk [vmem:[%s1511_s14 + $0x18] sm:$0xff] %vm1090_vm2, %v1061_v63  ;;  %v766_v1 = vadd.f32 %v692_v0, %v496_v62  ;;  %v920_v2 = vpop.f32.mrf.mxu3  ;;  %v497_v4 = vpop.f32.mrf.mxu1 }
  0xbb   : > { %v498_v10 = vadd.f32 %v497_v4, %v352_v3  ;;  %v839_v4 = vpack.c.bf16 %v1309_v61, %v1308_v60 }
  0xbc   : > { %v994_v5 = vadd.f32 %v920_v2, %v766_v1 }
  0xbe   : > { %v1030_v6 = vadd.f32 %v1504_v18, %v994_v5 }
  0xc0   : > { %v1062_v9 = vmax.f32 %v1030_v6, 0.0 }
  0xc1   : > { %v694_v13 = vpop.f32.mrf.mxu2  ;;  %v355_v16 = vpop.f32.mrf.mxu0 }
  0xc2   : > { %1095 = vst.msk [vmem:[%s1511_s14 + $0x20] sm:$0xff] %vm1090_vm2, %v1062_v9  ;;  %v767_v14 = vadd.f32 %v694_v13, %v498_v10  ;;  %v922_v15 = vpop.f32.mrf.mxu3  ;;  %v500_v19 = vpop.f32.mrf.mxu1 }
  0xc3   : > { %v501_v23 = vadd.f32 %v500_v19, %v355_v16  ;;  %v1256_v16 = vld [vmem:[%s1423_s6 + $0x168] sm:$0xff] }
  0xc4   : > { %v995_v21 = vadd.f32 %v922_v15, %v767_v14  ;;  %1203 = vmatmul.msk.bf16.gmra.mxu0 %vm278_vm1, %v836_v59 }
  0xc5   : > { %1223 = vmatmul.msk.bf16.gmra.mxu1 %vm278_vm1, %v608_v57  ;;  %v1255_v57 = vld [vmem:[%s1423_s6 + $0x158] sm:$0xff] }
  0xc6   : > { %v1031_v22 = vadd.f32 %v1504_v18, %v995_v21  ;;  %1277 = vmatmul.msk.bf16.gmra.mxu2 %vm278_vm1, %v609_v17  ;;  %v611_v2 = vpack.c.bf16 %v1255_v57, %v1254_v56  ;;  %v1310_v21 = vld [vmem:[%s1423_s6 + $0x169] sm:$0xff] }
  0xc7   : > { %1331 = vmatmul.msk.bf16.gmra.mxu3 %vm278_vm1, %v837_v20 }
  0xc8   : > { %v1063_v24 = vmax.f32 %v1031_v22, 0.0  ;;  %v1311_v22 = vld [vmem:[%s1423_s6 + $0x171] sm:$0xff] }
  0xc9   : > { %v697_v25 = vpop.f32.mrf.mxu2  ;;  %v357_v28 = vpop.f32.mrf.mxu0 }
  0xca   : > { %1096 = vst.msk [vmem:[%s1511_s14 + $0x28] sm:$0xff] %vm1090_vm2, %v1063_v24  ;;  %v768_v26 = vadd.f32 %v697_v25, %v501_v23  ;;  %v925_v27 = vpop.f32.mrf.mxu3  ;;  %v502_v29 = vpop.f32.mrf.mxu1 }
  0xcb   : > { %v503_v35 = vadd.f32 %v502_v29, %v357_v28  ;;  %v840_v29 = vpack.c.bf16 %v1311_v22, %v1310_v21 }
  0xcc   : > { %v996_v30 = vadd.f32 %v925_v27, %v768_v26 }
  0xce   : > { %v1032_v31 = vadd.f32 %v1504_v18, %v996_v30 }
  0xd0   : > { %v1064_v34 = vmax.f32 %v1032_v31, 0.0 }
  0xd1   : > { %v699_v38 = vpop.f32.mrf.mxu2  ;;  %v360_v41 = vpop.f32.mrf.mxu0 }
  0xd2   : > { %1097 = vst.msk [vmem:[%s1511_s14 + $0x30] sm:$0xff] %vm1090_vm2, %v1064_v34  ;;  %v769_v39 = vadd.f32 %v699_v38, %v503_v35  ;;  %v927_v40 = vpop.f32.mrf.mxu3  ;;  %v505_v43 = vpop.f32.mrf.mxu1 }
  0xd3   : > { %v506_v47 = vadd.f32 %v505_v43, %v360_v41  ;;  %v1258_v41 = vld [vmem:[%s1423_s6 + $0x180] sm:$0xff] }
  0xd4   : > { %v997_v45 = vadd.f32 %v927_v40, %v769_v39  ;;  %1204 = vmatmul.msk.bf16.gmra.mxu0 %vm278_vm1, %v837_v20 }
  0xd5   : > { %1224 = vmatmul.msk.bf16.gmra.mxu1 %vm278_vm1, %v609_v17  ;;  %v1257_v17 = vld [vmem:[%s1423_s6 + $0x170] sm:$0xff] }
  0xd6   : > { %v1033_v46 = vadd.f32 %v1504_v18, %v997_v45  ;;  %1278 = vmatmul.msk.bf16.gmra.mxu2 %vm278_vm1, %v610_v42  ;;  %v612_v27 = vpack.c.bf16 %v1257_v17, %v1256_v16  ;;  %v1312_v45 = vld [vmem:[%s1423_s6 + $0x181] sm:$0xff] }
  0xd7   : > { %1332 = vmatmul.msk.bf16.gmra.mxu3 %vm278_vm1, %v838_v44 }
  0xd8   : > { %v1065_v48 = vmax.f32 %v1033_v46, 0.0  ;;  %v1313_v46 = vld [vmem:[%s1423_s6 + $0x189] sm:$0xff] }
  0xd9   : > { %v702_v49 = vpop.f32.mrf.mxu2  ;;  %v362_v52 = vpop.f32.mrf.mxu0 }
  0xda   : > { %1098 = vst.msk [vmem:[%s1511_s14 + $0x38] sm:$0xff] %vm1090_vm2, %v1065_v48  ;;  %v770_v50 = vadd.f32 %v702_v49, %v506_v47  ;;  %v930_v51 = vpop.f32.mrf.mxu3  ;;  %v507_v53 = vpop.f32.mrf.mxu1 }
  0xdb   : > { %v508_v59 = vadd.f32 %v507_v53, %v362_v52  ;;  %v841_v53 = vpack.c.bf16 %v1313_v46, %v1312_v45 }
  0xdc   : > { %v998_v54 = vadd.f32 %v930_v51, %v770_v50 }
  0xde   : > { %v1034_v55 = vadd.f32 %v1504_v18, %v998_v54 }
  0xe0   : > { %v1066_v58 = vmax.f32 %v1034_v55, 0.0 }
  0xe1   : > { %v704_v62 = vpop.f32.mrf.mxu2  ;;  %v365_v1 = vpop.f32.mrf.mxu0 }
  0xe2   : > { %1099 = vst.msk [vmem:[%s1511_s14 + $0x40] sm:$0xff] %vm1090_vm2, %v1066_v58  ;;  %v771_v63 = vadd.f32 %v704_v62, %v508_v59  ;;  %v932_v0 = vpop.f32.mrf.mxu3  ;;  %v510_v3 = vpop.f32.mrf.mxu1 }
  0xe3   : > { %v511_v7 = vadd.f32 %v510_v3, %v365_v1 }
  0xe4   : > { %v999_v5 = vadd.f32 %v932_v0, %v771_v63  ;;  %1205 = vmatmul.msk.bf16.gmra.mxu0 %vm278_vm1, %v838_v44 }
  0xe5   : > { %1225 = vmatmul.msk.bf16.gmra.mxu1 %vm278_vm1, %v610_v42  ;;  %v1259_v42 = vld [vmem:[%s1423_s6 + $0x188] sm:$0xff] }
  0xe6   : > { %v1035_v6 = vadd.f32 %v1504_v18, %v999_v5  ;;  %1279 = vmatmul.msk.bf16.gmra.mxu2 %vm278_vm1, %v611_v2  ;;  %v613_v51 = vpack.c.bf16 %v1259_v42, %v1258_v41 }
  0xe7   : > { %1333 = vmatmul.msk.bf16.gmra.mxu3 %vm278_vm1, %v839_v4 }
  0xe8   : > { %v1067_v8 = vmax.f32 %v1035_v6, 0.0 }
  0xe9   : > { %v707_v9 = vpop.f32.mrf.mxu2  ;;  %v367_v12 = vpop.f32.mrf.mxu0 }
  0xea   : > { %1100 = vst.msk [vmem:[%s1511_s14 + $0x48] sm:$0xff] %vm1090_vm2, %v1067_v8  ;;  %v772_v10 = vadd.f32 %v707_v9, %v511_v7  ;;  %v935_v11 = vpop.f32.mrf.mxu3  ;;  %v512_v13 = vpop.f32.mrf.mxu1 }
  0xeb   : > { %v513_v20 = vadd.f32 %v512_v13, %v367_v12 }
  0xec   : > { %v1000_v14 = vadd.f32 %v935_v11, %v772_v10 }
  0xee   : > { %v1036_v15 = vadd.f32 %v1504_v18, %v1000_v14 }
  0xf0   : > { %v1068_v19 = vmax.f32 %v1036_v15, 0.0 }
  0xf1   : > { %v709_v23 = vpop.f32.mrf.mxu2  ;;  %v370_v26 = vpop.f32.mrf.mxu0 }
  0xf2   : > { %1101 = vst.msk [vmem:[%s1511_s14 + $0x50] sm:$0xff] %vm1090_vm2, %v1068_v19  ;;  %v773_v24 = vadd.f32 %v709_v23, %v513_v20  ;;  %v937_v25 = vpop.f32.mrf.mxu3  ;;  %v515_v28 = vpop.f32.mrf.mxu1 }
  0xf3   : > { %v516_v32 = vadd.f32 %v515_v28, %v370_v26 }
  0xf4   : > { %v1001_v30 = vadd.f32 %v937_v25, %v773_v24  ;;  %1206 = vmatmul.msk.bf16.gmra.mxu0 %vm278_vm1, %v839_v4 }
  0xf5   : > { %1226 = vmatmul.msk.bf16.gmra.mxu1 %vm278_vm1, %v611_v2 }
  0xf6   : > { %v1037_v31 = vadd.f32 %v1504_v18, %v1001_v30  ;;  %1280 = vmatmul.msk.bf16.gmra.mxu2 %vm278_vm1, %v612_v27 }
  0xf7   : > { %1334 = vmatmul.msk.bf16.gmra.mxu3 %vm278_vm1, %v840_v29 }
  0xf8   : > { %v1069_v33 = vmax.f32 %v1037_v31, 0.0 }
  0xf9   : > { %v712_v34 = vpop.f32.mrf.mxu2  ;;  %v372_v37 = vpop.f32.mrf.mxu0 }
  0xfa   : > { %1102 = vst.msk [vmem:[%s1511_s14 + $0x58] sm:$0xff] %vm1090_vm2, %v1069_v33  ;;  %v774_v35 = vadd.f32 %v712_v34, %v516_v32  ;;  %v940_v36 = vpop.f32.mrf.mxu3  ;;  %v517_v38 = vpop.f32.mrf.mxu1 }
  0xfb   : > { %v518_v44 = vadd.f32 %v517_v38, %v372_v37 }
  0xfc   : > { %v1002_v39 = vadd.f32 %v940_v36, %v774_v35 }
  0xfe   : > { %v1038_v40 = vadd.f32 %v1504_v18, %v1002_v39 }
 0x100   : > { %v1070_v43 = vmax.f32 %v1038_v40, 0.0 }
 0x101   : > { %v714_v47 = vpop.f32.mrf.mxu2  ;;  %v375_v50 = vpop.f32.mrf.mxu0 }
 0x102   : > { %1103 = vst.msk [vmem:[%s1511_s14 + $0x60] sm:$0xff] %vm1090_vm2, %v1070_v43  ;;  %v775_v48 = vadd.f32 %v714_v47, %v518_v44  ;;  %v942_v49 = vpop.f32.mrf.mxu3  ;;  %v520_v52 = vpop.f32.mrf.mxu1 }
 0x103   : > { %v521_v56 = vadd.f32 %v520_v52, %v375_v50 }
 0x104   : > { %v1003_v54 = vadd.f32 %v942_v49, %v775_v48  ;;  %1207 = vmatmul.msk.bf16.gmra.mxu0 %vm278_vm1, %v840_v29 }
 0x105   : > { %1227 = vmatmul.msk.bf16.gmra.mxu1 %vm278_vm1, %v612_v27 }
 0x106   : > { %v1039_v55 = vadd.f32 %v1504_v18, %v1003_v54  ;;  %1281 = vmatmul.msk.bf16.gmra.mxu2 %vm278_vm1, %v613_v51 }
 0x107   : > { %1335 = vmatmul.msk.bf16.gmra.mxu3 %vm278_vm1, %v841_v53 }
 0x108   : > { %v1071_v57 = vmax.f32 %v1039_v55, 0.0 }
 0x109   : > { %v717_v58 = vpop.f32.mrf.mxu2  ;;  %v377_v61 = vpop.f32.mrf.mxu0 }
 0x10a   : > { %1104 = vst.msk [vmem:[%s1511_s14 + $0x68] sm:$0xff] %vm1090_vm2, %v1071_v57  ;;  %v776_v59 = vadd.f32 %v717_v58, %v521_v56  ;;  %v945_v60 = vpop.f32.mrf.mxu3  ;;  %v522_v62 = vpop.f32.mrf.mxu1 }
 0x10b   : > { %v523_v2 = vadd.f32 %v522_v62, %v377_v61 }
 0x10c   : > { %v1004_v63 = vadd.f32 %v945_v60, %v776_v59 }
 0x10e   : > { %v1040_v0 = vadd.f32 %v1504_v18, %v1004_v63 }
 0x110   : > { %v1072_v1 = vmax.f32 %v1040_v0, 0.0 }
 0x111   : > { %v719_v3 = vpop.f32.mrf.mxu2  ;;  %v380_v6 = vpop.f32.mrf.mxu0 }
 0x112   : > { %1105 = vst.msk [vmem:[%s1511_s14 + $0x70] sm:$0xff] %vm1090_vm2, %v1072_v1  ;;  %v777_v4 = vadd.f32 %v719_v3, %v523_v2  ;;  %v947_v5 = vpop.f32.mrf.mxu3  ;;  %v525_v7 = vpop.f32.mrf.mxu1 }
 0x113   : > { %v526_v10 = vadd.f32 %v525_v7, %v380_v6 }
 0x114   : > { %v1005_v8 = vadd.f32 %v947_v5, %v777_v4 }
 0x116   : > { %v1041_v9 = vadd.f32 %v1504_v18, %v1005_v8 }
 0x118   : > { %v1073_v11 = vmax.f32 %v1041_v9, 0.0 }
 0x119   : > { %v722_v12 = vpop.f32.mrf.mxu2  ;;  %v382_v15 = vpop.f32.mrf.mxu0 }
 0x11a   : > { %1106 = vst.msk [vmem:[%s1511_s14 + $0x78] sm:$0xff] %vm1090_vm2, %v1073_v11  ;;  %v778_v13 = vadd.f32 %v722_v12, %v526_v10  ;;  %v950_v14 = vpop.f32.mrf.mxu3  ;;  %v527_v16 = vpop.f32.mrf.mxu1 }
 0x11b   : > { %v528_v21 = vadd.f32 %v527_v16, %v382_v15 }
 0x11c   : > { %v1006_v17 = vadd.f32 %v950_v14, %v778_v13 }
 0x11e   : > { %v1042_v19 = vadd.f32 %v1504_v18, %v1006_v17 }
 0x120   : > { %v1074_v20 = vmax.f32 %v1042_v19, 0.0 }
 0x121   : > { %v724_v22 = vpop.f32.mrf.mxu2  ;;  %v385_v25 = vpop.f32.mrf.mxu0 }
 0x122   : > { %1107 = vst.msk [vmem:[%s1511_s14 + $0x80] sm:$0xff] %vm1090_vm2, %v1074_v20  ;;  %v779_v23 = vadd.f32 %v724_v22, %v528_v21  ;;  %v952_v24 = vpop.f32.mrf.mxu3  ;;  %v530_v26 = vpop.f32.mrf.mxu1 }
 0x123   : > { %v531_v29 = vadd.f32 %v530_v26, %v385_v25 }
 0x124   : > { %v1007_v27 = vadd.f32 %v952_v24, %v779_v23 }
 0x126   : > { %v1043_v28 = vadd.f32 %v1504_v18, %v1007_v27 }
 0x128   : > { %v1075_v30 = vmax.f32 %v1043_v28, 0.0 }
 0x129   : > { %v727_v31 = vpop.f32.mrf.mxu2  ;;  %v387_v34 = vpop.f32.mrf.mxu0 }
 0x12a   : > { %1108 = vst.msk [vmem:[%s1511_s14 + $0x88] sm:$0xff] %vm1090_vm2, %v1075_v30  ;;  %v780_v32 = vadd.f32 %v727_v31, %v531_v29  ;;  %v955_v33 = vpop.f32.mrf.mxu3  ;;  %v532_v35 = vpop.f32.mrf.mxu1 }
 0x12b   : > { %v533_v39 = vadd.f32 %v532_v35, %v387_v34 }
 0x12c   : > { %v1008_v36 = vadd.f32 %v955_v33, %v780_v32 }
 0x12e   : > { %v1044_v37 = vadd.f32 %v1504_v18, %v1008_v36 }
 0x130   : > { %v1076_v38 = vmax.f32 %v1044_v37, 0.0 }
 0x131   : > { %v729_v40 = vpop.f32.mrf.mxu2  ;;  %v390_v43 = vpop.f32.mrf.mxu0 }
 0x132   : > { %1109 = vst.msk [vmem:[%s1511_s14 + $0x90] sm:$0xff] %vm1090_vm2, %v1076_v38  ;;  %v781_v41 = vadd.f32 %v729_v40, %v533_v39  ;;  %v957_v42 = vpop.f32.mrf.mxu3  ;;  %v535_v44 = vpop.f32.mrf.mxu1 }
 0x133   : > { %v536_v47 = vadd.f32 %v535_v44, %v390_v43 }
 0x134   : > { %v1009_v45 = vadd.f32 %v957_v42, %v781_v41 }
 0x136   : > { %v1045_v46 = vadd.f32 %v1504_v18, %v1009_v45 }
 0x138   : > { %v1077_v48 = vmax.f32 %v1045_v46, 0.0 }
 0x139   : > { %v732_v49 = vpop.f32.mrf.mxu2  ;;  %v392_v52 = vpop.f32.mrf.mxu0 }
 0x13a   : > { %1110 = vst.msk [vmem:[%s1511_s14 + $0x98] sm:$0xff] %vm1090_vm2, %v1077_v48  ;;  %v782_v50 = vadd.f32 %v732_v49, %v536_v47  ;;  %v960_v51 = vpop.f32.mrf.mxu3  ;;  %v537_v53 = vpop.f32.mrf.mxu1 }
 0x13b   : > { %v538_v57 = vadd.f32 %v537_v53, %v392_v52 }
 0x13c   : > { %v1010_v54 = vadd.f32 %v960_v51, %v782_v50 }
 0x13e   : > { %v1046_v55 = vadd.f32 %v1504_v18, %v1010_v54 }
 0x140   : > { %v1078_v56 = vmax.f32 %v1046_v55, 0.0 }
 0x141   : > { %v734_v58 = vpop.f32.mrf.mxu2  ;;  %v395_v61 = vpop.f32.mrf.mxu0 }
 0x142   : > { %1111 = vst.msk [vmem:[%s1511_s14 + $0xa0] sm:$0xff] %vm1090_vm2, %v1078_v56  ;;  %v783_v59 = vadd.f32 %v734_v58, %v538_v57  ;;  %v962_v60 = vpop.f32.mrf.mxu3  ;;  %v540_v62 = vpop.f32.mrf.mxu1 }
 0x143   : > { %v541_v1 = vadd.f32 %v540_v62, %v395_v61 }
 0x144   : > { %v1011_v63 = vadd.f32 %v962_v60, %v783_v59 }
 0x146   : > { %v1047_v0 = vadd.f32 %v1504_v18, %v1011_v63 }
 0x148   : > { %v1079_v2 = vmax.f32 %v1047_v0, 0.0 }
 0x149   : > { %v737_v3 = vpop.f32.mrf.mxu2  ;;  %v397_v6 = vpop.f32.mrf.mxu0 }
 0x14a   : > { %1112 = vst.msk [vmem:[%s1511_s14 + $0xa8] sm:$0xff] %vm1090_vm2, %v1079_v2  ;;  %v784_v4 = vadd.f32 %v737_v3, %v541_v1  ;;  %v965_v5 = vpop.f32.mrf.mxu3  ;;  %v542_v7 = vpop.f32.mrf.mxu1 }
 0x14b   : > { %v543_v11 = vadd.f32 %v542_v7, %v397_v6 }
 0x14c   : > { %v1012_v8 = vadd.f32 %v965_v5, %v784_v4 }
 0x14e   : > { %v1048_v9 = vadd.f32 %v1504_v18, %v1012_v8 }
 0x150   : > { %v1080_v10 = vmax.f32 %v1048_v9, 0.0 }
 0x151   : > { %v739_v12 = vpop.f32.mrf.mxu2  ;;  %v400_v15 = vpop.f32.mrf.mxu0 }
 0x152   : > { %1113 = vst.msk [vmem:[%s1511_s14 + $0xb0] sm:$0xff] %vm1090_vm2, %v1080_v10  ;;  %v785_v13 = vadd.f32 %v739_v12, %v543_v11  ;;  %v967_v14 = vpop.f32.mrf.mxu3  ;;  %v545_v16 = vpop.f32.mrf.mxu1 }
 0x153   : > { %v546_v20 = vadd.f32 %v545_v16, %v400_v15 }
 0x154   : > { %v1013_v17 = vadd.f32 %v967_v14, %v785_v13 }
 0x156   : > { %v1049_v19 = vadd.f32 %v1504_v18, %v1013_v17 }
 0x158   : > { %v1081_v21 = vmax.f32 %v1049_v19, 0.0 }
 0x159   : > { %v742_v22 = vpop.f32.mrf.mxu2  ;;  %v402_v25 = vpop.f32.mrf.mxu0 }
 0x15a   : > { %1114 = vst.msk [vmem:[%s1511_s14 + $0xb8] sm:$0xff] %vm1090_vm2, %v1081_v21  ;;  %v786_v23 = vadd.f32 %v742_v22, %v546_v20  ;;  %v970_v24 = vpop.f32.mrf.mxu3  ;;  %v547_v26 = vpop.f32.mrf.mxu1 }
 0x15b   : > { %v548_v30 = vadd.f32 %v547_v26, %v402_v25 }
 0x15c   : > { %v1014_v27 = vadd.f32 %v970_v24, %v786_v23 }
 0x15e   : > { %v1050_v28 = vadd.f32 %v1504_v18, %v1014_v27 }
 0x160   : > { %v1082_v29 = vmax.f32 %v1050_v28, 0.0 }
 0x161   : > { %v744_v31 = vpop.f32.mrf.mxu2  ;;  %v405_v34 = vpop.f32.mrf.mxu0 }
 0x162   : > { %1115 = vst.msk [vmem:[%s1511_s14 + $0xc0] sm:$0xff] %vm1090_vm2, %v1082_v29  ;;  %v787_v32 = vadd.f32 %v744_v31, %v548_v30  ;;  %v972_v33 = vpop.f32.mrf.mxu3  ;;  %v550_v35 = vpop.f32.mrf.mxu1 }
 0x163   : > { %v551_v38 = vadd.f32 %v550_v35, %v405_v34 }
 0x164   : > { %v1015_v36 = vadd.f32 %v972_v33, %v787_v32 }
 0x166   : > { %v1051_v37 = vadd.f32 %v1504_v18, %v1015_v36 }
 0x168   : > { %v1083_v39 = vmax.f32 %v1051_v37, 0.0 }
 0x169   : > { %v747_v40 = vpop.f32.mrf.mxu2  ;;  %v407_v43 = vpop.f32.mrf.mxu0 }
 0x16a   : > { %1116 = vst.msk [vmem:[%s1511_s14 + $0xc8] sm:$0xff] %vm1090_vm2, %v1083_v39  ;;  %v788_v41 = vadd.f32 %v747_v40, %v551_v38  ;;  %v975_v42 = vpop.f32.mrf.mxu3  ;;  %v552_v44 = vpop.f32.mrf.mxu1 }
 0x16b   : > { %v553_v48 = vadd.f32 %v552_v44, %v407_v43 }
 0x16c   : > { %v1016_v45 = vadd.f32 %v975_v42, %v788_v41 }
 0x16e   : > { %v1052_v46 = vadd.f32 %v1504_v18, %v1016_v45 }
 0x170   : > { %v1084_v47 = vmax.f32 %v1052_v46, 0.0 }
 0x171   : > { %v749_v49 = vpop.f32.mrf.mxu2  ;;  %v410_v52 = vpop.f32.mrf.mxu0 }
 0x172   : > { %1117 = vst.msk [vmem:[%s1511_s14 + $0xd0] sm:$0xff] %vm1090_vm2, %v1084_v47  ;;  %v789_v50 = vadd.f32 %v749_v49, %v553_v48  ;;  %v977_v51 = vpop.f32.mrf.mxu3  ;;  %v555_v53 = vpop.f32.mrf.mxu1 }
 0x173   : > { %v556_v56 = vadd.f32 %v555_v53, %v410_v52 }
 0x174   : > { %v1017_v54 = vadd.f32 %v977_v51, %v789_v50 }
 0x176   : > { %v1053_v55 = vadd.f32 %v1504_v18, %v1017_v54 }
 0x178   : > { %v1085_v57 = vmax.f32 %v1053_v55, 0.0 }
 0x179   : > { %v752_v58 = vpop.f32.mrf.mxu2  ;;  %v412_v61 = vpop.f32.mrf.mxu0 }
 0x17a   : > { %1118 = vst.msk [vmem:[%s1511_s14 + $0xd8] sm:$0xff] %vm1090_vm2, %v1085_v57  ;;  %v790_v59 = vadd.f32 %v752_v58, %v556_v56  ;;  %v980_v60 = vpop.f32.mrf.mxu3  ;;  %v557_v62 = vpop.f32.mrf.mxu1 }
 0x17b   : > { %v558_v2 = vadd.f32 %v557_v62, %v412_v61 }
 0x17c   : > { %v1018_v63 = vadd.f32 %v980_v60, %v790_v59 }
 0x17e   : > { %v1054_v0 = vadd.f32 %v1504_v18, %v1018_v63 }
 0x180   : > { %v1086_v1 = vmax.f32 %v1054_v0, 0.0 }
 0x181   : > { %v754_v3 = vpop.f32.mrf.mxu2  ;;  %v415_v6 = vpop.f32.mrf.mxu0 }
 0x182   : > { %1119 = vst.msk [vmem:[%s1511_s14 + $0xe0] sm:$0xff] %vm1090_vm2, %v1086_v1  ;;  %v791_v4 = vadd.f32 %v754_v3, %v558_v2  ;;  %v982_v5 = vpop.f32.mrf.mxu3  ;;  %v560_v7 = vpop.f32.mrf.mxu1 }
 0x183   : > { %v561_v10 = vadd.f32 %v560_v7, %v415_v6 }
 0x184   : > { %v1019_v8 = vadd.f32 %v982_v5, %v791_v4 }
 0x186   : > { %v1055_v9 = vadd.f32 %v1504_v18, %v1019_v8 }
 0x188   : > { %v1087_v11 = vmax.f32 %v1055_v9, 0.0 }
 0x189   : > { %v757_v12 = vpop.f32.mrf.mxu2  ;;  %v417_v16 = vpop.f32.mrf.mxu0 }
 0x18a   : > { %1120 = vst.msk [vmem:[%s1511_s14 + $0xe8] sm:$0xff] %vm1090_vm2, %v1087_v11  ;;  %v792_v13 = vadd.f32 %v757_v12, %v561_v10  ;;  %v985_v14 = vpop.f32.mrf.mxu3  ;;  %v562_v17 = vpop.f32.mrf.mxu1 }
 0x18b   : > { %v563_v21 = vadd.f32 %v562_v17, %v417_v16 }
 0x18c   : > { %v1020_v15 = vadd.f32 %v985_v14, %v792_v13 }
 0x18e   : > { %v1056_v19 = vadd.f32 %v1504_v18, %v1020_v15 }
 0x190   : > { %v1088_v20 = vmax.f32 %v1056_v19, 0.0 }
 0x191   : > { %v759_v22 = vpop.f32.mrf.mxu2 }
 0x192   : > { %1121 = vst.msk [vmem:[%s1511_s14 + $0xf0] sm:$0xff] %vm1090_vm2, %v1088_v20  ;;  %v793_v23 = vadd.f32 %v759_v22, %v563_v21  ;;  %v987_v24 = vpop.f32.mrf.mxu3 }
 0x194   : > { %v1021_v25 = vadd.f32 %v987_v24, %v793_v23 }
 0x196   : > { %v1057_v26 = vadd.f32 %v1504_v18, %v1021_v25 }
 0x198   : > { %v1089_v27 = vmax.f32 %v1057_v26, 0.0 }
 0x19a   : > { %1122 = vst.msk [vmem:[%s1511_s14 + $0xf8] sm:$0xff] %vm1090_vm2, %v1089_v27 }
 0x19b PF: > { %s13_s12 = sadd.s32 1, %s1359_s12  }
 0x19c   : > { %p10_p4 = scmp.ge.s32.totalorder %s13_s12, 4  }
 0x19e   :  { %12 = sbr.rel (!%p10_p4) target bundleno = 1 (0x1), region = 66 }

// kernel: encoder_forward.3
= control target key start
LH: loop header
LB: loop body
LE: loop exit
PB: predicated region body
PF: predicated region fallthrough
CT: control target
= control target key end

     0   :  { %14 = vsyncpa [#allocation4], 0  ;;  %s8186_s0 = inlined_call_operand.vmem [shape: f32[2,9,9,256], index: 0, kind: input, shape index: {}]   ;;  %s8187_s1 = inlined_call_operand.vmem [shape: bf16[1024,128], index: 1, kind: input, shape index: {}]   ;;  %s8188_s2 = inlined_call_operand.vmem [shape: f32[1,128], index: 2, kind: input, shape index: {}]   ;;  %s8189_s3 = inlined_call_operand.vmem [shape: bf16[1152,128], index: 3, kind: input, shape index: {}]   ;;  %s8190_s4 = inlined_call_operand.vmem [shape: f32[1,128], index: 4, kind: input, shape index: {}]   ;;  %s8191_s5 = inlined_call_operand.vmem [shape: bf16[1152,128], index: 5, kind: input, shape index: {}]   ;;  %s8192_s6 = inlined_call_operand.vmem [shape: bf16[128,128], index: 6, kind: input, shape index: {}]   ;;  %s8193_s7 = inlined_call_operand.vmem [shape: bf16[1152,128], index: 7, kind: input, shape index: {}]   ;;  %s8194_s8 = inlined_call_operand.vmem [shape: bf16[128,128], index: 8, kind: input, shape index: {}]   ;;  %s8195_s9 = inlined_call_operand.hbm [shape: f32[2,8,8,128], index: 9, kind: output, shape index: {}]  }
   0x1   :  { %16 = vsyncpa [#allocation4 + $0x1], 0  ;;  %s6349_s30 = smov 0   ;;  %s6351_s10 = smov 0  }
   0x2   :  { %s6353_s11 = smov 0   ;;  %s6355_s12 = smov 0  }
   0x3 LB: > { %s6370_s13 = sadd.s32 4294967295, %s6294_s12   ;;  %s4630_s14 = sadd.s32 4294967294, %s6294_s12   ;;  %s6294_s12 = sphi %s6355_s12, %s8201_s12   ;;  %s6290_s11 = sphi %s6353_s11, %s8200_s11   ;;  %s6286_s10 = sphi %s6351_s10, %s8199_s10   ;;  %s6282_s30 = sphi %s6349_s30, %s8198_s30  }
   0x4   : > { %s6374_s15 = sadd.s32 1, %s6294_s12   ;;  %s223_s16 = sadd.s32 1, %s6290_s11 }
   0x5   : > { %s220_s17 = ssub.s32 %s6294_s12, %s6374_s15  ;;  %p233_p0 = scmp.ne.s32.totalorder %s6290_s11, %s6286_s10 }
   0x6   : > { %p221_p1 = scmp.eq.s32.totalorder %s220_s17, 0  ;;  %p234_p2 = scmp.eq.s32.totalorder %s6370_s13, 1 }
   0x7   : > { %p239_p3 = scmp.ne.s32.totalorder %s6286_s10, %s6282_s30  ;;  %p240_p4 = scmp.eq.s32.totalorder %s4630_s14, 1 }
   0x8   : > { %s6385_s18 = scalar_select %p221_p1, %s6290_s11, %s223_s16  }
   0x9   : > { %p6387_p5 = por %p234_p2, %p233_p0  ;;  %p6391_p6 = por %p240_p4, %p239_p3 }
   0xa   : > { %p4633_p7 = scmp.ge.s32.totalorder %s6294_s12, 1  ;;  %p290_p8 = scmp.lt.s32.totalorder %s6294_s12, 3 }
   0xc   : > { %p291_p9 = pnand %p4633_p7, %p290_p8 }
   0xd   : > { %p326_p10 = scmp.lt.s32.totalorder (!%p291_p9), %s6370_s13, 1  ;;  %s323_s16 = sand.u32 (!%p291_p9), 1, %s6286_s10  }
   0xe   : > { %294 = sbr.rel (%p291_p9) target bundleno = 1443 (0x5a3), region = 56  ;;  %s4634_s17 = sshll.u32 (!%p291_p9), %s323_s16, 6 }
   0xf   : > { %s6169_s21 = sshll.u32 (!%p291_p9), %s6370_s13, 6  ;;  %s4553_s27 = scalar_lea.sflag (!%p291_p9), [#allocation4], %s323_s16 }
  0x10   : > { %s4564_s25 = scalar_lea.hbm (!%p291_p9), %s8195_s9, %s6169_s21  ;;  %s6252_s21 = scalar_lea.hbm (!%p291_p9), %s8195_s9, 128 }
  0x13   : > { %v5880_v0 = vld [vmem:[%s8187_s1 + $0x38] sm:$0xff]  ;;  %v5879_v1 = vld [vmem:[%s8187_s1 + $0x30] sm:$0xff]  ;;  %v5878_v6 = vld [vmem:[%s8187_s1 + $0x28] sm:$0xff]  ;;  %s327_s29 = scalar_select %p326_p10, %s6370_s13, 1  ;;  %vm431_vm0 = vcmask 1046528  }
  0x14   : > { %6170 = vmatpush.bf16.msra.mxu1 %v5880_v0  ;;  %1189 = vmatpush.bf16.msra.mxu0 %v5880_v0  ;;  %v5896_v2 = vld [vmem:[%s8187_s1 + $0xb8] sm:$0xff]  ;;  %v5895_v4 = vld [vmem:[%s8187_s1 + $0xb0] sm:$0xff]  ;;  %v5894_v7 = vld [vmem:[%s8187_s1 + $0xa8] sm:$0xff] }
  0x15   : > { %v5904_v3 = vld [vmem:[%s8187_s1 + $0xf8] sm:$0xff]  ;;  %1247 = vmatpush.bf16.msra.mxu2 %v5896_v2  ;;  %v5903_v5 = vld [vmem:[%s8187_s1 + $0xf0] sm:$0xff]  ;;  %v5902_v8 = vld [vmem:[%s8187_s1 + $0xe8] sm:$0xff]  ;;  %s6186_s24 = smul.u32 288, %s327_s29 }
  0x16   : > { %1276 = vmatpush.bf16.msra.mxu3 %v5904_v3  ;;  %v5877_v9 = vld [vmem:[%s8187_s1 + $0x20] sm:$0xff]  ;;  %v5876_v12 = vld [vmem:[%s8187_s1 + $0x18] sm:$0xff]  ;;  %v5875_v15 = vld [vmem:[%s8187_s1 + $0x10] sm:$0xff] }
  0x17   : > { %v5893_v10 = vld [vmem:[%s8187_s1 + $0xa0] sm:$0xff]  ;;  %v5892_v13 = vld [vmem:[%s8187_s1 + $0x98] sm:$0xff]  ;;  %s6450_s29 = scalar_lea.vmem %s8186_s0, %s6186_s24  ;;  %v5891_v16 = vld [vmem:[%s8187_s1 + $0x90] sm:$0xff]  ;;  %s4567_s24 = sshll.u32 %s4564_s25, 4  ;;  %s4568_s24 = int_to_ptr.hbm [resolvable:$true] %s4567_s24 }
  0x18   : > { %6171 = vmatpush.bf16.msra.mxu1 %v5879_v1  ;;  %1190 = vmatpush.bf16.msra.mxu0 %v5879_v1  ;;  %v5901_v11 = vld [vmem:[%s8187_s1 + $0xe0] sm:$0xff]  ;;  %v5900_v14 = vld [vmem:[%s8187_s1 + $0xd8] sm:$0xff]  ;;  %v5874_v17 = vld [vmem:[%s8187_s1 + $0x8] sm:$0xff]  ;;  %s6246_s28 = sshra.s32 %s4568_s24, 4  ;;  %s6247_s28 = int_to_ptr.hbm [resolvable:$true] %s6246_s28 }
  0x19   : > { %1248 = vmatpush.bf16.msra.mxu2 %v5895_v4  ;;  %v5899_v18 = vld [vmem:[%s8187_s1 + $0xd0] sm:$0xff]  ;;  %v367_v19 = vld [vmem:[%s6450_s29] sm:$0xfe]  ;;  %v368_v23 = vld [vmem:[%s6450_s29 + $0x8] sm:$0xfe]  ;;  %s6248_s13 = scalar_lea.hbm %s6247_s28, 64  ;;  %p6253_p0 = scmp.lt.s32.totalorder %s6247_s28, %s8195_s9 }
  0x1a   : > { %1277 = vmatpush.bf16.msra.mxu3 %v5903_v5  ;;  %v369_v20 = vld [vmem:[%s6450_s29 + $0x10] sm:$0x1]  ;;  %v371_v21 = vld [vmem:[%s6450_s29 + $0x20] sm:$0xfe]  ;;  %v370_v24 = vld [vmem:[%s6450_s29 + $0x18] sm:$0x1]  ;;  %p6249_p11 = scmp.ne.s32.totalorder %s6247_s28, %s6248_s13  ;;  %p6254_p1 = scmp.lt.s32.totalorder %s6252_s21, %s6248_s13 }
  0x1b   : > { %v373_v22 = vld [vmem:[%s6450_s29 + $0x30] sm:$0x1]  ;;  %v372_v25 = vld [vmem:[%s6450_s29 + $0x28] sm:$0xfe]  ;;  %v374_v26 = vld [vmem:[%s6450_s29 + $0x38] sm:$0x1] }
  0x1c   : > { %6172 = vmatpush.bf16.msra.mxu1 %v5878_v6  ;;  %1191 = vmatpush.bf16.msra.mxu0 %v5878_v6  ;;  %v6470_v27 = vld [vmem:[%s6450_s29 + $0x80] sm:$0xff]  ;;  %v5890_v29 = vld [vmem:[%s8187_s1 + $0x88] sm:$0xff]  ;;  %v432_v31 = vrot.slane %v367_v19, 1  ;;  %v433_v32 = vrot.slane %v369_v20, 1  ;;  %v438_v33 = vrot.slane %v371_v21, 1  ;;  %v439_v34 = vrot.slane %v373_v22, 1  ;;  %p6250_p12 = pnand %p6249_p11, %p6387_p5  ;;  %p6255_p2 = por %p6254_p1, %p6253_p0 }
  0x1d   : > { %1249 = vmatpush.bf16.msra.mxu2 %v5894_v7  ;;  %v6473_v28 = vld [vmem:[%s6450_s29 + $0xa0] sm:$0xff]  ;;  %v5898_v30 = vld [vmem:[%s8187_s1 + $0xc8] sm:$0xff]  ;;  %v435_v37 = vrot.slane %v368_v23, 1  ;;  %v436_v38 = vrot.slane %v370_v24, 1  ;;  %v441_v39 = vrot.slane %v372_v25, 1  ;;  %v442_v40 = vrot.slane %v374_v26, 1 }
  0x1e   : > { %1278 = vmatpush.bf16.msra.mxu3 %v5902_v8  ;;  %v351_v35 = vld [vmem:[%s6450_s29] sm:$0xff]  ;;  %v5888_v42 = vld [vmem:[%s8187_s1 + $0x78] sm:$0xff]  ;;  %v657_v44 = vpack.c.bf16 %v6473_v28, %v6470_v27  ;;  %v434_v48 = vsel %vm431_vm0, %v432_v31, %v433_v32  ;;  %v440_v49 = vsel %vm431_vm0, %v438_v33, %v439_v34  ;;  %v5887_v54 = vld [vmem:[%s8187_s1 + $0x70] sm:$0xff]  ;;  %p6251_p13 = pneg %p6250_p12 }
  0x1f   : > { %v6483_v36 = vld [vmem:[%s6450_s29 + $0x20] sm:$0xff]  ;;  %v5912_v43 = vld [vmem:[%s8187_s1 + $0x138] sm:$0xff]  ;;  %v437_v50 = vsel %vm431_vm0, %v435_v37, %v436_v38  ;;  %v443_v51 = vsel %vm431_vm0, %v441_v39, %v442_v40  ;;  %v5911_v55 = vld [vmem:[%s8187_s1 + $0x130] sm:$0xff]  ;;  %v643_v56 = vpack.c.bf16 %v440_v49, %v434_v48 }
  0x20   : > { %6173 = vmatpush.bf16.msra.mxu1 %v5877_v9  ;;  %1192 = vmatpush.bf16.msra.mxu0 %v5877_v9  ;;  %v5873_v41 = vld [vmem:[%s8187_s1] sm:$0xff]  ;;  %v641_v45 = vpack.c.bf16 %v6483_v36, %v351_v35  ;;  %v5928_v52 = vld [vmem:[%s8187_s1 + $0x1b8] sm:$0xff]  ;;  %v644_v57 = vpack.c.bf16 %v443_v51, %v437_v50  ;;  %v5886_v58 = vld [vmem:[%s8187_s1 + $0x68] sm:$0xff]  ;;  %p6256_p3 = pnand %p6255_p2, %p6251_p13 }
  0x21   : > { %1250 = vmatpush.bf16.msra.mxu2 %v5893_v10  ;;  %v5889_v46 = vld [vmem:[%s8187_s1 + $0x80] sm:$0xff]  ;;  %v5936_v53 = vld [vmem:[%s8187_s1 + $0x1f8] sm:$0xff]  ;;  %v5927_v59 = vld [vmem:[%s8187_s1 + $0x1b0] sm:$0xff] }
  0x22   : > { %1279 = vmatpush.bf16.msra.mxu3 %v5901_v11  ;;  %v5897_v47 = vld [vmem:[%s8187_s1 + $0xc0] sm:$0xff]  ;;  %v5910_v60 = vld [vmem:[%s8187_s1 + $0x128] sm:$0xff]  ;;  %v5935_v62 = vld [vmem:[%s8187_s1 + $0x1f0] sm:$0xff] }
  0x23   : > { %v375_v61 = vld [vmem:[%s6450_s29 + $0x40] sm:$0xfe]  ;;  %v377_v63 = vld [vmem:[%s6450_s29 + $0x50] sm:$0x1]  ;;  %v376_v2 = vld [vmem:[%s6450_s29 + $0x48] sm:$0xfe] }
  0x24   : > { %6174 = vmatpush.bf16.msra.mxu1 %v5876_v12  ;;  %1193 = vmatpush.bf16.msra.mxu0 %v5876_v12  ;;  %v379_v0 = vld [vmem:[%s6450_s29 + $0x60] sm:$0xfe]  ;;  %v381_v1 = vld [vmem:[%s6450_s29 + $0x70] sm:$0x1]  ;;  %v378_v3 = vld [vmem:[%s6450_s29 + $0x58] sm:$0x1] }
  0x25   : > { %1251 = vmatpush.bf16.msra.mxu2 %v5892_v13  ;;  %v380_v4 = vld [vmem:[%s6450_s29 + $0x68] sm:$0xfe]  ;;  %v382_v5 = vld [vmem:[%s6450_s29 + $0x78] sm:$0x1]  ;;  %v5885_v8 = vld [vmem:[%s8187_s1 + $0x60] sm:$0xff]  ;;  %v444_v12 = vrot.slane %v375_v61, 1 }
  0x26   : > { %1280 = vmatpush.bf16.msra.mxu3 %v5900_v14  ;;  %v5926_v6 = vld [vmem:[%s8187_s1 + $0x1a8] sm:$0xff]  ;;  %v5909_v9 = vld [vmem:[%s8187_s1 + $0x120] sm:$0xff]  ;;  %v445_v13 = vrot.slane %v377_v63, 1  ;;  %v450_v14 = vrot.slane %v379_v0, 1  ;;  %v448_v19 = vrot.slane %v378_v3, 1  ;;  %v453_v20 = vrot.slane %v380_v4, 1 }
  0x27   : > { %v5934_v7 = vld [vmem:[%s8187_s1 + $0x1e8] sm:$0xff]  ;;  %v6552_v10 = vld [vmem:[%s6450_s29 + $0xc0] sm:$0xff]  ;;  %v454_v21 = vrot.slane %v382_v5, 1  ;;  %v5884_v22 = vld [vmem:[%s8187_s1 + $0x58] sm:$0xff] }
  0x28   : > { %6175 = vmatpush.bf16.msra.mxu1 %v5875_v15  ;;  %1194 = vmatpush.bf16.msra.mxu0 %v5875_v15  ;;  %v6555_v11 = vld [vmem:[%s6450_s29 + $0xe0] sm:$0xff]  ;;  %v451_v15 = vrot.slane %v381_v1, 1  ;;  %v5908_v23 = vld [vmem:[%s8187_s1 + $0x118] sm:$0xff]  ;;  %v446_v26 = vsel %vm431_vm0, %v444_v12, %v445_v13  ;;  %v5883_v32 = vld [vmem:[%s8187_s1 + $0x50] sm:$0xff] }
  0x29   : > { %1252 = vmatpush.bf16.msra.mxu2 %v5891_v16  ;;  %v6558_v16 = vld [vmem:[%s6450_s29 + $0x40] sm:$0xff]  ;;  %v665_v24 = vpack.c.bf16 %v6555_v11, %v6552_v10  ;;  %v455_v31 = vsel %vm431_vm0, %v453_v20, %v454_v21  ;;  %v5907_v33 = vld [vmem:[%s8187_s1 + $0x110] sm:$0xff]  ;;  %v5882_v38 = vld [vmem:[%s8187_s1 + $0x48] sm:$0xff] }
  0x2a   : > { %1281 = vmatpush.bf16.msra.mxu3 %v5899_v18  ;;  %v447_v18 = vrot.slane %v376_v2, 1  ;;  %v5925_v37 = vld [vmem:[%s8187_s1 + $0x1a0] sm:$0xff]  ;;  %v5906_v39 = vld [vmem:[%s8187_s1 + $0x108] sm:$0xff]  ;;  %v389_v48 = vld [vmem:[%s6450_s29 + $0xb0] sm:$0x1]  ;;  %v645_v2 = vpack.c.bf16 %v6558_v16, %v6483_v36 }
  0x2b   : > { %v5933_v40 = vld [vmem:[%s8187_s1 + $0x1e0] sm:$0xff]  ;;  %v384_v49 = vld [vmem:[%s6450_s29 + $0x88] sm:$0xfe]  ;;  %v386_v50 = vld [vmem:[%s6450_s29 + $0x98] sm:$0x1] }
  0x2c   : > { %6176 = vmatpush.bf16.msra.mxu1 %v5874_v17  ;;  %1195 = vmatpush.bf16.msra.mxu0 %v5874_v17  ;;  %v6561_v17 = vld [vmem:[%s6450_s29 + $0x60] sm:$0xff]  ;;  %v388_v51 = vld [vmem:[%s6450_s29 + $0xa8] sm:$0xfe]  ;;  %v460_v61 = vrot.slane %v386_v50, 1  ;;  %v5919_v0 = vld [vmem:[%s8187_s1 + $0x170] sm:$0xff] }
  0x2d   : > { %1253 = vmatpush.bf16.msra.mxu2 %v5890_v29  ;;  %v649_v25 = vpack.c.bf16 %v6561_v17, %v6558_v16  ;;  %v452_v29 = vsel %vm431_vm0, %v450_v14, %v451_v15  ;;  %v5931_v12 = vld [vmem:[%s8187_s1 + $0x1d0] sm:$0xff]  ;;  %v5922_v13 = vld [vmem:[%s8187_s1 + $0x188] sm:$0xff]  ;;  %v5917_v14 = vld [vmem:[%s8187_s1 + $0x160] sm:$0xff] }
  0x2e   : > { %1282 = vmatpush.bf16.msra.mxu3 %v5898_v30  ;;  %v449_v30 = vsel %vm431_vm0, %v447_v18, %v448_v19  ;;  %v651_v34 = vpack.c.bf16 %v452_v29, %v446_v26  ;;  %v391_v15 = vld [vmem:[%s6450_s29 + $0xc0] sm:$0xfe]  ;;  %v393_v16 = vld [vmem:[%s6450_s29 + $0xd0] sm:$0x1]  ;;  %v392_v20 = vld [vmem:[%s6450_s29 + $0xc8] sm:$0xfe] }
  0x2f   : > { %v652_v35 = vpack.c.bf16 %v455_v31, %v449_v30  ;;  %v395_v18 = vld [vmem:[%s6450_s29 + $0xe0] sm:$0xfe]  ;;  %v397_v19 = vld [vmem:[%s6450_s29 + $0xf0] sm:$0x1]  ;;  %v5930_v21 = vld [vmem:[%s8187_s1 + $0x1c8] sm:$0xff]  ;;  %v468_v26 = vrot.slane %v391_v15, 1 }
  0x30   : > { %6177 = vmatpush.bf16.msra.mxu1 %v5873_v41  ;;  %1196 = vmatpush.bf16.msra.mxu0 %v5873_v41  ;;  %v383_v41 = vld [vmem:[%s6450_s29 + $0x80] sm:$0xfe]  ;;  %v469_v29 = vrot.slane %v393_v16, 1  ;;  %v474_v30 = vrot.slane %v395_v18, 1  ;;  %v475_v31 = vrot.slane %v397_v19, 1 }
  0x31   : > { %1254 = vmatpush.bf16.msra.mxu2 %v5889_v46  ;;  %v5932_v46 = vld [vmem:[%s8187_s1 + $0x1d8] sm:$0xff]  ;;  %v4652_v50 = vld [vmem:[%s6450_s29 + $0x20] sm:$0xfe]  ;;  %v4666_v15 = vld [vmem:[%s6450_s29 + $0x90] sm:$0x1] }
  0x32   : > { %1283 = vmatpush.bf16.msra.mxu3 %v5897_v47  ;;  %v387_v47 = vld [vmem:[%s6450_s29 + $0xa0] sm:$0xfe]  ;;  %v4661_v16 = vld [vmem:[%s6450_s29 + $0x68] sm:$0xfe]  ;;  %v4663_v18 = vld [vmem:[%s6450_s29 + $0x78] sm:$0x1] }
  0x33   : > { %1207 = vmatmul.bf16.vlgmr.msra.gmra.mxu1 %v657_v44  ;;  %1197 = vmatmul.bf16.vlgmr.msra.gmra.mxu0 %v641_v45  ;;  %v385_v44 = vld [vmem:[%s6450_s29 + $0x90] sm:$0x1]  ;;  %v5924_v45 = vld [vmem:[%s8187_s1 + $0x198] sm:$0xff]  ;;  %v4665_v19 = vld [vmem:[%s6450_s29 + $0x88] sm:$0xfe] }
  0x34   : > { %1218 = vmatpush.bf16.msrb.mxu1 %v5888_v42  ;;  %1305 = vmatpush.bf16.msrb.mxu0 %v5912_v43  ;;  %v5881_v42 = vld [vmem:[%s8187_s1 + $0x40] sm:$0xff] }
  0x35   : > { %1363 = vmatpush.bf16.msrb.mxu2 %v5928_v52  ;;  %1284 = vmatmul.bf16.vlgmr.msra.gmra.mxu3 %v644_v57  ;;  %v5905_v43 = vld [vmem:[%s8187_s1 + $0x100] sm:$0xff]  ;;  %v390_v52 = vld [vmem:[%s6450_s29 + $0xb8] sm:$0x1]  ;;  %v463_v57 = vrot.slane %v389_v48, 1 }
  0x36   : > { %1392 = vmatpush.bf16.msrb.mxu3 %v5936_v53  ;;  %1255 = vmatmul.bf16.vlgmr.msra.gmra.mxu2 %v643_v56  ;;  %v5920_v53 = vld [vmem:[%s8187_s1 + $0x178] sm:$0xff]  ;;  %v462_v56 = vrot.slane %v387_v47, 1  ;;  %v466_v63 = vrot.slane %v390_v52, 1  ;;  %v5921_v47 = vld [vmem:[%s8187_s1 + $0x180] sm:$0xff] }
  0x37   : > { %v5929_v48 = vld [vmem:[%s8187_s1 + $0x1c0] sm:$0xff] }
  0x38   : > { %1219 = vmatpush.bf16.msrb.mxu1 %v5887_v54  ;;  %1306 = vmatpush.bf16.msrb.mxu0 %v5911_v55  ;;  %v456_v54 = vrot.slane %v383_v41, 1  ;;  %v457_v55 = vrot.slane %v385_v44, 1  ;;  %v464_v4 = vsel %vm431_vm0, %v462_v56, %v463_v57  ;;  %v653_v41 = vpack.c.bf16 %v6470_v27, %v6561_v17  ;;  %v5914_v17 = vld [vmem:[%s8187_s1 + $0x148] sm:$0xff]  ;;  %v4656_v52 = vld [vmem:[%s6450_s29 + $0x40] sm:$0xfe] }
  0x39   : > { %1364 = vmatpush.bf16.msrb.mxu2 %v5927_v59  ;;  %v6620_v59 = vld [vmem:[%s6450_s29 + $0x28] sm:$0xff]  ;;  %v4659_v57 = vld [vmem:[%s6450_s29 + $0x58] sm:$0x1] }
  0x3a   : > { %1393 = vmatpush.bf16.msrb.mxu3 %v5935_v62  ;;  %v465_v62 = vrot.slane %v388_v51, 1  ;;  %v458_v3 = vsel %vm431_vm0, %v456_v54, %v457_v55  ;;  %v4654_v51 = vld [vmem:[%s6450_s29 + $0x30] sm:$0x1]  ;;  %v4653_v54 = vld [vmem:[%s6450_s29 + $0x28] sm:$0xfe] }
  0x3b   : > { %v4655_v55 = vld [vmem:[%s6450_s29 + $0x38] sm:$0x1]  ;;  %v4657_v56 = vld [vmem:[%s6450_s29 + $0x48] sm:$0xfe] }
  0x3c   : > { %1220 = vmatpush.bf16.msrb.mxu1 %v5886_v58  ;;  %1307 = vmatpush.bf16.msrb.mxu0 %v5910_v60  ;;  %v352_v58 = vld [vmem:[%s6450_s29 + $0x8] sm:$0xff]  ;;  %v459_v60 = vrot.slane %v384_v49, 1  ;;  %v5913_v49 = vld [vmem:[%s8187_s1 + $0x140] sm:$0xff] }
  0x3d   : > { %1365 = vmatpush.bf16.msrb.mxu2 %v5926_v6  ;;  %v642_v1 = vpack.c.bf16 %v6620_v59, %v352_v58  ;;  %v467_v6 = vsel %vm431_vm0, %v465_v62, %v466_v63  ;;  %v577_v58 = vrot.slane %v4652_v50, 1  ;;  %v6699_v63 = vld [vmem:[%s6450_s29 + $0x88] sm:$0xff] }
  0x3e   : > { %1394 = vmatpush.bf16.msrb.mxu3 %v5934_v7  ;;  %v461_v5 = vsel %vm431_vm0, %v459_v60, %v460_v61  ;;  %v5918_v7 = vld [vmem:[%s8187_s1 + $0x168] sm:$0xff]  ;;  %v578_v60 = vrot.slane %v4654_v51, 1  ;;  %v583_v61 = vrot.slane %v4656_v52, 1 }
  0x3f   : > { %v660_v36 = vpack.c.bf16 %v467_v6, %v461_v5  ;;  %v661_v6 = vpack.c.bf16 %v6552_v10, %v6473_v28  ;;  %v4660_v28 = vld [vmem:[%s6450_s29 + $0x60] sm:$0xfe]  ;;  %v4662_v10 = vld [vmem:[%s6450_s29 + $0x70] sm:$0x1] }
  0x40   : > { %1221 = vmatpush.bf16.msrb.mxu1 %v5885_v8  ;;  %1308 = vmatpush.bf16.msrb.mxu0 %v5909_v9  ;;  %v659_v8 = vpack.c.bf16 %v464_v4, %v458_v3  ;;  %v5923_v9 = vld [vmem:[%s8187_s1 + $0x190] sm:$0xff]  ;;  %v586_v3 = vrot.slane %v4657_v56, 1  ;;  %v587_v4 = vrot.slane %v4659_v57, 1 }
  0x41   : > { %1366 = vmatpush.bf16.msrb.mxu2 %v5925_v37 }
  0x42   : > { %1395 = vmatpush.bf16.msrb.mxu3 %v5933_v40 }
  0x43   : > { %1212 = vmatmul.bf16.gmra.mxu1 %v665_v24  ;;  %1202 = vmatmul.bf16.gmra.mxu0 %v649_v25  ;;  %v398_v24 = vld [vmem:[%s6450_s29 + $0xf8] sm:$0x1] }
  0x44   : > { %1222 = vmatpush.bf16.msrb.mxu1 %v5884_v22  ;;  %1309 = vmatpush.bf16.msrb.mxu0 %v5908_v23  ;;  %v394_v22 = vld [vmem:[%s6450_s29 + $0xd8] sm:$0x1]  ;;  %v396_v23 = vld [vmem:[%s6450_s29 + $0xe8] sm:$0xfe] }
  0x45   : > { %1289 = vmatmul.bf16.gmra.mxu3 %v652_v35  ;;  %1367 = vmatpush.bf16.msrb.mxu2 %v5924_v45  ;;  %v5916_v25 = vld [vmem:[%s8187_s1 + $0x158] sm:$0xff]  ;;  %v472_v35 = vrot.slane %v394_v22, 1  ;;  %v477_v37 = vrot.slane %v396_v23, 1  ;;  %v589_v22 = vrot.slane %v4660_v28, 1  ;;  %v590_v23 = vrot.slane %v4662_v10, 1 }
  0x46   : > { %1260 = vmatmul.bf16.gmra.mxu2 %v651_v34  ;;  %1396 = vmatpush.bf16.msrb.mxu3 %v5932_v46  ;;  %v471_v34 = vrot.slane %v392_v20, 1  ;;  %v4667_v20 = vld [vmem:[%s6450_s29 + $0x98] sm:$0x1] }
  0x48   : > { %1223 = vmatpush.bf16.msrb.mxu1 %v5883_v32  ;;  %1310 = vmatpush.bf16.msrb.mxu0 %v5907_v33  ;;  %v6662_v32 = vld [vmem:[%s6450_s29 + $0x48] sm:$0xff]  ;;  %v473_v44 = vsel %vm431_vm0, %v471_v34, %v472_v35  ;;  %v598_v34 = vrot.slane %v4665_v19, 1  ;;  %v599_v35 = vrot.slane %v4667_v20, 1 }
  0x49   : > { %1368 = vmatpush.bf16.msrb.mxu2 %v5923_v9  ;;  %v6665_v33 = vld [vmem:[%s6450_s29 + $0x68] sm:$0xff]  ;;  %v588_v9 = vsel %vm431_vm0, %v586_v3, %v587_v4  ;;  %v4676_v4 = vld [vmem:[%s6450_s29 + $0xe0] sm:$0xfe] }
  0x4a   : > { %1397 = vmatpush.bf16.msrb.mxu3 %v5931_v12  ;;  %v650_v40 = vpack.c.bf16 %v6665_v33, %v6662_v32 }
  0x4c   : > { %1224 = vmatpush.bf16.msrb.mxu1 %v5882_v38  ;;  %1311 = vmatpush.bf16.msrb.mxu0 %v5906_v39  ;;  %v478_v38 = vrot.slane %v398_v24, 1  ;;  %v5915_v39 = vld [vmem:[%s8187_s1 + $0x150] sm:$0xff] }
  0x4d   : > { %1369 = vmatpush.bf16.msrb.mxu2 %v5922_v13 }
  0x4e   : > { %1398 = vmatpush.bf16.msrb.mxu3 %v5930_v21  ;;  %v479_v45 = vsel %vm431_vm0, %v477_v37, %v478_v38  ;;  %v6721_v21 = vld [vmem:[%s6450_s29 + $0xc8] sm:$0xff] }
  0x4f   : > { %v668_v27 = vpack.c.bf16 %v479_v45, %v473_v44  ;;  %v4668_v45 = vld [vmem:[%s6450_s29 + $0xa0] sm:$0xfe] }
  0x50   : > { %1225 = vmatpush.bf16.msrb.mxu1 %v5881_v42  ;;  %1312 = vmatpush.bf16.msrb.mxu0 %v5905_v43  ;;  %v470_v42 = vsel %vm431_vm0, %v468_v26, %v469_v29  ;;  %v476_v43 = vsel %vm431_vm0, %v474_v30, %v475_v31  ;;  %v6724_v26 = vld [vmem:[%s6450_s29 + $0xe8] sm:$0xff]  ;;  %v4650_v29 = vld [vmem:[%s6450_s29 + $0x100] sm:$0xff]  ;;  %v592_v30 = vrot.slane %v4661_v16, 1  ;;  %v593_v31 = vrot.slane %v4663_v18, 1 }
  0x51   : > { %v667_v46 = vpack.c.bf16 %v476_v43, %v470_v42  ;;  %1370 = vmatpush.bf16.msrb.mxu2 %v5921_v47  ;;  %v666_v37 = vpack.c.bf16 %v6724_v26, %v6721_v21  ;;  %v669_v38 = vpack.c.bf16 %v4650_v29, %v6555_v11  ;;  %v600_v42 = vsel %vm431_vm0, %v598_v34, %v599_v35  ;;  %v4672_v11 = vld [vmem:[%s6450_s29 + $0xc0] sm:$0xfe]  ;;  %v4674_v47 = vld [vmem:[%s6450_s29 + $0xd0] sm:$0x1]  ;;  %v4651_v34 = vld [vmem:[%s6450_s29 + $0x108] sm:$0xff] }
  0x52   : > { %1399 = vmatpush.bf16.msrb.mxu3 %v5929_v48  ;;  %v4673_v48 = vld [vmem:[%s6450_s29 + $0xc8] sm:$0xfe]  ;;  %v601_v50 = vrot.slane %v4668_v45, 1  ;;  %v607_v52 = vrot.slane %v4672_v11, 1  ;;  %v654_v18 = vpack.c.bf16 %v6699_v63, %v6665_v33  ;;  %v670_v35 = vpack.c.bf16 %v4651_v34, %v6724_v26  ;;  %v5943_v26 = vld [vmem:[%s8189_s3 + $0x30] sm:$0xff] }
  0x53   : > { %1226 = vmatmul.bf16.vlgmr.msrb.gmra.mxu1 %v642_v1  ;;  %1313 = vmatmul.bf16.vlgmr.msrb.gmra.mxu0 %v645_v2  ;;  %v580_v1 = vrot.slane %v4653_v54, 1  ;;  %v581_v2 = vrot.slane %v4655_v55, 1  ;;  %v610_v56 = vrot.slane %v4673_v48, 1  ;;  %v5963_v34 = vld [vmem:[%s8189_s3 + $0xd0] sm:$0xff] }
  0x54   : > { %1334 = vmatpush.bf16.msra.mxu1 %v5920_v53  ;;  %v4658_v53 = vld [vmem:[%s6450_s29 + $0x50] sm:$0x1] }
  0x55   : > { %1294 = vmatmul.bf16.gmra.mxu3 %v660_v36  ;;  %v584_v62 = vrot.slane %v4658_v53, 1  ;;  %v582_v36 = vsel %vm431_vm0, %v580_v1, %v581_v2  ;;  %v608_v53 = vrot.slane %v4674_v47, 1  ;;  %v5952_v47 = vld [vmem:[%s8189_s3 + $0x78] sm:$0xff] }
  0x56   : > { %1265 = vmatmul.bf16.gmra.mxu2 %v659_v8  ;;  %v648_v13 = vpack.c.bf16 %v588_v9, %v582_v36  ;;  %v4683_v36 = vld [vmem:[%s6450_s29 + $0x118] sm:$0x1]  ;;  %v613_v9 = vrot.slane %v4676_v4, 1  ;;  %v5957_v4 = vld [vmem:[%s8189_s3 + $0xa0] sm:$0xff] }
  0x57   : > { %v585_v8 = vsel %vm431_vm0, %v583_v61, %v584_v62  ;;  %v609_v61 = vsel %vm431_vm0, %v607_v52, %v608_v53  ;;  %v623_v16 = vrot.slane %v4683_v36, 1  ;;  %v5960_v52 = vld [vmem:[%s8189_s3 + $0xb8] sm:$0xff]  ;;  %v5950_v53 = vld [vmem:[%s8189_s3 + $0x68] sm:$0xff] }
  0x58   : > { %1335 = vmatpush.bf16.msra.mxu1 %v5919_v0  ;;  %v6702_v0 = vld [vmem:[%s6450_s29 + $0xa8] sm:$0xff]  ;;  %2185 = vmatpush.bf16.msra.mxu2 %v5960_v52  ;;  %v5956_v36 = vld [vmem:[%s8189_s3 + $0x98] sm:$0xff] }
  0x59   : > { %v658_v5 = vpack.c.bf16 %v6702_v0, %v6699_v63  ;;  %v662_v29 = vpack.c.bf16 %v6721_v21, %v6702_v0  ;;  %v5944_v0 = vld [vmem:[%s8189_s3 + $0x38] sm:$0xff] }
  0x5a   : > { %2127 = vmatpush.bf16.msra.mxu0 %v5944_v0 }
  0x5c   : > { %1336 = vmatpush.bf16.msra.mxu1 %v5918_v7  ;;  %v579_v7 = vsel %vm431_vm0, %v577_v58, %v578_v60  ;;  %v646_v58 = vpack.c.bf16 %v6662_v32, %v6620_v59  ;;  %v4677_v59 = vld [vmem:[%s6450_s29 + $0xe8] sm:$0xfe]  ;;  %v4679_v32 = vld [vmem:[%s6450_s29 + $0xf8] sm:$0x1] }
  0x5d   : > { %v647_v12 = vpack.c.bf16 %v585_v8, %v579_v7  ;;  %v4682_v7 = vld [vmem:[%s6450_s29 + $0x110] sm:$0x1]  ;;  %v4681_v8 = vld [vmem:[%s6450_s29 + $0x108] sm:$0xfe]  ;;  %v616_v10 = vrot.slane %v4677_v59, 1 }
  0x5e   : > { %v620_v28 = vrot.slane %v4682_v7, 1  ;;  %2128 = vmatpush.bf16.msra.mxu0 %v5943_v26  ;;  %v5962_v26 = vld [vmem:[%s8189_s3 + $0xc8] sm:$0xff] }
  0x60   : > { %1337 = vmatpush.bf16.msra.mxu1 %v5917_v14  ;;  %v4664_v14 = vld [vmem:[%s6450_s29 + $0x80] sm:$0xfe] }
  0x61   : > { %v595_v24 = vrot.slane %v4664_v14, 1  ;;  %v617_v14 = vrot.slane %v4679_v32, 1  ;;  %v6296_v32 = vmov 0.0  }
  0x62   : > { %333 = vst [vmem:[#allocation2 + $0x10] sm:$0xff] %v6296_v32 }
  0x63   : > { %1231 = vmatmul.bf16.gmra.mxu1 %v650_v40  ;;  %1318 = vmatmul.bf16.gmra.mxu0 %v653_v41  ;;  %v594_v41 = vsel %vm431_vm0, %v592_v30, %v593_v31  ;;  %334 = vst [vmem:[#allocation2 + $0x18] sm:$0x3] %v6296_v32 }
  0x64   : > { %1338 = vmatpush.bf16.msra.mxu1 %v5916_v25  ;;  %v596_v25 = vrot.slane %v4666_v15, 1  ;;  %v656_v44 = vpack.c.bf16 %v600_v42, %v594_v41  ;;  %v622_v15 = vrot.slane %v4681_v8, 1  ;;  %331 = vst [vmem:[#allocation2] sm:$0xff] %v6296_v32 }
  0x65   : > { %1299 = vmatmul.bf16.gmra.mxu3 %v668_v27  ;;  %v4669_v27 = vld [vmem:[%s6450_s29 + $0xa8] sm:$0xfe]  ;;  %332 = vst [vmem:[#allocation2 + $0x8] sm:$0x3] %v6296_v32 }
  0x66   : > { %1270 = vmatmul.bf16.gmra.mxu2 %v667_v46  ;;  %v597_v40 = vsel %vm431_vm0, %v595_v24, %v596_v25  ;;  %v4670_v46 = vld [vmem:[%s6450_s29 + $0xb0] sm:$0x1]  ;;  %v604_v54 = vrot.slane %v4669_v27, 1  ;;  %v5941_v27 = vld [vmem:[%s8189_s3 + $0x20] sm:$0xff]  ;;  %335 = vst [vmem:[#allocation2 + $0x20] sm:$0xff] %v6296_v32 }
  0x67   : > { %v602_v51 = vrot.slane %v4670_v46, 1  ;;  %336 = vst [vmem:[#allocation2 + $0x28] sm:$0x3] %v6296_v32 }
  0x68   : > { %1339 = vmatpush.bf16.msra.mxu1 %v5915_v39  ;;  %v591_v39 = vsel %vm431_vm0, %v589_v22, %v590_v23  ;;  %v618_v22 = vsel %vm431_vm0, %v616_v10, %v617_v14  ;;  %v624_v23 = vsel %vm431_vm0, %v622_v15, %v623_v16  ;;  %337 = vst [vmem:[#allocation2 + $0x30] sm:$0xff] %v6296_v32  ;;  %v5965_v10 = vld [vmem:[%s8189_s3 + $0xe0] sm:$0xff]  ;;  %v5938_v16 = vld [vmem:[%s8189_s3 + $0x8] sm:$0xff] }
  0x69   : > { %v655_v43 = vpack.c.bf16 %v597_v40, %v591_v39  ;;  %v603_v60 = vsel %vm431_vm0, %v601_v50, %v602_v51  ;;  %v672_v25 = vpack.c.bf16 %v624_v23, %v618_v22  ;;  %v5945_v14 = vld [vmem:[%s8189_s3 + $0x40] sm:$0xff]  ;;  %338 = vst [vmem:[#allocation2 + $0x38] sm:$0x3] %v6296_v32 }
  0x6a   : > { %v663_v2 = vpack.c.bf16 %v609_v61, %v603_v60  ;;  %339 = vst [vmem:[#allocation2 + $0x40] sm:$0xff] %v6296_v32  ;;  %v6923_v23 = vld [vmem:[%s8188_s2] ss:$0 sm:$0xff] }
  0x6b   : > { %340 = vst [vmem:[#allocation2 + $0x48] sm:$0x3] %v6296_v32 }
  0x6c   : > { %1340 = vmatpush.bf16.msra.mxu1 %v5914_v17  ;;  %v4671_v17 = vld [vmem:[%s6450_s29 + $0xb8] sm:$0x1]  ;;  %341 = vst [vmem:[#allocation2 + $0x50] sm:$0xff] %v6296_v32 }
  0x6d   : > { %v605_v55 = vrot.slane %v4671_v17, 1  ;;  %342 = vst [vmem:[#allocation2 + $0x58] sm:$0x3] %v6296_v32 }
  0x6e   : > { %343 = vst [vmem:[#allocation2 + $0x60] sm:$0xff] %v6296_v32 }
  0x6f   : > { %v606_v62 = vsel %vm431_vm0, %v604_v54, %v605_v55  ;;  %v5940_v54 = vld [vmem:[%s8189_s3 + $0x18] sm:$0xff]  ;;  %344 = vst [vmem:[#allocation2 + $0x68] sm:$0x3] %v6296_v32 }
  0x70   : > { %1341 = vmatpush.bf16.msra.mxu1 %v5913_v49  ;;  %v4675_v49 = vld [vmem:[%s6450_s29 + $0xd8] sm:$0x1]  ;;  %345 = vst [vmem:[#allocation2 + $0x70] sm:$0xff] %v6296_v32 }
  0x71   : > { %v611_v57 = vrot.slane %v4675_v49, 1  ;;  %v5951_v49 = vld [vmem:[%s8189_s3 + $0x70] sm:$0xff]  ;;  %346 = vst [vmem:[#allocation2 + $0x78] sm:$0x3] %v6296_v32 }
  0x72   : > { %347 = vst [vmem:[#allocation2 + $0x80] sm:$0xff] %v6296_v32 }
  0x73   : > { %1236 = vmatmul.bf16.gmra.mxu1 %v658_v5  ;;  %1323 = vmatmul.bf16.gmra.mxu0 %v661_v6  ;;  %v612_v1 = vsel %vm431_vm0, %v610_v56, %v611_v57  ;;  %v4678_v5 = vld [vmem:[%s6450_s29 + $0xf0] sm:$0x1]  ;;  %v4680_v6 = vld [vmem:[%s6450_s29 + $0x100] sm:$0xfe]  ;;  %348 = vst [vmem:[#allocation2 + $0x88] sm:$0x3] %v6296_v32 }
  0x74   : > { %v664_v3 = vpack.c.bf16 %v612_v1, %v606_v62  ;;  %2156 = vmatpush.bf16.msrb.mxu1 %v5952_v47  ;;  %v5959_v56 = vld [vmem:[%s8189_s3 + $0xb0] sm:$0xff]  ;;  %v5949_v57 = vld [vmem:[%s8189_s3 + $0x60] sm:$0xff]  ;;  %v5958_v62 = vld [vmem:[%s8189_s3 + $0xa8] sm:$0xff]  ;;  %349 = vst [vmem:[#allocation2 + $0x90] sm:$0xff] %v6296_v32  ;;  %s8135_s29 = scalar_lea.vmem [#allocation3], %s4634_s17 }
  0x75   : > { %1400 = vmatmul.bf16.vlgmr.msrb.gmra.mxu3 %v648_v13  ;;  %v619_v13 = vrot.slane %v4680_v6, 1  ;;  %2186 = vmatpush.bf16.msra.mxu2 %v5959_v56  ;;  %v5968_v1 = vld [vmem:[%s8189_s3 + $0xf8] sm:$0xff]  ;;  %v5947_v6 = vld [vmem:[%s8189_s3 + $0x50] sm:$0xff]  ;;  %350 = vst [vmem:[#allocation2 + $0x98] sm:$0x3] %v6296_v32  ;;  %s4565_s26 = sshll.u32 %s8135_s29, 4  ;;  %s4566_s26 = int_to_ptr.vmem [resolvable:$true] %s4565_s26 }
  0x76   : > { %1371 = vmatmul.bf16.vlgmr.msrb.gmra.mxu2 %v647_v12  ;;  %v614_v12 = vrot.slane %v4678_v5, 1  ;;  %2214 = vmatpush.bf16.msra.mxu3 %v5968_v1  ;;  %v5967_v5 = vld [vmem:[%s8189_s3 + $0xf0] sm:$0xff] }
  0x77   : > { %v621_v20 = vsel %vm431_vm0, %v619_v13, %v620_v28  ;;  %v5955_v28 = vld [vmem:[%s8189_s3 + $0x90] sm:$0xff] }
  0x78   : > { %v615_v19 = vsel %vm431_vm0, %v613_v9, %v614_v12  ;;  %2157 = vmatpush.bf16.msrb.mxu1 %v5951_v49  ;;  %v5966_v9 = vld [vmem:[%s8189_s3 + $0xe8] sm:$0xff] }
  0x79   : > { %v671_v24 = vpack.c.bf16 %v621_v20, %v615_v19  ;;  %2187 = vmatpush.bf16.msra.mxu2 %v5958_v62  ;;  %v5946_v12 = vld [vmem:[%s8189_s3 + $0x48] sm:$0xff]  ;;  %v5964_v20 = vld [vmem:[%s8189_s3 + $0xd8] sm:$0xff] }
  0x7a   : > { %2215 = vmatpush.bf16.msra.mxu3 %v5967_v5  ;;  %v5954_v19 = vld [vmem:[%s8189_s3 + $0x88] sm:$0xff]  ;;  %v5975_v5 = vld [vmem:[%s8189_s3 + $0x130] sm:$0xff] }
  0x7c   : > { %2158 = vmatpush.bf16.msrb.mxu1 %v5950_v53 }
  0x7d   : > { %2188 = vmatpush.bf16.msra.mxu2 %v5957_v4 }
  0x7e   : > { %2216 = vmatpush.bf16.msra.mxu3 %v5966_v9 }
  0x80   : > { %2159 = vmatpush.bf16.msrb.mxu1 %v5949_v57 }
  0x81   : > { %2189 = vmatpush.bf16.msra.mxu2 %v5956_v36 }
  0x82   : > { %2217 = vmatpush.bf16.msra.mxu3 %v5965_v10 }
  0x83   : > { %1241 = vmatmul.bf16.gmra.mxu1 %v666_v37  ;;  %1328 = vmatmul.bf16.gmra.mxu0 %v669_v38 }
  0x85   : > { %1405 = vmatmul.bf16.gmra.mxu3 %v656_v44  ;;  %v5942_v44 = vld [vmem:[%s8189_s3 + $0x28] sm:$0xff]  ;;  %2190 = vmatpush.bf16.msra.mxu2 %v5955_v28 }
  0x86   : > { %1376 = vmatmul.bf16.gmra.mxu2 %v655_v43  ;;  %2129 = vmatpush.bf16.msra.mxu0 %v5942_v44 }
  0x87   : > { %2218 = vmatpush.bf16.msra.mxu3 %v5964_v20 }
  0x89   : > { %2191 = vmatpush.bf16.msra.mxu2 %v5954_v19 }
  0x8a   : > { %2130 = vmatpush.bf16.msra.mxu0 %v5941_v27  ;;  %v5961_v27 = vld [vmem:[%s8189_s3 + $0xc0] sm:$0xff] }
  0x8b   : > { %2219 = vmatpush.bf16.msra.mxu3 %v5963_v34 }
  0x8e   : > { %2131 = vmatpush.bf16.msra.mxu0 %v5940_v54 }
  0x8f   : > { %2220 = vmatpush.bf16.msra.mxu3 %v5962_v26  ;;  %v5983_v26 = vld [vmem:[%s8189_s3 + $0x170] sm:$0xff] }
  0x93   : > { %1342 = vmatmul.bf16.vlgmr.msra.gmra.mxu1 %v646_v58  ;;  %2221 = vmatpush.bf16.msra.mxu3 %v5961_v27 }
  0x95   : > { %1410 = vmatmul.bf16.gmra.mxu3 %v664_v3  ;;  %v5939_v3 = vld [vmem:[%s8189_s3 + $0x10] sm:$0xff] }
  0x96   : > { %1381 = vmatmul.bf16.gmra.mxu2 %v663_v2  ;;  %v5948_v2 = vld [vmem:[%s8189_s3 + $0x58] sm:$0xff]  ;;  %2132 = vmatpush.bf16.msra.mxu0 %v5939_v3 }
  0x97   : > { %2160 = vmatpush.bf16.msrb.mxu1 %v5948_v2 }
  0x9a   : > { %2133 = vmatpush.bf16.msra.mxu0 %v5938_v16 }
  0x9b   : > { %2161 = vmatpush.bf16.msrb.mxu1 %v5947_v6 }
  0x9f   : > { %2162 = vmatpush.bf16.msrb.mxu1 %v5946_v12  ;;  %v1446_v12 = vld [vmem:[#allocation2 + $0x1] sm:$0xff] }
  0xa3   : > { %1347 = vmatmul.bf16.gmra.mxu1 %v654_v18 }
  0xa4   : > { %2163 = vmatpush.bf16.msrb.mxu1 %v5945_v14 }
  0xa5   : > { %1415 = vmatmul.bf16.gmra.mxu3 %v672_v25  ;;  %v5937_v25 = vld [vmem:[%s8189_s3] sm:$0xff] }
  0xa6   : > { %1386 = vmatmul.bf16.gmra.mxu2 %v671_v24  ;;  %2134 = vmatpush.bf16.msra.mxu0 %v5937_v25 }
  0xb0   : > { %v6764_v30 = vpop.f32.mrf.mxu1  ;;  %v6801_v46 = vpop.f32.mrf.mxu0 }
  0xb3   : > { %1352 = vmatmul.bf16.gmra.mxu1 %v662_v29  ;;  %v5953_v29 = vld [vmem:[%s8189_s3 + $0x80] sm:$0xff] }
  0xb4   : > { %2192 = vmatpush.bf16.msra.mxu2 %v5953_v29 }
  0xb8   : > { %v6766_v33 = vpop.f32.mrf.mxu1  ;;  %v6770_v31 = vpop.f32.mrf.mxu3 }
  0xb9   : > { %v6768_v63 = vpop.f32.mrf.mxu2  ;;  %v6818_v50 = vpop.f32.mrf.mxu0 }
  0xba   : > { %v1201_v49 = vadd.f32 %v6923_v23, %v6818_v50 }
  0xc0   : > { %v6774_v37 = vpop.f32.mrf.mxu1  ;;  %v6778_v39 = vpop.f32.mrf.mxu3 }
  0xc1   : > { %v6776_v38 = vpop.f32.mrf.mxu2  ;;  %v6843_v61 = vpop.f32.mrf.mxu0 }
  0xc2   : > { %v1204_v1 = vadd.f32 %v6923_v23, %v6843_v61 }
  0xc3   : > { %1357 = vmatmul.bf16.gmra.mxu1 %v670_v35  ;;  %v1199_v35 = vadd.f32 %v6923_v23, %v6801_v46 }
  0xc8   : > { %v6783_v21 = vpop.f32.mrf.mxu1  ;;  %v6787_v41 = vpop.f32.mrf.mxu3 }
  0xc9   : > { %v6785_v40 = vpop.f32.mrf.mxu2  ;;  %v6885_v13 = vpop.f32.mrf.mxu0 }
  0xca   : > { %v1206_v61 = vadd.f32 %v6923_v23, %v6885_v13  ;;  %v5984_v13 = vld [vmem:[%s8189_s3 + $0x178] sm:$0xff] }
  0xcb   : > { %2272 = vmatpush.bf16.msra.mxu1 %v5984_v13 }
  0xcf   : > { %2273 = vmatpush.bf16.msra.mxu1 %v5983_v26 }
  0xd0   : > { %v6792_v42 = vpop.f32.mrf.mxu1  ;;  %v6799_v45 = vpop.f32.mrf.mxu3 }
  0xd1   : > { %v6794_v43 = vpop.f32.mrf.mxu2  ;;  %v1314_v24 = vpop.f32.mrf.mxu0  ;;  %v1228_v44 = vadd.f32 %v6792_v42, %v1199_v35  ;;  %v5976_v42 = vld [vmem:[%s8189_s3 + $0x138] sm:$0xff]  ;;  %v1454_v35 = vld [vmem:[#allocation2 + $0x2] sm:$0xff] }
  0xd2   : > { %2243 = vmatpush.bf16.msrb.mxu0 %v5976_v42 }
  0xd3   : > { %v1257_v52 = vadd.f32 %v6768_v63, %v1228_v44 }
  0xd5   : > { %v1286_v56 = vadd.f32 %v6770_v31, %v1257_v52 }
  0xd6   : > { %2244 = vmatpush.bf16.msrb.mxu0 %v5975_v5  ;;  %v5991_v5 = vld [vmem:[%s8189_s3 + $0x1b0] sm:$0xff] }
  0xd7   : > { %v1315_v50 = vadd.f32 %v1314_v24, %v1286_v56 }
  0xd8   : > { %v6803_v11 = vpop.f32.mrf.mxu1  ;;  %v6813_v48 = vpop.f32.mrf.mxu3 }
  0xd9   : > { %v6811_v17 = vpop.f32.mrf.mxu2  ;;  %v1316_v53 = vpop.f32.mrf.mxu0  ;;  %v1230_v57 = vadd.f32 %v6803_v11, %v1201_v49 }
  0xdb   : > { %v1259_v63 = vadd.f32 %v6776_v38, %v1230_v57  ;;  %v5992_v57 = vld [vmem:[%s8189_s3 + $0x1b8] sm:$0xff] }
  0xdc   : > { %2301 = vmatpush.bf16.msrb.mxu2 %v5992_v57 }
  0xdd   : > { %v1288_v31 = vadd.f32 %v6778_v39, %v1259_v63 }
  0xdf   : > { %v1317_v38 = vadd.f32 %v1316_v53, %v1288_v31 }
  0xe0   : > { %v6820_v51 = vpop.f32.mrf.mxu1  ;;  %v6841_v60 = vpop.f32.mrf.mxu3  ;;  %2302 = vmatpush.bf16.msrb.mxu2 %v5991_v5 }
  0xe1   : > { %v6831_v55 = vpop.f32.mrf.mxu2  ;;  %v1319_v6 = vpop.f32.mrf.mxu0  ;;  %v1233_v11 = vadd.f32 %v6820_v51, %v1204_v1  ;;  %v5974_v51 = vld [vmem:[%s8189_s3 + $0x128] sm:$0xff] }
  0xe2   : > { %2245 = vmatpush.bf16.msrb.mxu0 %v5974_v51 }
  0xe3   : > { %v1262_v28 = vadd.f32 %v6785_v40, %v1233_v11  ;;  %v1211_v11 = vadd.f32 %v6923_v23, %v6766_v33  ;;  %v5990_v33 = vld [vmem:[%s8189_s3 + $0x1a8] sm:$0xff] }
  0xe4   : > { %2303 = vmatpush.bf16.msrb.mxu2 %v5990_v33 }
  0xe5   : > { %v1291_v40 = vadd.f32 %v6787_v41, %v1262_v28  ;;  %v1209_v41 = vadd.f32 %v6923_v23, %v6764_v30  ;;  %v6000_v28 = vld [vmem:[%s8189_s3 + $0x1f8] sm:$0xff] }
  0xe6   : > { %2330 = vmatpush.bf16.msrb.mxu3 %v6000_v28  ;;  %v5969_v28 = vld [vmem:[%s8189_s3 + $0x100] sm:$0xff] }
  0xe7   : > { %v1320_v44 = vadd.f32 %v1319_v6, %v1291_v40  ;;  %v5981_v6 = vld [vmem:[%s8189_s3 + $0x160] sm:$0xff] }
  0xe8   : > { %v6839_v58 = vpop.f32.mrf.mxu1  ;;  %v6872_v8 = vpop.f32.mrf.mxu3  ;;  %v5989_v40 = vld [vmem:[%s8189_s3 + $0x1a0] sm:$0xff] }
  0xe9   : > { %v6868_v59 = vpop.f32.mrf.mxu2  ;;  %v1235_v24 = vadd.f32 %v6839_v58, %v1206_v61  ;;  %v1321_v29 = vpop.f32.mrf.mxu0  ;;  %2304 = vmatpush.bf16.msrb.mxu2 %v5989_v40 }
  0xf0   : > { %v6866_v7 = vpop.f32.mrf.mxu1  ;;  %v6917_v22 = vpop.f32.mrf.mxu3 }
  0xf1   : > { %v6907_v18 = vpop.f32.mrf.mxu2 }
  0xf8   : > { %v6900_v15 = vpop.f32.mrf.mxu1  ;;  %v1401_v47 = vpop.f32.mrf.mxu3 }
  0xf9   : > { %v1372_v46 = vpop.f32.mrf.mxu2 }
 0x100   : > { %v6939_v0 = vpop.f32.mrf.mxu1  ;;  %v1403_v3 = vpop.f32.mrf.mxu3 }
 0x101   : > { %v1374_v62 = vpop.f32.mrf.mxu2 }
 0x108   : > { %v6955_v54 = vpop.f32.mrf.mxu1  ;;  %v1406_v20 = vpop.f32.mrf.mxu3 }
 0x109   : > { %v1377_v16 = vpop.f32.mrf.mxu2 }
 0x110   : > { %v1343_v2 = vpop.f32.mrf.mxu1 }
 0x111   : > { %v1344_v4 = vadd.f32 %v1343_v2, %v1315_v50  ;;  %v1379_v30 = vpop.f32.mrf.mxu2  ;;  %v1238_v50 = vadd.f32 %v6866_v7, %v1209_v41  ;;  %v1408_v2 = vpop.f32.mrf.mxu3 }
 0x113   : > { %v1373_v36 = vadd.f32 %v1372_v46, %v1344_v4  ;;  %v1264_v46 = vadd.f32 %v6794_v43, %v1235_v24  ;;  %v5973_v43 = vld [vmem:[%s8189_s3 + $0x120] sm:$0xff]  ;;  %v1324_v4 = vpop.f32.mrf.mxu0  ;;  %v1267_v7 = vadd.f32 %v6811_v17, %v1238_v50  ;;  %v5972_v17 = vld [vmem:[%s8189_s3 + $0x118] sm:$0xff]  ;;  %v5987_v50 = vld [vmem:[%s8189_s3 + $0x190] sm:$0xff] }
 0x114   : > { %2246 = vmatpush.bf16.msrb.mxu0 %v5973_v43 }
 0x115   : > { %v1402_v9 = vadd.f32 %v1401_v47, %v1373_v36  ;;  %v1293_v1 = vadd.f32 %v6799_v45, %v1264_v46 }
 0x117   : > { %v6973_v10 = vmax.f32 %v1402_v9, 0.0  ;;  %v1322_v45 = vadd.f32 %v1321_v29, %v1293_v1  ;;  %v5970_v1 = vld [vmem:[%s8189_s3 + $0x108] sm:$0xff] }
 0x118   : > { %v1345_v14 = vpop.f32.mrf.mxu1  ;;  %2247 = vmatpush.bf16.msrb.mxu0 %v5972_v17 }
 0x119   : > { %1430 = vst [vmem:[#allocation2 + $0x11] sm:$0xff] %v6973_v10  ;;  %v1346_v19 = vadd.f32 %v1345_v14, %v1317_v38  ;;  %v1512_v39 = vpack.c.bf16 %v6973_v10, %v1446_v12  ;;  %v5980_v14 = vld [vmem:[%s8189_s3 + $0x158] sm:$0xff]  ;;  %v1382_v51 = vpop.f32.mrf.mxu2  ;;  %v1411_v13 = vpop.f32.mrf.mxu3 }
 0x11b   : > { %v1375_v25 = vadd.f32 %v1374_v62, %v1346_v19  ;;  %2164 = vmatmul.bf16.vlgmr.msrb.gmra.mxu1 %v1512_v39  ;;  %v5982_v62 = vld [vmem:[%s8189_s3 + $0x168] sm:$0xff]  ;;  %v1240_v19 = vadd.f32 %v6900_v15, %v1211_v11  ;;  %v5979_v15 = vld [vmem:[%s8189_s3 + $0x150] sm:$0xff] }
 0x11c   : > { %2274 = vmatpush.bf16.msra.mxu1 %v5982_v62 }
 0x11d   : > { %v1404_v34 = vadd.f32 %v1403_v3, %v1375_v25  ;;  %v1269_v25 = vadd.f32 %v6831_v55, %v1240_v19 }
 0x11f   : > { %v6989_v47 = vmax.f32 %v1404_v34, 0.0  ;;  %v1214_v34 = vadd.f32 %v6923_v23, %v6774_v37  ;;  %v5971_v37 = vld [vmem:[%s8189_s3 + $0x110] sm:$0xff] }
 0x120   : > { %v1348_v58 = vpop.f32.mrf.mxu1  ;;  %v1439_v27 = vld [vmem:[#allocation2 + $0x10] sm:$0xff]  ;;  %2275 = vmatpush.bf16.msra.mxu1 %v5981_v6  ;;  %2248 = vmatpush.bf16.msrb.mxu0 %v5971_v37  ;;  %v1216_v6 = vadd.f32 %v6923_v23, %v6783_v21  ;;  %v5986_v21 = vld [vmem:[%s8189_s3 + $0x188] sm:$0xff]  ;;  %v5996_v23 = vld [vmem:[%s8189_s3 + $0x1d8] sm:$0xff] }
 0x121   : > { %v6993_v49 = vld [vmem:[#allocation2 + $0x12] sm:$0xff]  ;;  %1431 = vst [vmem:[#allocation2 + $0x21] sm:$0xff] %v6989_v47  ;;  %v1349_v52 = vadd.f32 %v1348_v58, %v1320_v44  ;;  %v1511_v53 = vpack.c.bf16 %v1439_v27, %v6296_v32  ;;  %v1515_v56 = vpack.c.bf16 %v6989_v47, %v6973_v10  ;;  %v1243_v57 = vadd.f32 %v6939_v0, %v1214_v34  ;;  %v1384_v0 = vpop.f32.mrf.mxu2  ;;  %v6002_v10 = vld [vmem:[%s8189_s3 + $0x208] sm:$0xff] }
 0x122   : > { %v1513_v42 = vpack.c.bf16 %v6993_v49, %v1454_v35  ;;  %v1326_v35 = vpop.f32.mrf.mxu0  ;;  %v1245_v17 = vadd.f32 %v6955_v54, %v1216_v6 }
 0x123   : > { %v1378_v63 = vadd.f32 %v1377_v16, %v1349_v52  ;;  %2135 = vmatmul.bf16.vlgmr.msra.gmra.mxu0 %v1511_v53  ;;  %v1296_v16 = vadd.f32 %v6813_v48, %v1267_v7  ;;  %v5999_v48 = vld [vmem:[%s8189_s3 + $0x1f0] sm:$0xff]  ;;  %v5988_v52 = vld [vmem:[%s8189_s3 + $0x198] sm:$0xff]  ;;  %v5998_v53 = vld [vmem:[%s8189_s3 + $0x1e8] sm:$0xff] }
 0x124   : > { %2193 = vmatmul.bf16.vlgmr.msra.gmra.mxu2 %v1513_v42  ;;  %2276 = vmatpush.bf16.msra.mxu1 %v5980_v14  ;;  %v5978_v42 = vld [vmem:[%s8189_s3 + $0x148] sm:$0xff]  ;;  %v5985_v14 = vld [vmem:[%s8189_s3 + $0x180] sm:$0xff]  ;;  %v1274_v19 = vadd.f32 %v6907_v18, %v1245_v17 }
 0x125   : > { %v1407_v3 = vadd.f32 %v1406_v20, %v1378_v63  ;;  %v1325_v24 = vadd.f32 %v1324_v4, %v1296_v16  ;;  %2331 = vmatpush.bf16.msrb.mxu3 %v5999_v48  ;;  %2305 = vmatpush.bf16.msrb.mxu2 %v5988_v52  ;;  %v1272_v4 = vadd.f32 %v6868_v59, %v1243_v57  ;;  %v6005_v17 = vld [vmem:[%s8189_s3 + $0x220] sm:$0xff] }
 0x126   : > { %2249 = vmatpush.bf16.msrb.mxu0 %v5970_v1 }
 0x127   : > { %v7018_v31 = vmax.f32 %v1407_v3, 0.0 }
 0x128   : > { %v1350_v36 = vpop.f32.mrf.mxu1  ;;  %v1463_v9 = vld [vmem:[#allocation2 + $0x20] sm:$0xff]  ;;  %2277 = vmatpush.bf16.msra.mxu1 %v5979_v15 }
 0x129   : > { %1432 = vst [vmem:[#allocation2 + $0x31] sm:$0xff] %v7018_v31  ;;  %v1351_v12 = vadd.f32 %v1350_v36, %v1322_v45  ;;  %v1514_v61 = vpack.c.bf16 %v1463_v9, %v1439_v27  ;;  %v7025_v38 = vpack.c.bf16 %v7018_v31, %v6989_v47  ;;  %v7056_v46 = vld [vmem:[#allocation2 + $0x22] sm:$0xff]  ;;  %2332 = vmatpush.bf16.msrb.mxu3 %v5998_v53  ;;  %v1413_v45 = vpop.f32.mrf.mxu3 }
 0x12a   : > { %2306 = vmatpush.bf16.msrb.mxu2 %v5987_v50  ;;  %v1329_v59 = vpop.f32.mrf.mxu0  ;;  %2250 = vmatpush.bf16.msrb.mxu0 %v5969_v28 }
 0x12b   : > { %v1380_v39 = vadd.f32 %v1379_v30, %v1351_v12  ;;  %2222 = vmatmul.bf16.vlgmr.msra.gmra.mxu3 %v1514_v61  ;;  %2169 = vmatmul.bf16.gmra.mxu1 %v7025_v38  ;;  %v1298_v30 = vadd.f32 %v6841_v60, %v1269_v25  ;;  %v5997_v60 = vld [vmem:[%s8189_s3 + $0x1e0] sm:$0xff]  ;;  %v1301_v61 = vadd.f32 %v6872_v8, %v1272_v4  ;;  %v5995_v8 = vld [vmem:[%s8189_s3 + $0x1d0] sm:$0xff] }
 0x12c   : > { %2278 = vmatpush.bf16.msra.mxu1 %v5978_v42 }
 0x12d   : > { %v1409_v20 = vadd.f32 %v1408_v2, %v1380_v39  ;;  %v5977_v2 = vld [vmem:[%s8189_s3 + $0x140] sm:$0xff]  ;;  %v1327_v3 = vadd.f32 %v1326_v35, %v1298_v30  ;;  %2333 = vmatpush.bf16.msrb.mxu3 %v5997_v60  ;;  %v1330_v54 = vadd.f32 %v1329_v59, %v1301_v61  ;;  %v1303_v35 = vadd.f32 %v6917_v22, %v1274_v19  ;;  %v6006_v59 = vld [vmem:[%s8189_s3 + $0x228] sm:$0xff] }
 0x12e   : > { %2307 = vmatpush.bf16.msrb.mxu2 %v5986_v21  ;;  %v5993_v22 = vld [vmem:[%s8189_s3 + $0x1c0] sm:$0xff]  ;;  %v1516_v61 = vpack.c.bf16 %v7056_v46, %v6993_v49 }
 0x12f   : > { %v7052_v29 = vmax.f32 %v1409_v20, 0.0 }
 0x130   : > { %v1353_v26 = vpop.f32.mrf.mxu1  ;;  %v1441_v44 = vld [vmem:[#allocation2 + $0x30] sm:$0xff]  ;;  %2279 = vmatpush.bf16.msra.mxu1 %v5977_v2 }
 0x131   : > { %v7058_v41 = vld [vmem:[#allocation2 + $0x32] sm:$0xff]  ;;  %1433 = vst [vmem:[#allocation2 + $0x41] sm:$0xff] %v7052_v29  ;;  %v1354_v58 = vadd.f32 %v1353_v26, %v1325_v24  ;;  %v7061_v27 = vpack.c.bf16 %v1441_v44, %v1463_v9  ;;  %v1524_v43 = vpack.c.bf16 %v7052_v29, %v7018_v31  ;;  %2334 = vmatpush.bf16.msrb.mxu3 %v5996_v23  ;;  %v1416_v18 = vpop.f32.mrf.mxu3 }
 0x132   : > { %v7065_v55 = vpack.c.bf16 %v7058_v41, %v7056_v46  ;;  %2308 = vmatpush.bf16.msrb.mxu2 %v5985_v14  ;;  %v1331_v37 = vpop.f32.mrf.mxu0  ;;  %v6003_v46 = vld [vmem:[%s8189_s3 + $0x210] sm:$0xff] }
 0x133   : > { %v1383_v62 = vadd.f32 %v1382_v51, %v1354_v58  ;;  %2140 = vmatmul.bf16.gmra.mxu0 %v7061_v27  ;;  %v1387_v51 = vpop.f32.mrf.mxu2  ;;  %v5994_v58 = vld [vmem:[%s8189_s3 + $0x1c8] sm:$0xff]  ;;  %v1332_v53 = vadd.f32 %v1331_v37, %v1303_v35 }
 0x134   : > { %2198 = vmatmul.bf16.gmra.mxu2 %v7065_v55 }
 0x135   : > { %v1412_v63 = vadd.f32 %v1411_v13, %v1383_v62  ;;  %2335 = vmatpush.bf16.msrb.mxu3 %v5995_v8 }
 0x137   : > { %v7098_v5 = vmax.f32 %v1412_v63, 0.0 }
 0x138   : > { %v1355_v7 = vpop.f32.mrf.mxu1  ;;  %v1465_v11 = vld [vmem:[#allocation2 + $0x40] sm:$0xff] }
 0x139   : > { %1434 = vst [vmem:[#allocation2 + $0x51] sm:$0xff] %v7098_v5  ;;  %v1356_v36 = vadd.f32 %v1355_v7, %v1327_v3  ;;  %v1523_v9 = vpack.c.bf16 %v1465_v11, %v1441_v44  ;;  %v7105_v12 = vpack.c.bf16 %v7098_v5, %v7052_v29  ;;  %v7128_v40 = vld [vmem:[#allocation2 + $0x42] sm:$0xff]  ;;  %v6008_v44 = vld [vmem:[%s8189_s3 + $0x238] sm:$0xff]  ;;  %2336 = vmatpush.bf16.msrb.mxu3 %v5994_v58  ;;  %v1418_v2 = vpop.f32.mrf.mxu3 }
 0x13a   : > { %2359 = vmatpush.bf16.msra.mxu0 %v6008_v44  ;;  %v1525_v49 = vpack.c.bf16 %v7128_v40, %v7058_v41  ;;  %v1502_v41 = vld [vmem:[#allocation2 + $0x91] sm:$0xff]  ;;  %v6014_v58 = vld [vmem:[%s8191_s5 + $0x28] sm:$0xff] }
 0x13b   : > { %v1385_v33 = vadd.f32 %v1384_v0, %v1356_v36  ;;  %2227 = vmatmul.bf16.gmra.mxu3 %v1523_v9  ;;  %2174 = vmatmul.bf16.gmra.mxu1 %v7105_v12  ;;  %v1389_v63 = vpop.f32.mrf.mxu2  ;;  %v6007_v0 = vld [vmem:[%s8189_s3 + $0x230] sm:$0xff] }
 0x13d   : > { %v1414_v16 = vadd.f32 %v1413_v45, %v1385_v33  ;;  %2337 = vmatpush.bf16.msrb.mxu3 %v5993_v22  ;;  %v6004_v33 = vld [vmem:[%s8189_s3 + $0x218] sm:$0xff] }
 0x13e   : > { %2360 = vmatpush.bf16.msra.mxu0 %v6007_v0  ;;  %v6022_v0 = vld [vmem:[%s8191_s5 + $0x68] sm:$0xff] }
 0x13f   : > { %v7126_v39 = vmax.f32 %v1414_v16, 0.0 }
 0x140   : > { %v1358_v20 = vpop.f32.mrf.mxu1  ;;  %v1443_v13 = vld [vmem:[#allocation2 + $0x50] sm:$0xff] }
 0x141   : > { %v7130_v48 = vld [vmem:[#allocation2 + $0x52] sm:$0xff]  ;;  %1435 = vst [vmem:[#allocation2 + $0x61] sm:$0xff] %v7126_v39  ;;  %v1359_v15 = vadd.f32 %v1358_v20, %v1330_v54  ;;  %v1529_v24 = vpack.c.bf16 %v1443_v13, %v1465_v11  ;;  %v1533_v34 = vpack.c.bf16 %v7126_v39, %v7098_v5 }
 0x142   : > { %v7135_v25 = vpack.c.bf16 %v7130_v48, %v7128_v40  ;;  %2361 = vmatpush.bf16.msra.mxu0 %v6006_v59  ;;  %v1510_v20 = vld [vmem:[#allocation2 + $0x92] sm:$0xff] }
 0x143   : > { %v1388_v26 = vadd.f32 %v1387_v51, %v1359_v15  ;;  %2145 = vmatmul.bf16.gmra.mxu0 %v1529_v24  ;;  %v6016_v40 = vld [vmem:[%s8191_s5 + $0x38] sm:$0xff] }
 0x144   : > { %2203 = vmatmul.bf16.gmra.mxu2 %v7135_v25  ;;  %3088 = vmatpush.bf16.msrb.mxu1 %v6016_v40  ;;  %v6009_v40 = vld [vmem:[%s8191_s5] sm:$0xff] }
 0x145   : > { %v1417_v52 = vadd.f32 %v1416_v18, %v1388_v26  ;;  %v6015_v18 = vld [vmem:[%s8191_s5 + $0x30] sm:$0xff] }
 0x146   : > { %2362 = vmatpush.bf16.msra.mxu0 %v6005_v17  ;;  %v6039_v17 = vld [vmem:[%s8191_s5 + $0xf0] sm:$0xff] }
 0x147   : > { %v1427_v42 = vmax.f32 %v1417_v52, 0.0 }
 0x148   : > { %v1360_v30 = vpop.f32.mrf.mxu1  ;;  %v1467_v57 = vld [vmem:[#allocation2 + $0x60] sm:$0xff]  ;;  %3089 = vmatpush.bf16.msrb.mxu1 %v6015_v18  ;;  %v6036_v18 = vld [vmem:[%s8191_s5 + $0xd8] sm:$0xff] }
 0x149   : > { %1436 = vst [vmem:[#allocation2 + $0x71] sm:$0xff] %v1427_v42  ;;  %v1361_v62 = vadd.f32 %v1360_v30, %v1332_v53  ;;  %v1532_v1 = vpack.c.bf16 %v1467_v57, %v1443_v13  ;;  %v1539_v50 = vpack.c.bf16 %v1427_v42, %v7126_v39  ;;  %v1460_v45 = vld [vmem:[#allocation2 + $0x62] sm:$0xff]  ;;  %v6024_v30 = vld [vmem:[%s8191_s5 + $0x78] sm:$0xff] }
 0x14a   : > { %2363 = vmatpush.bf16.msra.mxu0 %v6004_v33  ;;  %v1534_v47 = vpack.c.bf16 %v1460_v45, %v7130_v48  ;;  %3117 = vmatpush.bf16.msra.mxu2 %v6024_v30  ;;  %v6019_v33 = vld [vmem:[%s8191_s5 + $0x50] sm:$0xff] }
 0x14b   : > { %v1390_v60 = vadd.f32 %v1389_v63, %v1361_v62  ;;  %2232 = vmatmul.bf16.gmra.mxu3 %v1532_v1  ;;  %2179 = vmatmul.bf16.gmra.mxu1 %v1539_v50  ;;  %v6023_v62 = vld [vmem:[%s8191_s5 + $0x70] sm:$0xff]  ;;  %v6012_v63 = vld [vmem:[%s8191_s5 + $0x18] sm:$0xff] }
 0x14c   : > { %3090 = vmatpush.bf16.msrb.mxu1 %v6014_v58 }
 0x14d   : > { %v1419_v3 = vadd.f32 %v1418_v2, %v1390_v60  ;;  %v6032_v60 = vld [vmem:[%s8191_s5 + $0xb8] sm:$0xff] }
 0x14e   : > { %2364 = vmatpush.bf16.msra.mxu0 %v6003_v46  ;;  %3118 = vmatpush.bf16.msra.mxu2 %v6023_v62  ;;  %v6028_v46 = vld [vmem:[%s8191_s5 + $0x98] sm:$0xff]  ;;  %v6025_v62 = vld [vmem:[%s8191_s5 + $0x80] sm:$0xff] }
 0x14f   : > { %v1428_v4 = vmax.f32 %v1419_v3, 0.0  ;;  %3146 = vmatpush.bf16.msra.mxu3 %v6032_v60 }
 0x150   : > { %v1445_v6 = vld [vmem:[#allocation2 + $0x70] sm:$0xff] }
 0x151   : > { %v1461_v7 = vld [vmem:[#allocation2 + $0x72] sm:$0xff]  ;;  %1437 = vst [vmem:[#allocation2 + $0x81] sm:$0xff] %v1428_v4  ;;  %v1538_v11 = vpack.c.bf16 %v1445_v6, %v1467_v57  ;;  %v1542_v9 = vpack.c.bf16 %v1428_v4, %v1427_v42  ;;  %v6013_v42 = vld [vmem:[%s8191_s5 + $0x20] sm:$0xff] }
 0x152   : > { %v1540_v36 = vpack.c.bf16 %v1461_v7, %v1460_v45  ;;  %2365 = vmatpush.bf16.msra.mxu0 %v6002_v10  ;;  %3091 = vmatpush.bf16.msrb.mxu1 %v6013_v42  ;;  %v6038_v10 = vld [vmem:[%s8191_s5 + $0xe8] sm:$0xff]  ;;  %v7354_v42 = vld [vmem:[%s8190_s4] ss:$0 sm:$0xff] }
 0x153   : > { %2150 = vmatmul.bf16.gmra.mxu0 %v1538_v11  ;;  %3119 = vmatpush.bf16.msra.mxu2 %v6022_v0 }
 0x154   : > { %2208 = vmatmul.bf16.gmra.mxu2 %v1540_v36 }
 0x156   : > { %3092 = vmatpush.bf16.msrb.mxu1 %v6012_v63  ;;  %v6035_v63 = vld [vmem:[%s8191_s5 + $0xd0] sm:$0xff] }
 0x158   : > { %v1469_v21 = vld [vmem:[#allocation2 + $0x80] sm:$0xff] }
 0x159   : > { %v1541_v23 = vpack.c.bf16 %v1469_v21, %v1445_v6  ;;  %v1485_v31 = vld [vmem:[#allocation2 + $0x82] sm:$0xff]  ;;  %v1544_v29 = vpack.c.bf16 0.0, %v1469_v21  ;;  %v6020_v21 = vld [vmem:[%s8191_s5 + $0x58] sm:$0xff] }
 0x15a   : > { %v6021_v6 = vld [vmem:[%s8191_s5 + $0x60] sm:$0xff] }
 0x15b   : > { %2237 = vmatmul.bf16.gmra.mxu3 %v1541_v23  ;;  %2280 = vmatmul.bf16.vlgmr.msra.gmra.mxu1 %v1516_v61  ;;  %v6029_v61 = vld [vmem:[%s8191_s5 + $0xa0] sm:$0xff] }
 0x15c   : > { %3120 = vmatpush.bf16.msra.mxu2 %v6021_v6  ;;  %v6048_v6 = vld [vmem:[%s8191_s5 + $0x138] sm:$0xff] }
 0x160   : > { %3121 = vmatpush.bf16.msra.mxu2 %v6020_v21 }
 0x163   : > { %2251 = vmatmul.bf16.vlgmr.msrb.gmra.mxu0 %v1515_v56  ;;  %v6001_v56 = vld [vmem:[%s8189_s3 + $0x200] sm:$0xff] }
 0x164   : > { %2309 = vmatmul.bf16.vlgmr.msrb.gmra.mxu2 %v7061_v27  ;;  %2366 = vmatpush.bf16.msra.mxu0 %v6001_v56  ;;  %v1545_v27 = vpack.c.bf16 %v1502_v41, %v1428_v4  ;;  %v6031_v4 = vld [vmem:[%s8191_s5 + $0xb0] sm:$0xff]  ;;  %v6018_v56 = vld [vmem:[%s8191_s5 + $0x48] sm:$0xff]  ;;  %v6037_v41 = vld [vmem:[%s8191_s5 + $0xe0] sm:$0xff] }
 0x165   : > { %3147 = vmatpush.bf16.msra.mxu3 %v6031_v4  ;;  %3122 = vmatpush.bf16.msra.mxu2 %v6019_v33 }
 0x169   : > { %3123 = vmatpush.bf16.msra.mxu2 %v6018_v56 }
 0x16b   : > { %2338 = vmatmul.bf16.vlgmr.msrb.gmra.mxu3 %v7025_v38  ;;  %2285 = vmatmul.bf16.gmra.mxu1 %v1525_v49  ;;  %v1543_v38 = vpack.c.bf16 %v1485_v31, %v1461_v7  ;;  %v6011_v7 = vld [vmem:[%s8191_s5 + $0x10] sm:$0xff]  ;;  %v6010_v49 = vld [vmem:[%s8191_s5 + $0x8] sm:$0xff] }
 0x16c   : > { %3093 = vmatpush.bf16.msrb.mxu1 %v6011_v7  ;;  %v6034_v7 = vld [vmem:[%s8191_s5 + $0xc8] sm:$0xff] }
 0x170   : > { %3094 = vmatpush.bf16.msrb.mxu1 %v6010_v49 }
 0x173   : > { %2256 = vmatmul.bf16.gmra.mxu0 %v1524_v43 }
 0x174   : > { %2314 = vmatmul.bf16.gmra.mxu2 %v1529_v24  ;;  %v1546_v24 = vpack.c.bf16 %v1510_v20, %v1485_v31  ;;  %3095 = vmatpush.bf16.msrb.mxu1 %v6009_v40 }
 0x178   : > { %3204 = vmatpush.bf16.msra.mxu1 %v6048_v6 }
 0x17b   : > { %2343 = vmatmul.bf16.gmra.mxu3 %v7105_v12  ;;  %2290 = vmatmul.bf16.gmra.mxu1 %v1534_v47 }
 0x183   : > { %2261 = vmatmul.bf16.gmra.mxu0 %v1533_v34 }
 0x184   : > { %2319 = vmatmul.bf16.gmra.mxu2 %v1538_v11  ;;  %v6030_v11 = vld [vmem:[%s8191_s5 + $0xa8] sm:$0xff] }
 0x185   : > { %3148 = vmatpush.bf16.msra.mxu3 %v6030_v11 }
 0x189   : > { %3149 = vmatpush.bf16.msra.mxu3 %v6029_v61 }
 0x18b   : > { %2348 = vmatmul.bf16.gmra.mxu3 %v1539_v50  ;;  %2295 = vmatmul.bf16.gmra.mxu1 %v1543_v38 }
 0x18d   : > { %3150 = vmatpush.bf16.msra.mxu3 %v6028_v46 }
 0x193   : > { %2266 = vmatmul.bf16.gmra.mxu0 %v1542_v9 }
 0x194   : > { %2324 = vmatmul.bf16.gmra.mxu2 %v1544_v29  ;;  %v6027_v29 = vld [vmem:[%s8191_s5 + $0x90] sm:$0xff] }
 0x195   : > { %3151 = vmatpush.bf16.msra.mxu3 %v6027_v29 }
 0x198   : > { %v7199_v14 = vpop.f32.mrf.mxu1 }
 0x19b   : > { %2353 = vmatmul.bf16.gmra.mxu3 %v1545_v27  ;;  %v6017_v27 = vld [vmem:[%s8191_s5 + $0x40] sm:$0xff] }
 0x19c   : > { %3124 = vmatpush.bf16.msra.mxu2 %v6017_v27 }
 0x1a0   : > { %v7189_v43 = vpop.f32.mrf.mxu0  ;;  %v7207_v19 = vpop.f32.mrf.mxu1 }
 0x1a1   : > { %v2137_v0 = vadd.f32 %v7354_v42, %v7189_v43  ;;  %v6033_v43 = vld [vmem:[%s8191_s5 + $0xc0] sm:$0xff] }
 0x1a3   : > { %2367 = vmatmul.bf16.vlgmr.msra.gmra.mxu0 %v7065_v55 }
 0x1a7   : > { %v7201_v16 = vpop.f32.mrf.mxu2 }
 0x1a8   : > { %v7192_v12 = vpop.f32.mrf.mxu0  ;;  %v7215_v13 = vpop.f32.mrf.mxu1 }
 0x1a9   : > { %v2139_v61 = vadd.f32 %v7354_v42, %v7192_v12 }
 0x1ab   : > { %v2168_v56 = vadd.f32 %v7207_v19, %v2139_v61 }
 0x1ae   : > { %v7203_v8 = vpop.f32.mrf.mxu3 }
 0x1af   : > { %v7209_v55 = vpop.f32.mrf.mxu2 }
 0x1b0   : > { %v7194_v28 = vpop.f32.mrf.mxu0  ;;  %v7231_v35 = vpop.f32.mrf.mxu1  ;;  %v2197_v29 = vadd.f32 %v7209_v55, %v2168_v56 }
 0x1b3   : > { %2372 = vmatmul.bf16.gmra.mxu0 %v7135_v25 }
 0x1b6   : > { %v7211_v39 = vpop.f32.mrf.mxu3 }
 0x1b7   : > { %v7220_v48 = vpop.f32.mrf.mxu2 }
 0x1b8   : > { %v7197_v5 = vpop.f32.mrf.mxu0  ;;  %v7242_v52 = vpop.f32.mrf.mxu1 }
 0x1be   : > { %v7224_v25 = vpop.f32.mrf.mxu3 }
 0x1bf   : > { %v7233_v26 = vpop.f32.mrf.mxu2 }
 0x1c0   : > { %v7205_v54 = vpop.f32.mrf.mxu0  ;;  %v7259_v1 = vpop.f32.mrf.mxu1 }
 0x1c3   : > { %2377 = vmatmul.bf16.gmra.mxu0 %v1540_v36  ;;  %v6040_v36 = vld [vmem:[%s8191_s5 + $0xf8] sm:$0xff] }
 0x1c4   : > { %3175 = vmatpush.bf16.msrb.mxu0 %v6040_v36  ;;  %v2166_v36 = vadd.f32 %v7199_v14, %v2137_v0  ;;  %v6047_v14 = vld [vmem:[%s8191_s5 + $0x130] sm:$0xff]  ;;  %v2144_v0 = vadd.f32 %v7354_v42, %v7197_v5 }
 0x1c5   : > { %3205 = vmatpush.bf16.msra.mxu1 %v6047_v14  ;;  %v6055_v14 = vld [vmem:[%s8191_s5 + $0x170] sm:$0xff] }
 0x1c6   : > { %v7235_v44 = vpop.f32.mrf.mxu3  ;;  %v2195_v21 = vadd.f32 %v7201_v16, %v2166_v36  ;;  %v2173_v5 = vadd.f32 %v7231_v35, %v2144_v0  ;;  %v2147_v35 = vadd.f32 %v7354_v42, %v7205_v54 }
 0x1c7   : > { %v7244_v22 = vpop.f32.mrf.mxu2 }
 0x1c8   : > { %v7213_v51 = vpop.f32.mrf.mxu0  ;;  %v7282_v45 = vpop.f32.mrf.mxu1  ;;  %3176 = vmatpush.bf16.msrb.mxu0 %v6039_v17  ;;  %v2224_v17 = vadd.f32 %v7203_v8, %v2195_v21  ;;  %v2142_v8 = vadd.f32 %v7354_v42, %v7194_v28  ;;  %v6056_v21 = vld [vmem:[%s8191_s5 + $0x178] sm:$0xff] }
 0x1c9   : > { %3233 = vmatpush.bf16.msrb.mxu2 %v6056_v21  ;;  %v6072_v21 = vld [vmem:[%s8191_s5 + $0x1f8] sm:$0xff] }
 0x1ca   : > { %v2171_v19 = vadd.f32 %v7215_v13, %v2142_v8 }
 0x1cc   : > { %3177 = vmatpush.bf16.msrb.mxu0 %v6038_v10  ;;  %v2200_v28 = vadd.f32 %v7220_v48, %v2171_v19  ;;  %v6045_v48 = vld [vmem:[%s8191_s5 + $0x120] sm:$0xff] }
 0x1cd   : > { %3234 = vmatpush.bf16.msrb.mxu2 %v6055_v14  ;;  %v6051_v14 = vld [vmem:[%s8191_s5 + $0x150] sm:$0xff] }
 0x1ce   : > { %v7246_v53 = vpop.f32.mrf.mxu3 }
 0x1cf   : > { %v7261_v50 = vpop.f32.mrf.mxu2 }
 0x1d0   : > { %v7222_v15 = vpop.f32.mrf.mxu0  ;;  %v7325_v31 = vpop.f32.mrf.mxu1  ;;  %3178 = vmatpush.bf16.msrb.mxu0 %v6037_v41  ;;  %v2226_v41 = vadd.f32 %v7211_v39, %v2197_v29  ;;  %v2412_v39 = vld [vmem:[#allocation2 + $0x1] sm:$0xff] }
 0x1d3   : > { %2382 = vmatmul.bf16.gmra.mxu0 %v1546_v24  ;;  %v6026_v24 = vld [vmem:[%s8191_s5 + $0x88] sm:$0xff] }
 0x1d4   : > { %3152 = vmatpush.bf16.msra.mxu3 %v6026_v24  ;;  %3179 = vmatpush.bf16.msrb.mxu0 %v6036_v18  ;;  %v6046_v18 = vld [vmem:[%s8191_s5 + $0x128] sm:$0xff] }
 0x1d5   : > { %3206 = vmatpush.bf16.msra.mxu1 %v6046_v18 }
 0x1d6   : > { %v7272_v2 = vpop.f32.mrf.mxu3 }
 0x1d7   : > { %v7293_v9 = vpop.f32.mrf.mxu2 }
 0x1d8   : > { %v7229_v34 = vpop.f32.mrf.mxu0  ;;  %v2281_v30 = vpop.f32.mrf.mxu1  ;;  %3153 = vmatpush.bf16.msra.mxu3 %v6025_v62  ;;  %3180 = vmatpush.bf16.msrb.mxu0 %v6035_v63 }
 0x1d9   : > { %3207 = vmatpush.bf16.msra.mxu1 %v6045_v48 }
 0x1dc   : > { %3181 = vmatpush.bf16.msrb.mxu0 %v6034_v7 }
 0x1de   : > { %v7300_v23 = vpop.f32.mrf.mxu3 }
 0x1df   : > { %v7327_v38 = vpop.f32.mrf.mxu2 }
 0x1e0   : > { %v7240_v37 = vpop.f32.mrf.mxu0  ;;  %v2283_v33 = vpop.f32.mrf.mxu1  ;;  %3182 = vmatpush.bf16.msrb.mxu0 %v6033_v43 }
 0x1e1   : > { %v2253_v46 = vadd.f32 %v7240_v37, %v2224_v17 }
 0x1e3   : > { %v2282_v12 = vadd.f32 %v2281_v30, %v2253_v46 }
 0x1e4   : > { %3291 = vmatpush.bf16.msra.mxu0 %v6072_v21 }
 0x1e6   : > { %v7338_v20 = vpop.f32.mrf.mxu3 }
 0x1e7   : > { %v2310_v60 = vpop.f32.mrf.mxu2 }
 0x1e8   : > { %v7254_v57 = vpop.f32.mrf.mxu0  ;;  %v2311_v27 = vadd.f32 %v2310_v60, %v2282_v12  ;;  %v2286_v24 = vpop.f32.mrf.mxu1 }
 0x1e9   : > { %v2255_v37 = vadd.f32 %v7254_v57, %v2226_v41 }
 0x1eb   : > { %v2284_v60 = vadd.f32 %v2283_v33, %v2255_v37 }
 0x1ee   : > { %v2339_v4 = vpop.f32.mrf.mxu3 }
 0x1ef   : > { %v2312_v49 = vpop.f32.mrf.mxu2  ;;  %v2340_v40 = vadd.f32 %v2339_v4, %v2311_v27  ;;  %v2229_v4 = vadd.f32 %v7224_v25, %v2200_v28 }
 0x1f0   : > { %v7274_v3 = vpop.f32.mrf.mxu0  ;;  %v2313_v6 = vadd.f32 %v2312_v49, %v2284_v60  ;;  %v2288_v43 = vpop.f32.mrf.mxu1  ;;  %v2420_v49 = vld [vmem:[#allocation2 + $0x2] sm:$0xff] }
 0x1f1   : > { %v2258_v7 = vadd.f32 %v7274_v3, %v2229_v4  ;;  %v2202_v3 = vadd.f32 %v7233_v26, %v2173_v5 }
 0x1f3   : > { %v2287_v17 = vadd.f32 %v2286_v24, %v2258_v7  ;;  %v2176_v24 = vadd.f32 %v7242_v52, %v2147_v35  ;;  %v6053_v52 = vld [vmem:[%s8191_s5 + $0x160] sm:$0xff] }
 0x1f6   : > { %v2341_v10 = vpop.f32.mrf.mxu3 }
 0x1f7   : > { %v2315_v62 = vpop.f32.mrf.mxu2  ;;  %v2342_v36 = vadd.f32 %v2341_v10, %v2313_v6  ;;  %v2231_v10 = vadd.f32 %v7235_v44, %v2202_v3  ;;  %v6044_v44 = vld [vmem:[%s8191_s5 + $0x118] sm:$0xff] }
 0x1f8   : > { %v7295_v59 = vpop.f32.mrf.mxu0  ;;  %v2316_v56 = vadd.f32 %v2315_v62, %v2287_v17  ;;  %3208 = vmatpush.bf16.msra.mxu1 %v6044_v44 }
 0x1f9   : > { %v2260_v37 = vadd.f32 %v7295_v59, %v2231_v10  ;;  %v2205_v59 = vadd.f32 %v7244_v22, %v2176_v24  ;;  %v6070_v24 = vld [vmem:[%s8191_s5 + $0x1e8] sm:$0xff] }
 0x1fb   : > { %v2289_v62 = vadd.f32 %v2288_v43, %v2260_v37  ;;  %v2234_v60 = vadd.f32 %v7246_v53, %v2205_v59  ;;  %v6062_v53 = vld [vmem:[%s8191_s5 + $0x1a8] sm:$0xff] }
 0x1fe   : > { %v2344_v30 = vpop.f32.mrf.mxu3 }
 0x1ff   : > { %v2317_v33 = vpop.f32.mrf.mxu2  ;;  %v2345_v54 = vadd.f32 %v2344_v30, %v2316_v56  ;;  %v6063_v30 = vld [vmem:[%s8191_s5 + $0x1b0] sm:$0xff] }
 0x200   : > { %v7320_v47 = vpop.f32.mrf.mxu0  ;;  %v2318_v4 = vadd.f32 %v2317_v33, %v2289_v62  ;;  %v6050_v62 = vld [vmem:[%s8191_s5 + $0x148] sm:$0xff] }
 0x201   : > { %v2263_v7 = vadd.f32 %v7320_v47, %v2234_v60 }
 0x206   : > { %v2346_v29 = vpop.f32.mrf.mxu3 }
 0x207   : > { %v2320_v22 = vpop.f32.mrf.mxu2  ;;  %v2347_v48 = vadd.f32 %v2346_v29, %v2318_v4 }
 0x208   : > { %v7349_v58 = vpop.f32.mrf.mxu0 }
 0x210   : > { %v7370_v11 = vpop.f32.mrf.mxu0 }
 0x218   : > { %v7384_v16 = vpop.f32.mrf.mxu0 }
 0x220   : > { %v2368_v63 = vpop.f32.mrf.mxu0 }
 0x221   : > { %v7396_v55 = vadd.f32 %v2368_v63, %v2340_v40  ;;  %v6064_v40 = vld [vmem:[%s8191_s5 + $0x1b8] sm:$0xff]  ;;  %v2291_v63 = vpop.f32.mrf.mxu1 }
 0x222   : > { %3262 = vmatpush.bf16.msrb.mxu3 %v6064_v40  ;;  %v2292_v17 = vadd.f32 %v2291_v63, %v2263_v7  ;;  %v6042_v40 = vld [vmem:[%s8191_s5 + $0x108] sm:$0xff] }
 0x223   : > { %v7400_v57 = vmax.f32 %v7396_v55, 0.0 }
 0x224   : > { %v2321_v10 = vadd.f32 %v2320_v22, %v2292_v17  ;;  %v6049_v22 = vld [vmem:[%s8191_s5 + $0x140] sm:$0xff] }
 0x225   : > { %2396 = vst [vmem:[#allocation2 + $0x11] sm:$0xff] %v7400_v57  ;;  %v2477_v13 = vpack.c.bf16 %v7400_v57, %v2412_v39  ;;  %v2149_v39 = vadd.f32 %v7354_v42, %v7213_v51  ;;  %v6043_v51 = vld [vmem:[%s8191_s5 + $0x110] sm:$0xff] }
 0x226   : > { %3263 = vmatpush.bf16.msrb.mxu3 %v6063_v30  ;;  %3209 = vmatpush.bf16.msra.mxu1 %v6043_v51  ;;  %v6059_v30 = vld [vmem:[%s8191_s5 + $0x190] sm:$0xff] }
 0x227   : > { %3125 = vmatmul.bf16.vlgmr.msra.gmra.mxu2 %v2477_v13  ;;  %v2178_v47 = vadd.f32 %v7259_v1, %v2149_v39  ;;  %v6061_v1 = vld [vmem:[%s8191_s5 + $0x1a0] sm:$0xff] }
 0x228   : > { %v2370_v25 = vpop.f32.mrf.mxu0 }
 0x229   : > { %v7415_v61 = vadd.f32 %v2370_v25, %v2342_v36  ;;  %v2349_v36 = vpop.f32.mrf.mxu3  ;;  %v6052_v25 = vld [vmem:[%s8191_s5 + $0x158] sm:$0xff]  ;;  %v2207_v3 = vadd.f32 %v7261_v50, %v2178_v47  ;;  %v2152_v50 = vadd.f32 %v7354_v42, %v7222_v15 }
 0x22a   : > { %3264 = vmatpush.bf16.msrb.mxu3 %v6062_v53  ;;  %v2350_v44 = vadd.f32 %v2349_v36, %v2321_v10  ;;  %3210 = vmatpush.bf16.msra.mxu1 %v6042_v40  ;;  %v6066_v40 = vld [vmem:[%s8191_s5 + $0x1c8] sm:$0xff] }
 0x22b   : > { %v7419_v46 = vmax.f32 %v7415_v61, 0.0  ;;  %v2236_v35 = vadd.f32 %v7272_v2, %v2207_v3  ;;  %v2322_v2 = vpop.f32.mrf.mxu2 }
 0x22c   : > { %v2405_v12 = vld [vmem:[#allocation2 + $0x10] sm:$0xff] }
 0x22d   : > { %v7427_v8 = vld [vmem:[#allocation2 + $0x12] sm:$0xff]  ;;  %2397 = vst [vmem:[#allocation2 + $0x21] sm:$0xff] %v7419_v46  ;;  %v2476_v26 = vpack.c.bf16 %v2405_v12, %v6296_v32  ;;  %v2480_v27 = vpack.c.bf16 %v7419_v46, %v7400_v57  ;;  %v6054_v32 = vld [vmem:[%s8191_s5 + $0x168] sm:$0xff] }
 0x22e   : > { %v2478_v41 = vpack.c.bf16 %v7427_v8, %v2420_v49  ;;  %3235 = vmatpush.bf16.msrb.mxu2 %v6054_v32  ;;  %v6071_v49 = vld [vmem:[%s8191_s5 + $0x1f0] sm:$0xff]  ;;  %3265 = vmatpush.bf16.msrb.mxu3 %v6061_v1  ;;  %v6060_v32 = vld [vmem:[%s8191_s5 + $0x198] sm:$0xff]  ;;  %v6074_v57 = vld [vmem:[%s8191_s5 + $0x208] sm:$0xff] }
 0x22f   : > { %3096 = vmatmul.bf16.vlgmr.msrb.gmra.mxu1 %v2476_v26  ;;  %v2293_v26 = vpop.f32.mrf.mxu1  ;;  %3292 = vmatpush.bf16.msra.mxu0 %v6071_v49  ;;  %v6067_v49 = vld [vmem:[%s8191_s5 + $0x1d0] sm:$0xff] }
 0x230   : > { %3154 = vmatmul.bf16.vlgmr.msra.gmra.mxu3 %v2478_v41  ;;  %v2373_v18 = vpop.f32.mrf.mxu0 }
 0x231   : > { %v7445_v19 = vadd.f32 %v2373_v18, %v2345_v54  ;;  %v2265_v54 = vadd.f32 %v7349_v58, %v2236_v35  ;;  %v2181_v18 = vadd.f32 %v7282_v45, %v2152_v50  ;;  %v2351_v58 = vpop.f32.mrf.mxu3  ;;  %v6069_v45 = vld [vmem:[%s8191_s5 + $0x1e0] sm:$0xff] }
 0x232   : > { %3236 = vmatpush.bf16.msrb.mxu2 %v6053_v52  ;;  %3266 = vmatpush.bf16.msrb.mxu3 %v6060_v32 }
 0x233   : > { %v7449_v28 = vmax.f32 %v7445_v19, 0.0  ;;  %v2210_v52 = vadd.f32 %v7293_v9, %v2181_v18  ;;  %3293 = vmatpush.bf16.msra.mxu0 %v6070_v24  ;;  %v2294_v39 = vadd.f32 %v2293_v26, %v2265_v54  ;;  %v2325_v21 = vpop.f32.mrf.mxu2 }
 0x234   : > { %v2429_v0 = vld [vmem:[#allocation2 + $0x20] sm:$0xff] }
 0x235   : > { %2398 = vst [vmem:[#allocation2 + $0x31] sm:$0xff] %v7449_v28  ;;  %v2479_v6 = vpack.c.bf16 %v2429_v0, %v2405_v12  ;;  %v7463_v13 = vpack.c.bf16 %v7449_v28, %v7419_v46  ;;  %v7498_v29 = vld [vmem:[#allocation2 + $0x22] sm:$0xff]  ;;  %v2239_v4 = vadd.f32 %v7300_v23, %v2210_v52 }
 0x236   : > { %3237 = vmatpush.bf16.msrb.mxu2 %v6052_v25  ;;  %3267 = vmatpush.bf16.msrb.mxu3 %v6059_v30  ;;  %v6058_v23 = vld [vmem:[%s8191_s5 + $0x188] sm:$0xff]  ;;  %v6057_v25 = vld [vmem:[%s8191_s5 + $0x180] sm:$0xff] }
 0x237   : > { %3183 = vmatmul.bf16.vlgmr.msrb.gmra.mxu0 %v2479_v6  ;;  %3130 = vmatmul.bf16.gmra.mxu2 %v7463_v13  ;;  %v2323_v6 = vadd.f32 %v2322_v2, %v2294_v39  ;;  %v2296_v51 = vpop.f32.mrf.mxu1 }
 0x238   : > { %v2375_v5 = vpop.f32.mrf.mxu0  ;;  %3294 = vmatpush.bf16.msra.mxu0 %v6069_v45 }
 0x239   : > { %v7480_v43 = vadd.f32 %v2375_v5, %v2347_v48  ;;  %v2268_v48 = vadd.f32 %v7370_v11, %v2239_v4  ;;  %v2352_v53 = vadd.f32 %v2351_v58, %v2323_v6  ;;  %v2354_v1 = vpop.f32.mrf.mxu3  ;;  %v6079_v4 = vld [vmem:[%s8191_s5 + $0x230] sm:$0xff] }
 0x23a   : > { %3238 = vmatpush.bf16.msrb.mxu2 %v6051_v14  ;;  %3268 = vmatpush.bf16.msrb.mxu3 %v6058_v23 }
 0x23b   : > { %v7484_v33 = vmax.f32 %v7480_v43, 0.0  ;;  %v2297_v17 = vadd.f32 %v2296_v51, %v2268_v48  ;;  %v2327_v58 = vpop.f32.mrf.mxu2 }
 0x23c   : > { %v2407_v56 = vld [vmem:[#allocation2 + $0x30] sm:$0xff] }
 0x23d   : > { %v7500_v12 = vld [vmem:[#allocation2 + $0x32] sm:$0xff]  ;;  %2399 = vst [vmem:[#allocation2 + $0x41] sm:$0xff] %v7484_v33  ;;  %v7503_v41 = vpack.c.bf16 %v2407_v56, %v2429_v0  ;;  %v2489_v15 = vpack.c.bf16 %v7484_v33, %v7449_v28  ;;  %v2154_v0 = vadd.f32 %v7354_v42, %v7229_v34  ;;  %v6041_v34 = vld [vmem:[%s8191_s5 + $0x100] sm:$0xff]  ;;  %v2326_v50 = vadd.f32 %v2325_v21, %v2297_v17 }
 0x23e   : > { %v7507_v37 = vpack.c.bf16 %v7500_v12, %v7498_v29  ;;  %3239 = vmatpush.bf16.msrb.mxu2 %v6050_v62  ;;  %v6068_v42 = vld [vmem:[%s8191_s5 + $0x1d8] sm:$0xff]  ;;  %3211 = vmatpush.bf16.msra.mxu1 %v6041_v34 }
 0x23f   : > { %3101 = vmatmul.bf16.gmra.mxu1 %v7503_v41  ;;  %v2183_v11 = vadd.f32 %v7325_v31, %v2154_v0  ;;  %3295 = vmatpush.bf16.msra.mxu0 %v6068_v42  ;;  %v2298_v18 = vpop.f32.mrf.mxu1  ;;  %v6076_v17 = vld [vmem:[%s8191_s5 + $0x218] sm:$0xff] }
 0x240   : > { %3159 = vmatmul.bf16.gmra.mxu3 %v7507_v37  ;;  %v2378_v59 = vpop.f32.mrf.mxu0 }
 0x241   : > { %v7527_v63 = vadd.f32 %v2378_v59, %v2350_v44  ;;  %v2212_v3 = vadd.f32 %v7327_v38, %v2183_v11  ;;  %3269 = vmatpush.bf16.msrb.mxu3 %v6057_v25  ;;  %v2355_v44 = vadd.f32 %v2354_v1, %v2326_v50  ;;  %v2356_v30 = vpop.f32.mrf.mxu3  ;;  %v6078_v11 = vld [vmem:[%s8191_s5 + $0x228] sm:$0xff]  ;;  %v2481_v25 = vpack.c.bf16 %v7498_v29, %v7427_v8  ;;  %v6075_v29 = vld [vmem:[%s8191_s5 + $0x210] sm:$0xff] }
 0x242   : > { %3240 = vmatpush.bf16.msrb.mxu2 %v6049_v22 }
 0x243   : > { %v7537_v60 = vmax.f32 %v7527_v63, 0.0  ;;  %v2241_v14 = vadd.f32 %v7338_v20, %v2212_v3  ;;  %3296 = vmatpush.bf16.msra.mxu0 %v6067_v49  ;;  %v6080_v20 = vld [vmem:[%s8191_s5 + $0x238] sm:$0xff]  ;;  %v6077_v3 = vld [vmem:[%s8191_s5 + $0x220] sm:$0xff] }
 0x244   : > { %v2431_v9 = vld [vmem:[#allocation2 + $0x40] sm:$0xff]  ;;  %3320 = vmatpush.bf16.msrb.mxu1 %v6080_v20 }
 0x245   : > { %2400 = vst [vmem:[#allocation2 + $0x51] sm:$0xff] %v7537_v60  ;;  %v2488_v7 = vpack.c.bf16 %v2431_v9, %v2407_v56  ;;  %v7548_v36 = vpack.c.bf16 %v7537_v60, %v7484_v33  ;;  %v2424_v10 = vld [vmem:[#allocation2 + $0x42] sm:$0xff]  ;;  %v2270_v54 = vadd.f32 %v7384_v16, %v2241_v14 }
 0x246   : > { %v6065_v16 = vld [vmem:[%s8191_s5 + $0x1c0] sm:$0xff]  ;;  %v2490_v8 = vpack.c.bf16 %v2424_v10, %v7500_v12 }
 0x247   : > { %3188 = vmatmul.bf16.gmra.mxu0 %v2488_v7  ;;  %3135 = vmatmul.bf16.gmra.mxu2 %v7548_v36  ;;  %v2299_v59 = vadd.f32 %v2298_v18, %v2270_v54  ;;  %v7641_v33 = vld [vmem:[#allocation2] sm:$0xff] }
 0x248   : > { %v2380_v47 = vpop.f32.mrf.mxu0  ;;  %3297 = vmatpush.bf16.msra.mxu0 %v6066_v40  ;;  %3321 = vmatpush.bf16.msrb.mxu1 %v6079_v4 }
 0x249   : > { %v7562_v5 = vadd.f32 %v2380_v47, %v2352_v53  ;;  %v2328_v45 = vadd.f32 %v2327_v58, %v2299_v59 }
 0x24b   : > { %v7572_v31 = vmax.f32 %v7562_v5, 0.0  ;;  %v2357_v0 = vadd.f32 %v2356_v30, %v2328_v45 }
 0x24c   : > { %v2409_v35 = vld [vmem:[#allocation2 + $0x50] sm:$0xff]  ;;  %3298 = vmatpush.bf16.msra.mxu0 %v6065_v16  ;;  %3322 = vmatpush.bf16.msrb.mxu1 %v6078_v11 }
 0x24d   : > { %v7575_v56 = vld [vmem:[#allocation2 + $0x52] sm:$0xff]  ;;  %2401 = vst [vmem:[#allocation2 + $0x61] sm:$0xff] %v7572_v31  ;;  %v2494_v38 = vpack.c.bf16 %v2409_v35, %v2431_v9  ;;  %v2498_v2 = vpack.c.bf16 %v7572_v31, %v7537_v60 }
 0x24e   : > { %v7579_v26 = vpack.c.bf16 %v7575_v56, %v2424_v10 }
 0x24f   : > { %3106 = vmatmul.bf16.gmra.mxu1 %v2494_v38 }
 0x250   : > { %3164 = vmatmul.bf16.gmra.mxu3 %v7579_v26  ;;  %v2383_v32 = vpop.f32.mrf.mxu0  ;;  %3323 = vmatpush.bf16.msrb.mxu1 %v6077_v3 }
 0x251   : > { %v7591_v24 = vadd.f32 %v2383_v32, %v2355_v44 }
 0x253   : > { %v2394_v62 = vmax.f32 %v7591_v24, 0.0 }
 0x254   : > { %v2433_v52 = vld [vmem:[#allocation2 + $0x60] sm:$0xff]  ;;  %3324 = vmatpush.bf16.msrb.mxu1 %v6076_v17 }
 0x255   : > { %2402 = vst [vmem:[#allocation2 + $0x71] sm:$0xff] %v2394_v62  ;;  %v2497_v39 = vpack.c.bf16 %v2433_v52, %v2409_v35  ;;  %v2504_v22 = vpack.c.bf16 %v2394_v62, %v7572_v31  ;;  %v2426_v51 = vld [vmem:[#allocation2 + $0x62] sm:$0xff] }
 0x256   : > { %v2499_v46 = vpack.c.bf16 %v2426_v51, %v7575_v56 }
 0x257   : > { %3193 = vmatmul.bf16.gmra.mxu0 %v2497_v39  ;;  %3140 = vmatmul.bf16.gmra.mxu2 %v2504_v22 }
 0x258   : > { %v2385_v9 = vpop.f32.mrf.mxu0  ;;  %3325 = vmatpush.bf16.msrb.mxu1 %v6075_v29 }
 0x259   : > { %v7601_v6 = vadd.f32 %v2385_v9, %v2357_v0 }
 0x25b   : > { %v2395_v7 = vmax.f32 %v7601_v6, 0.0 }
 0x25c   : > { %v2411_v48 = vld [vmem:[#allocation2 + $0x70] sm:$0xff]  ;;  %3326 = vmatpush.bf16.msrb.mxu1 %v6074_v57 }
 0x25d   : > { %v2427_v53 = vld [vmem:[#allocation2 + $0x72] sm:$0xff]  ;;  %2403 = vst [vmem:[#allocation2 + $0x81] sm:$0xff] %v2395_v7  ;;  %v2503_v34 = vpack.c.bf16 %v2411_v48, %v2433_v52  ;;  %v2507_v42 = vpack.c.bf16 %v2395_v7, %v2394_v62 }
 0x25e   : > { %v7604_v23 = vpack.c.bf16 %v2427_v53, %v2426_v51  ;;  %v6088_v51 = vld [vmem:[%s8192_s6 + $0x38] sm:$0xff] }
 0x25f   : > { %3111 = vmatmul.bf16.gmra.mxu1 %v2503_v34  ;;  %3425 = vmatpush.bf16.msra.mxu2 %v6088_v51 }
 0x260   : > { %3169 = vmatmul.bf16.gmra.mxu3 %v7604_v23 }
 0x264   : > { %v2435_v21 = vld [vmem:[#allocation2 + $0x80] sm:$0xff] }
 0x265   : > { %v2506_v47 = vpack.c.bf16 %v2435_v21, %v2411_v48  ;;  %v2451_v28 = vld [vmem:[#allocation2 + $0x82] sm:$0xff]  ;;  %v2509_v12 = vpack.c.bf16 %v7641_v33, %v2435_v21 }
 0x267   : > { %3198 = vmatmul.bf16.gmra.mxu0 %v2506_v47  ;;  %3241 = vmatmul.bf16.vlgmr.msrb.gmra.mxu2 %v2481_v25  ;;  %v6087_v47 = vld [vmem:[%s8192_s6 + $0x30] sm:$0xff] }
 0x268   : > { %3426 = vmatpush.bf16.msra.mxu2 %v6087_v47 }
 0x26f   : > { %3212 = vmatmul.bf16.vlgmr.msra.gmra.mxu1 %v2480_v27  ;;  %v6073_v27 = vld [vmem:[%s8191_s5 + $0x200] sm:$0xff] }
 0x270   : > { %3270 = vmatmul.bf16.vlgmr.msrb.gmra.mxu3 %v7503_v41  ;;  %3327 = vmatpush.bf16.msrb.mxu1 %v6073_v27  ;;  %v2467_v41 = vld [vmem:[#allocation2 + $0x91] sm:$0xff] }
 0x277   : > { %3299 = vmatmul.bf16.vlgmr.msra.gmra.mxu0 %v7463_v13  ;;  %3246 = vmatmul.bf16.gmra.mxu2 %v2490_v8  ;;  %v2508_v13 = vpack.c.bf16 %v2451_v28, %v2427_v53  ;;  %v6086_v8 = vld [vmem:[%s8192_s6 + $0x28] sm:$0xff] }
 0x278   : > { %3427 = vmatpush.bf16.msra.mxu2 %v6086_v8 }
 0x27f   : > { %3217 = vmatmul.bf16.gmra.mxu1 %v2489_v15  ;;  %v2510_v15 = vpack.c.bf16 %v2467_v41, %v2395_v7  ;;  %v2475_v7 = vld [vmem:[#allocation2 + $0x92] sm:$0xff] }
 0x280   : > { %3275 = vmatmul.bf16.gmra.mxu3 %v2494_v38  ;;  %v6083_v41 = vld [vmem:[%s8192_s6 + $0x10] sm:$0xff] }
 0x287   : > { %3304 = vmatmul.bf16.gmra.mxu0 %v7548_v36  ;;  %3251 = vmatmul.bf16.gmra.mxu2 %v2499_v46  ;;  %v6085_v46 = vld [vmem:[%s8192_s6 + $0x20] sm:$0xff] }
 0x288   : > { %3428 = vmatpush.bf16.msra.mxu2 %v6085_v46 }
 0x28f   : > { %3222 = vmatmul.bf16.gmra.mxu1 %v2498_v2 }
 0x290   : > { %3280 = vmatmul.bf16.gmra.mxu3 %v2503_v34 }
 0x297   : > { %3309 = vmatmul.bf16.gmra.mxu0 %v2504_v22  ;;  %3256 = vmatmul.bf16.gmra.mxu2 %v2508_v13 }
 0x29f   : > { %3227 = vmatmul.bf16.gmra.mxu1 %v2507_v42 }
 0x2a0   : > { %3285 = vmatmul.bf16.gmra.mxu3 %v2509_v12 }
 0x2a7   : > { %3314 = vmatmul.bf16.gmra.mxu0 %v2510_v15 }
 0x2aa   : > { %v3126_v36 = vpop.f32.mrf.mxu2 }
 0x2ac   : > { %v3097_v1 = vpop.f32.mrf.mxu1 }
 0x2ad   : > { %v3127_v49 = vadd.f32 %v3126_v36, %v3097_v1  ;;  %v6082_v1 = vld [vmem:[%s8192_s6 + $0x8] sm:$0xff] }
 0x2af   : > { %3328 = vmatmul.bf16.vlgmr.msrb.gmra.mxu1 %v7507_v37 }
 0x2b2   : > { %v7645_v31 = vpop.f32.mrf.mxu2 }
 0x2b3   : > { %v3155_v60 = vpop.f32.mrf.mxu3 }
 0x2b4   : > { %v3156_v14 = vadd.f32 %v3155_v60, %v3127_v49  ;;  %v7647_v50 = vpop.f32.mrf.mxu1  ;;  %v3184_v35 = vpop.f32.mrf.mxu0 }
 0x2b6   : > { %v3185_v10 = vadd.f32 %v3184_v35, %v3156_v14  ;;  %v6081_v35 = vld [vmem:[%s8192_s6] sm:$0xff] }
 0x2ba   : > { %v3131_v38 = vpop.f32.mrf.mxu2 }
 0x2bb   : > { %v7649_v56 = vpop.f32.mrf.mxu3 }
 0x2bc   : > { %v3102_v2 = vpop.f32.mrf.mxu1  ;;  %v7651_v54 = vpop.f32.mrf.mxu0 }
 0x2bd   : > { %v3132_v44 = vadd.f32 %v3131_v38, %v3102_v2 }
 0x2bf   : > { %3333 = vmatmul.bf16.gmra.mxu1 %v7579_v26 }
 0x2c2   : > { %v7654_v40 = vpop.f32.mrf.mxu2 }
 0x2c3   : > { %v3160_v20 = vpop.f32.mrf.mxu3 }
 0x2c4   : > { %v3161_v37 = vadd.f32 %v3160_v20, %v3132_v44  ;;  %v7656_v32 = vpop.f32.mrf.mxu1  ;;  %v3189_v18 = vpop.f32.mrf.mxu0 }
 0x2c5   : > { %v3134_v47 = vadd.f32 %v7654_v40, %v7656_v32 }
 0x2c6   : > { %v3190_v58 = vadd.f32 %v3189_v18, %v3161_v37 }
 0x2ca   : > { %v3136_v59 = vpop.f32.mrf.mxu2 }
 0x2cb   : > { %v7658_v16 = vpop.f32.mrf.mxu3 }
 0x2cc   : > { %v3107_v62 = vpop.f32.mrf.mxu1  ;;  %v7660_v30 = vpop.f32.mrf.mxu0 }
 0x2cd   : > { %v3137_v52 = vadd.f32 %v3136_v59, %v3107_v62  ;;  %v3129_v62 = vadd.f32 %v7645_v31, %v7647_v50  ;;  %v3163_v50 = vadd.f32 %v7658_v16, %v3134_v47  ;;  %v6120_v47 = vld [vmem:[%s8193_s7 + $0xf8] sm:$0xff] }
 0x2cf   : > { %3338 = vmatmul.bf16.gmra.mxu1 %v7604_v23  ;;  %v2511_v23 = vpack.c.bf16 %v2475_v7, %v2451_v28  ;;  %v6084_v28 = vld [vmem:[%s8192_s6 + $0x18] sm:$0xff]  ;;  %v3192_v46 = vadd.f32 %v7660_v30, %v3163_v50 }
 0x2d0   : > { %3429 = vmatpush.bf16.msra.mxu2 %v6084_v28 }
 0x2d2   : > { %v7663_v39 = vpop.f32.mrf.mxu2 }
 0x2d3   : > { %v3165_v45 = vpop.f32.mrf.mxu3 }
 0x2d4   : > { %v3166_v26 = vadd.f32 %v3165_v45, %v3137_v52  ;;  %v7665_v22 = vpop.f32.mrf.mxu1  ;;  %v3194_v0 = vpop.f32.mrf.mxu0  ;;  %3430 = vmatpush.bf16.msra.mxu2 %v6083_v41  ;;  %v3158_v52 = vadd.f32 %v7649_v56, %v3129_v62 }
 0x2d6   : > { %v3195_v4 = vadd.f32 %v3194_v0, %v3166_v26  ;;  %v3187_v0 = vadd.f32 %v7651_v54, %v3158_v52 }
 0x2d8   : > { %3431 = vmatpush.bf16.msra.mxu2 %v6082_v1 }
 0x2da   : > { %v3141_v48 = vpop.f32.mrf.mxu2 }
 0x2db   : > { %v7667_v9 = vpop.f32.mrf.mxu3 }
 0x2dc   : > { %v3112_v53 = vpop.f32.mrf.mxu1  ;;  %v7672_v34 = vpop.f32.mrf.mxu0  ;;  %3432 = vmatpush.bf16.msra.mxu2 %v6081_v35 }
 0x2dd   : > { %v3142_v42 = vadd.f32 %v3141_v48, %v3112_v53 }
 0x2df   : > { %3343 = vmatmul.bf16.gmra.mxu1 %v2511_v23 }
 0x2e0   : > { %4249 = vmatpush.bf16.msrb.mxu2 %v6120_v47  ;;  %v6128_v47 = vld [vmem:[%s8193_s7 + $0x138] sm:$0xff] }
 0x2e2   : > { %v7691_v36 = vpop.f32.mrf.mxu2 }
 0x2e3   : > { %v3170_v11 = vpop.f32.mrf.mxu3 }
 0x2e4   : > { %v3171_v21 = vadd.f32 %v3170_v11, %v3142_v42  ;;  %v7677_v25 = vpop.f32.mrf.mxu1  ;;  %v3199_v3 = vpop.f32.mrf.mxu0 }
 0x2e6   : > { %v3200_v17 = vadd.f32 %v3199_v3, %v3171_v21 }
 0x2ea   : > { %v3242_v2 = vpop.f32.mrf.mxu2 }
 0x2eb   : > { %v7696_v49 = vpop.f32.mrf.mxu3 }
 0x2ec   : > { %v3213_v29 = vpop.f32.mrf.mxu1 }
 0x2ed   : > { %v3214_v57 = vadd.f32 %v3213_v29, %v3185_v10  ;;  %v7703_v10 = vpop.f32.mrf.mxu0 }
 0x2ef   : > { %v3243_v51 = vadd.f32 %v3242_v2, %v3214_v57 }
 0x2f3   : > { %v3271_v44 = vpop.f32.mrf.mxu3 }
 0x2f4   : > { %v3215_v27 = vpop.f32.mrf.mxu1  ;;  %v3272_v23 = vadd.f32 %v3271_v44, %v3243_v51  ;;  %v3139_v44 = vadd.f32 %v7663_v39, %v7665_v22  ;;  %v6096_v39 = vld [vmem:[%s8193_s7 + $0x38] sm:$0xff] }
 0x2f5   : > { %v3300_v20 = vpop.f32.mrf.mxu0  ;;  %4162 = vmatpush.bf16.msra.mxu3 %v6096_v39  ;;  %v6108_v39 = vld [vmem:[%s8193_s7 + $0x98] sm:$0xff] }
 0x2f6   : > { %v3301_v31 = vadd.f32 %v3300_v20, %v3272_v23  ;;  %v3168_v30 = vadd.f32 %v7667_v9, %v3139_v44 }
 0x2fb   : > { %v3273_v59 = vpop.f32.mrf.mxu3 }
 0x2fc   : > { %v3218_v13 = vpop.f32.mrf.mxu1 }
 0x2fd   : > { %v3219_v12 = vadd.f32 %v3218_v13, %v3190_v58  ;;  %v3244_v58 = vpop.f32.mrf.mxu2  ;;  %v3302_v45 = vpop.f32.mrf.mxu0 }
 0x303   : > { %v3276_v48 = vpop.f32.mrf.mxu3 }
 0x304   : > { %v3220_v15 = vpop.f32.mrf.mxu1 }
 0x305   : > { %v3247_v7 = vpop.f32.mrf.mxu2  ;;  %v3305_v11 = vpop.f32.mrf.mxu0  ;;  %v3221_v13 = vadd.f32 %v3220_v15, %v3192_v46  ;;  %v6110_v46 = vld [vmem:[%s8193_s7 + $0xa8] sm:$0xff] }
 0x306   : > { %v3248_v1 = vadd.f32 %v3247_v7, %v3219_v12  ;;  %v3197_v12 = vadd.f32 %v7672_v34, %v3168_v30 }
 0x308   : > { %v3277_v40 = vadd.f32 %v3276_v48, %v3248_v1 }
 0x30a   : > { %v3306_v20 = vadd.f32 %v3305_v11, %v3277_v40  ;;  %v6109_v40 = vld [vmem:[%s8193_s7 + $0xa0] sm:$0xff] }
 0x30b   : > { %v3278_v8 = vpop.f32.mrf.mxu3 }
 0x30c   : > { %v3223_v60 = vpop.f32.mrf.mxu1 }
 0x30d   : > { %v7698_v14 = vadd.f32 %v3223_v60, %v3195_v4  ;;  %v3216_v4 = vadd.f32 %v3215_v27, %v3187_v0  ;;  %v3249_v3 = vpop.f32.mrf.mxu2  ;;  %v3307_v28 = vpop.f32.mrf.mxu0 }
 0x30e   : > { %v3250_v32 = vadd.f32 %v3249_v3, %v3221_v13  ;;  %v6094_v3 = vld [vmem:[%s8193_s7 + $0x28] sm:$0xff] }
 0x30f   : > { %v3245_v42 = vadd.f32 %v3244_v58, %v3216_v4 }
 0x310   : > { %v3279_v2 = vadd.f32 %v3278_v8, %v3250_v32 }
 0x311   : > { %v3274_v21 = vadd.f32 %v3273_v59, %v3245_v42  ;;  %v6103_v42 = vld [vmem:[%s8193_s7 + $0x70] sm:$0xff] }
 0x312   : > { %v3308_v58 = vadd.f32 %v3307_v28, %v3279_v2  ;;  %v6093_v28 = vld [vmem:[%s8193_s7 + $0x20] sm:$0xff] }
 0x313   : > { %v3303_v56 = vadd.f32 %v3302_v45, %v3274_v21  ;;  %v3281_v16 = vpop.f32.mrf.mxu3  ;;  %v6111_v21 = vld [vmem:[%s8193_s7 + $0xb0] sm:$0xff] }
 0x314   : > { %v3225_v38 = vpop.f32.mrf.mxu1 }
 0x315   : > { %v3252_v35 = vpop.f32.mrf.mxu2  ;;  %v3226_v7 = vadd.f32 %v3225_v38, %v3197_v12  ;;  %v6095_v38 = vld [vmem:[%s8193_s7 + $0x30] sm:$0xff] }
 0x316   : > { %v3253_v51 = vadd.f32 %v3252_v35, %v7698_v14  ;;  %v6112_v14 = vld [vmem:[%s8193_s7 + $0xb8] sm:$0xff]  ;;  %4163 = vmatpush.bf16.msra.mxu3 %v6095_v38  ;;  %v6089_v38 = vld [vmem:[%s8193_s7] sm:$0xff] }
 0x317   : > { %4220 = vmatpush.bf16.msra.mxu1 %v6112_v14  ;;  %v6106_v14 = vld [vmem:[%s8193_s7 + $0x88] sm:$0xff] }
 0x318   : > { %v3282_v34 = vadd.f32 %v3281_v16, %v3253_v51  ;;  %v6092_v16 = vld [vmem:[%s8193_s7 + $0x18] sm:$0xff]  ;;  %v6099_v51 = vld [vmem:[%s8193_s7 + $0x50] sm:$0xff] }
 0x31a   : > { %4164 = vmatpush.bf16.msra.mxu3 %v6094_v3  ;;  %v6126_v3 = vld [vmem:[%s8193_s7 + $0x128] sm:$0xff] }
 0x31b   : > { %v3283_v4 = vpop.f32.mrf.mxu3  ;;  %4221 = vmatpush.bf16.msra.mxu1 %v6111_v21  ;;  %v6115_v21 = vld [vmem:[%s8193_s7 + $0xd0] sm:$0xff] }
 0x31c   : > { %v3228_v37 = vpop.f32.mrf.mxu1 }
 0x31d   : > { %v7705_v18 = vadd.f32 %v3228_v37, %v3200_v17  ;;  %v3310_v37 = vpop.f32.mrf.mxu0  ;;  %v3254_v52 = vpop.f32.mrf.mxu2 }
 0x31e   : > { %v3255_v23 = vadd.f32 %v3254_v52, %v3226_v7  ;;  %v3311_v50 = vadd.f32 %v3310_v37, %v3282_v34  ;;  %4165 = vmatpush.bf16.msra.mxu3 %v6093_v28  ;;  %v6117_v34 = vld [vmem:[%s8193_s7 + $0xe0] sm:$0xff] }
 0x31f   : > { %4222 = vmatpush.bf16.msra.mxu1 %v6110_v46  ;;  %v6136_v46 = vld [vmem:[%s8193_s7 + $0x178] sm:$0xff] }
 0x320   : > { %v3284_v11 = vadd.f32 %v3283_v4, %v3255_v23  ;;  %v6097_v23 = vld [vmem:[%s8193_s7 + $0x40] sm:$0xff] }
 0x322   : > { %4166 = vmatpush.bf16.msra.mxu3 %v6092_v16 }
 0x323   : > { %v3286_v8 = vpop.f32.mrf.mxu3  ;;  %4223 = vmatpush.bf16.msra.mxu1 %v6109_v40  ;;  %v6124_v40 = vld [vmem:[%s8193_s7 + $0x118] sm:$0xff] }
 0x324   : > { %v7710_v26 = vpop.f32.mrf.mxu1 }
 0x325   : > { %v3312_v22 = vpop.f32.mrf.mxu0 }
 0x327   : > { %4224 = vmatpush.bf16.msra.mxu1 %v6108_v39 }
 0x32c   : > { %v3329_v53 = vpop.f32.mrf.mxu1 }
 0x32d   : > { %v3330_v17 = vadd.f32 %v3329_v53, %v3301_v31  ;;  %v6104_v53 = vld [vmem:[%s8193_s7 + $0x78] sm:$0xff]  ;;  %v3144_v31 = vadd.f32 %v7691_v36, %v7677_v25  ;;  %v3313_v36 = vadd.f32 %v3312_v22, %v3284_v11  ;;  %v3315_v13 = vpop.f32.mrf.mxu0  ;;  %v6118_v22 = vld [vmem:[%s8193_s7 + $0xe8] sm:$0xff]  ;;  %v6105_v11 = vld [vmem:[%s8193_s7 + $0x80] sm:$0xff] }
 0x32e   : > { %4191 = vmatpush.bf16.msrb.mxu0 %v6104_v53  ;;  %v6107_v53 = vld [vmem:[%s8193_s7 + $0x90] sm:$0xff] }
 0x32f   : > { %v3349_v57 = vmax.f32 %v3330_v17, 0.0  ;;  %v6119_v17 = vld [vmem:[%s8193_s7 + $0xf0] sm:$0xff]  ;;  %v3173_v25 = vadd.f32 %v7696_v49, %v3144_v31  ;;  %v6101_v49 = vld [vmem:[%s8193_s7 + $0x60] sm:$0xff]  ;;  %4225 = vmatpush.bf16.msra.mxu1 %v6107_v53  ;;  %v6114_v31 = vld [vmem:[%s8193_s7 + $0xc8] sm:$0xff] }
 0x330   : > { %4250 = vmatpush.bf16.msrb.mxu2 %v6119_v17  ;;  %v6150_v53 = vld [vmem:[%s8193_s7 + $0x1e8] sm:$0xff] }
 0x332   : > { %4192 = vmatpush.bf16.msrb.mxu0 %v6103_v42  ;;  %v6116_v42 = vld [vmem:[%s8193_s7 + $0xd8] sm:$0xff] }
 0x333   : > { %4226 = vmatpush.bf16.msra.mxu1 %v6106_v14  ;;  %v6139_v14 = vld [vmem:[%s8193_s7 + $0x190] sm:$0xff] }
 0x334   : > { %v3331_v54 = vpop.f32.mrf.mxu1  ;;  %4251 = vmatpush.bf16.msrb.mxu2 %v6118_v22  ;;  %v6122_v22 = vld [vmem:[%s8193_s7 + $0x108] sm:$0xff] }
 0x335   : > { %v3332_v29 = vadd.f32 %v3331_v54, %v3303_v56  ;;  %v3257_v56 = vpop.f32.mrf.mxu2  ;;  %v6102_v54 = vld [vmem:[%s8193_s7 + $0x68] sm:$0xff] }
 0x336   : > { %4193 = vmatpush.bf16.msrb.mxu0 %v6102_v54  ;;  %v3258_v2 = vadd.f32 %v3257_v56, %v7705_v18  ;;  %v6090_v18 = vld [vmem:[%s8193_s7 + $0x8] sm:$0xff]  ;;  %v6127_v56 = vld [vmem:[%s8193_s7 + $0x130] sm:$0xff] }
 0x337   : > { %v3350_v27 = vmax.f32 %v3332_v29, 0.0  ;;  %4227 = vmatpush.bf16.msra.mxu1 %v6105_v11  ;;  %v3486_v54 = vld [vmem:[#allocation2 + $0x1] sm:$0xff] }
 0x338   : > { %v3287_v37 = vadd.f32 %v3286_v8, %v3258_v2  ;;  %4252 = vmatpush.bf16.msrb.mxu2 %v6117_v34 }
 0x339   : > { %v3357_v41 = vpack.c.bf16 %v3350_v27, %v3349_v57 }
 0x33a   : > { %4194 = vmatpush.bf16.msrb.mxu0 %v6101_v49 }
 0x33b   : > { %3433 = vmatmul.bf16.vlgmr.msra.gmra.mxu2 %v3357_v41  ;;  %v3202_v41 = vadd.f32 %v7703_v10, %v3173_v25  ;;  %v3288_v10 = vpop.f32.mrf.mxu3 }
 0x33c   : > { %v3334_v60 = vpop.f32.mrf.mxu1  ;;  %4253 = vmatpush.bf16.msrb.mxu2 %v6116_v42  ;;  %v6149_v42 = vld [vmem:[%s8193_s7 + $0x1e0] sm:$0xff] }
 0x33d   : > { %v3335_v59 = vadd.f32 %v3334_v60, %v3306_v20  ;;  %v3231_v32 = vadd.f32 %v7710_v26, %v3202_v41  ;;  %v3259_v44 = vpop.f32.mrf.mxu2  ;;  %v6091_v26 = vld [vmem:[%s8193_s7 + $0x10] sm:$0xff] }
 0x33e   : > { %4167 = vmatpush.bf16.msra.mxu3 %v6091_v26  ;;  %v6123_v26 = vld [vmem:[%s8193_s7 + $0x110] sm:$0xff] }
 0x33f   : > { %v3351_v45 = vmax.f32 %v3335_v59, 0.0  ;;  %v3260_v30 = vadd.f32 %v3259_v44, %v3231_v32  ;;  %v3317_v59 = vpop.f32.mrf.mxu0  ;;  %v6144_v32 = vld [vmem:[%s8193_s7 + $0x1b8] sm:$0xff] }
 0x340   : > { %4254 = vmatpush.bf16.msrb.mxu2 %v6115_v21  ;;  %4336 = vmatpush.bf16.msrb.mxu1 %v6144_v32 }
 0x342   : > { %4168 = vmatpush.bf16.msra.mxu3 %v6090_v18  ;;  %v6132_v18 = vld [vmem:[%s8193_s7 + $0x158] sm:$0xff] }
 0x344   : > { %v3336_v62 = vpop.f32.mrf.mxu1  ;;  %4255 = vmatpush.bf16.msrb.mxu2 %v6114_v31 }
 0x345   : > { %v3337_v15 = vadd.f32 %v3336_v62, %v3308_v58  ;;  %v3289_v58 = vadd.f32 %v3288_v10, %v3260_v30  ;;  %v3316_v62 = vadd.f32 %v3315_v13, %v3287_v37  ;;  %v6135_v13 = vld [vmem:[%s8193_s7 + $0x170] sm:$0xff] }
 0x346   : > { %4169 = vmatpush.bf16.msra.mxu3 %v6089_v38  ;;  %v6143_v10 = vld [vmem:[%s8193_s7 + $0x1b0] sm:$0xff] }
 0x347   : > { %v3352_v0 = vmax.f32 %v3337_v15, 0.0  ;;  %v3318_v15 = vadd.f32 %v3317_v59, %v3289_v58  ;;  %4337 = vmatpush.bf16.msrb.mxu1 %v6143_v10  ;;  %v6142_v58 = vld [vmem:[%s8193_s7 + $0x1a8] sm:$0xff]  ;;  %v6152_v59 = vld [vmem:[%s8193_s7 + $0x1f8] sm:$0xff] }
 0x349   : > { %v3358_v48 = vpack.c.bf16 %v3352_v0, %v3351_v45 }
 0x34a   : > { %4278 = vmatpush.bf16.msrb.mxu3 %v6128_v47 }
 0x34b   : > { %3438 = vmatmul.bf16.gmra.mxu2 %v3358_v48  ;;  %v6100_v48 = vld [vmem:[%s8193_s7 + $0x58] sm:$0xff]  ;;  %4338 = vmatpush.bf16.msrb.mxu1 %v6142_v58 }
 0x34c   : > { %v3339_v9 = vpop.f32.mrf.mxu1  ;;  %4195 = vmatpush.bf16.msrb.mxu0 %v6100_v48 }
 0x34d   : > { %v3340_v29 = vadd.f32 %v3339_v9, %v3311_v50  ;;  %v6098_v9 = vld [vmem:[%s8193_s7 + $0x48] sm:$0xff]  ;;  %v6113_v50 = vld [vmem:[%s8193_s7 + $0xc0] sm:$0xff] }
 0x34e   : > { %4256 = vmatpush.bf16.msrb.mxu2 %v6113_v50  ;;  %4279 = vmatpush.bf16.msrb.mxu3 %v6127_v56  ;;  %v6121_v50 = vld [vmem:[%s8193_s7 + $0x100] sm:$0xff]  ;;  %v6138_v56 = vld [vmem:[%s8193_s7 + $0x188] sm:$0xff] }
 0x34f   : > { %v3353_v1 = vmax.f32 %v3340_v29, 0.0  ;;  %v6125_v29 = vld [vmem:[%s8193_s7 + $0x120] sm:$0xff] }
 0x350   : > { %4196 = vmatpush.bf16.msrb.mxu0 %v6099_v51 }
 0x352   : > { %4280 = vmatpush.bf16.msrb.mxu3 %v6126_v3  ;;  %4365 = vmatpush.bf16.msra.mxu2 %v6152_v59  ;;  %v6148_v3 = vld [vmem:[%s8193_s7 + $0x1d8] sm:$0xff] }
 0x354   : > { %v3341_v57 = vpop.f32.mrf.mxu1  ;;  %4197 = vmatpush.bf16.msrb.mxu0 %v6098_v9  ;;  %v6140_v9 = vld [vmem:[%s8193_s7 + $0x198] sm:$0xff] }
 0x355   : > { %v3342_v27 = vadd.f32 %v3341_v57, %v3313_v36 }
 0x356   : > { %4281 = vmatpush.bf16.msrb.mxu3 %v6125_v29  ;;  %v6147_v29 = vld [vmem:[%s8193_s7 + $0x1d0] sm:$0xff] }
 0x357   : > { %v3354_v60 = vmax.f32 %v3342_v27, 0.0  ;;  %v3494_v27 = vld [vmem:[#allocation2 + $0x2] sm:$0xff] }
 0x358   : > { %4198 = vmatpush.bf16.msrb.mxu0 %v6097_v23  ;;  %v6130_v23 = vld [vmem:[%s8193_s7 + $0x148] sm:$0xff] }
 0x359   : > { %v3359_v35 = vpack.c.bf16 %v3354_v60, %v3353_v1 }
 0x35a   : > { %4282 = vmatpush.bf16.msrb.mxu3 %v6124_v40  ;;  %v6146_v40 = vld [vmem:[%s8193_s7 + $0x1c8] sm:$0xff] }
 0x35b   : > { %3443 = vmatmul.bf16.gmra.mxu2 %v3359_v35  ;;  %v6134_v35 = vld [vmem:[%s8193_s7 + $0x168] sm:$0xff] }
 0x35c   : > { %v3344_v20 = vpop.f32.mrf.mxu1  ;;  %4307 = vmatpush.bf16.msra.mxu0 %v6136_v46 }
 0x35d   : > { %v3345_v12 = vadd.f32 %v3344_v20, %v3316_v62  ;;  %v6133_v20 = vld [vmem:[%s8193_s7 + $0x160] sm:$0xff] }
 0x35e   : > { %4283 = vmatpush.bf16.msrb.mxu3 %v6123_v26 }
 0x35f   : > { %v3355_v0 = vmax.f32 %v3345_v12, 0.0 }
 0x360   : > { %4308 = vmatpush.bf16.msra.mxu0 %v6135_v13 }
 0x362   : > { %4284 = vmatpush.bf16.msrb.mxu3 %v6122_v22  ;;  %v6158_v22 = vld [vmem:[%s8193_s7 + $0x228] sm:$0xff] }
 0x364   : > { %v3346_v52 = vpop.f32.mrf.mxu1  ;;  %4309 = vmatpush.bf16.msra.mxu0 %v6134_v35 }
 0x365   : > { %v3347_v45 = vadd.f32 %v3346_v52, %v3318_v15  ;;  %v6141_v52 = vld [vmem:[%s8193_s7 + $0x1a0] sm:$0xff] }
 0x366   : > { %4339 = vmatpush.bf16.msrb.mxu1 %v6141_v52  ;;  %4285 = vmatpush.bf16.msrb.mxu3 %v6121_v50 }
 0x367   : > { %v3356_v4 = vmax.f32 %v3347_v45, 0.0  ;;  %v6151_v45 = vld [vmem:[%s8193_s7 + $0x1f0] sm:$0xff] }
 0x368   : > { %4310 = vmatpush.bf16.msra.mxu0 %v6133_v20  ;;  %4366 = vmatpush.bf16.msra.mxu2 %v6151_v45 }
 0x369   : > { %v3360_v7 = vpack.c.bf16 %v3356_v4, %v3355_v0 }
 0x36a   : > { %4340 = vmatpush.bf16.msrb.mxu1 %v6140_v9 }
 0x36b   : > { %3448 = vmatmul.bf16.gmra.mxu2 %v3360_v7 }
 0x36c   : > { %4311 = vmatpush.bf16.msra.mxu0 %v6132_v18  ;;  %4367 = vmatpush.bf16.msra.mxu2 %v6150_v53 }
 0x36e   : > { %4341 = vmatpush.bf16.msrb.mxu1 %v6139_v14 }
 0x370   : > { %4368 = vmatpush.bf16.msra.mxu2 %v6149_v42 }
 0x372   : > { %4342 = vmatpush.bf16.msrb.mxu1 %v6138_v56 }
 0x374   : > { %4369 = vmatpush.bf16.msra.mxu2 %v6148_v3 }
 0x378   : > { %4370 = vmatpush.bf16.msra.mxu2 %v6147_v29 }
 0x37c   : > { %4371 = vmatpush.bf16.msra.mxu2 %v6146_v40 }
 0x3be   : > { %v3434_v17 = vpop.f32.mrf.mxu2 }
 0x3bf   : > { %v7834_v8 = vadd.f32 %v3434_v17, %v7396_v55 }
 0x3c1   : > { %v7837_v25 = vmax.f32 %v7834_v8, 0.0 }
 0x3c3   : > { %3470 = vst [vmem:[#allocation2 + $0x11] sm:$0xff] %v7837_v25  ;;  %v3551_v36 = vpack.c.bf16 %v7837_v25, %v3486_v54 }
 0x3c5   : > { %4199 = vmatmul.bf16.vlgmr.msrb.gmra.mxu0 %v3551_v36  ;;  %v6137_v36 = vld [vmem:[%s8193_s7 + $0x180] sm:$0xff] }
 0x3c6   : > { %v3436_v55 = vpop.f32.mrf.mxu2  ;;  %4343 = vmatpush.bf16.msrb.mxu1 %v6137_v36 }
 0x3c7   : > { %v7848_v57 = vadd.f32 %v3436_v55, %v7415_v61 }
 0x3c9   : > { %v7851_v28 = vmax.f32 %v7848_v57, 0.0 }
 0x3ca   : > { %v3479_v49 = vld [vmem:[#allocation2 + $0x10] sm:$0xff] }
 0x3cb   : > { %v7856_v41 = vld [vmem:[#allocation2 + $0x12] sm:$0xff]  ;;  %3471 = vst [vmem:[#allocation2 + $0x21] sm:$0xff] %v7851_v28  ;;  %v3550_v1 = vpack.c.bf16 %v3479_v49, %v7641_v33  ;;  %v3554_v60 = vpack.c.bf16 %v7851_v28, %v7837_v25  ;;  %v6154_v25 = vld [vmem:[%s8193_s7 + $0x208] sm:$0xff] }
 0x3cc   : > { %v3552_v61 = vpack.c.bf16 %v7856_v41, %v3494_v27 }
 0x3cd   : > { %4170 = vmatmul.bf16.vlgmr.msra.gmra.mxu3 %v3550_v1 }
 0x3ce   : > { %4228 = vmatmul.bf16.vlgmr.msra.gmra.mxu1 %v3552_v61  ;;  %v3439_v16 = vpop.f32.mrf.mxu2  ;;  %v6160_v61 = vld [vmem:[%s8193_s7 + $0x238] sm:$0xff] }
 0x3cf   : > { %v7873_v2 = vadd.f32 %v3439_v16, %v7445_v19  ;;  %4394 = vmatpush.bf16.msra.mxu3 %v6160_v61  ;;  %v6145_v16 = vld [vmem:[%s8193_s7 + $0x1c0] sm:$0xff] }
 0x3d0   : > { %4372 = vmatpush.bf16.msra.mxu2 %v6145_v16 }
 0x3d1   : > { %v7876_v44 = vmax.f32 %v7873_v2, 0.0 }
 0x3d2   : > { %v3503_v37 = vld [vmem:[#allocation2 + $0x20] sm:$0xff] }
 0x3d3   : > { %3472 = vst [vmem:[#allocation2 + $0x31] sm:$0xff] %v7876_v44  ;;  %v3553_v30 = vpack.c.bf16 %v3503_v37, %v3479_v49  ;;  %v7887_v19 = vpack.c.bf16 %v7876_v44, %v7851_v28  ;;  %v7917_v4 = vld [vmem:[#allocation2 + $0x22] sm:$0xff] }
 0x3d4   : > { %v3555_v53 = vpack.c.bf16 %v7917_v4, %v7856_v41 }
 0x3d5   : > { %4257 = vmatmul.bf16.vlgmr.msrb.gmra.mxu2 %v3553_v30  ;;  %4204 = vmatmul.bf16.gmra.mxu0 %v7887_v19 }
 0x3d6   : > { %v3441_v62 = vpop.f32.mrf.mxu2 }
 0x3d7   : > { %v7903_v15 = vadd.f32 %v3441_v62, %v7480_v43  ;;  %v6131_v43 = vld [vmem:[%s8193_s7 + $0x150] sm:$0xff] }
 0x3d8   : > { %4312 = vmatpush.bf16.msra.mxu0 %v6131_v43 }
 0x3d9   : > { %v7906_v12 = vmax.f32 %v7903_v15, 0.0 }
 0x3da   : > { %v3481_v0 = vld [vmem:[#allocation2 + $0x30] sm:$0xff] }
 0x3db   : > { %v7919_v7 = vld [vmem:[#allocation2 + $0x32] sm:$0xff]  ;;  %3473 = vst [vmem:[#allocation2 + $0x41] sm:$0xff] %v7906_v12  ;;  %v7922_v48 = vpack.c.bf16 %v3481_v0, %v3503_v37  ;;  %v3563_v39 = vpack.c.bf16 %v7906_v12, %v7876_v44 }
 0x3dc   : > { %v7926_v51 = vpack.c.bf16 %v7919_v7, %v7917_v4  ;;  %4313 = vmatpush.bf16.msra.mxu0 %v6130_v23  ;;  %v6156_v23 = vld [vmem:[%s8193_s7 + $0x218] sm:$0xff]  ;;  %v6155_v4 = vld [vmem:[%s8193_s7 + $0x210] sm:$0xff] }
 0x3dd   : > { %4175 = vmatmul.bf16.gmra.mxu3 %v7922_v48 }
 0x3de   : > { %4233 = vmatmul.bf16.gmra.mxu1 %v7926_v51  ;;  %v3444_v34 = vpop.f32.mrf.mxu2 }
 0x3df   : > { %v7945_v38 = vadd.f32 %v3444_v34, %v7527_v63  ;;  %v6129_v63 = vld [vmem:[%s8193_s7 + $0x140] sm:$0xff] }
 0x3e0   : > { %4314 = vmatpush.bf16.msra.mxu0 %v6129_v63  ;;  %v6157_v34 = vld [vmem:[%s8193_s7 + $0x220] sm:$0xff] }
 0x3e1   : > { %v7954_v11 = vmax.f32 %v7945_v38, 0.0 }
 0x3e2   : > { %v3505_v21 = vld [vmem:[#allocation2 + $0x40] sm:$0xff] }
 0x3e3   : > { %3474 = vst [vmem:[#allocation2 + $0x51] sm:$0xff] %v7954_v11  ;;  %v3562_v47 = vpack.c.bf16 %v3505_v21, %v3481_v0  ;;  %v7962_v31 = vpack.c.bf16 %v7954_v11, %v7906_v12  ;;  %v3498_v27 = vld [vmem:[#allocation2 + $0x42] sm:$0xff] }
 0x3e4   : > { %v3564_v41 = vpack.c.bf16 %v3498_v27, %v7919_v7  ;;  %v3541_v7 = vld [vmem:[#allocation2 + $0x91] sm:$0xff] }
 0x3e5   : > { %4262 = vmatmul.bf16.gmra.mxu2 %v3562_v47  ;;  %4209 = vmatmul.bf16.gmra.mxu0 %v7962_v31 }
 0x3e6   : > { %v3446_v17 = vpop.f32.mrf.mxu2 }
 0x3e7   : > { %v7975_v54 = vadd.f32 %v3446_v17, %v7562_v5 }
 0x3e9   : > { %v7984_v46 = vmax.f32 %v7975_v54, 0.0 }
 0x3ea   : > { %v3483_v55 = vld [vmem:[#allocation2 + $0x50] sm:$0xff] }
 0x3eb   : > { %v3499_v13 = vld [vmem:[#allocation2 + $0x52] sm:$0xff]  ;;  %3475 = vst [vmem:[#allocation2 + $0x61] sm:$0xff] %v7984_v46  ;;  %v3568_v5 = vpack.c.bf16 %v3483_v55, %v3505_v21  ;;  %v3572_v1 = vpack.c.bf16 %v7984_v46, %v7954_v11 }
 0x3ec   : > { %v7987_v49 = vpack.c.bf16 %v3499_v13, %v3498_v27 }
 0x3ed   : > { %4180 = vmatmul.bf16.gmra.mxu3 %v3568_v5 }
 0x3ee   : > { %4238 = vmatmul.bf16.gmra.mxu1 %v7987_v49  ;;  %v3449_v32 = vpop.f32.mrf.mxu2 }
 0x3ef   : > { %v7999_v35 = vadd.f32 %v3449_v32, %v7591_v24  ;;  %v6159_v24 = vld [vmem:[%s8193_s7 + $0x230] sm:$0xff] }
 0x3f0   : > { %4395 = vmatpush.bf16.msra.mxu3 %v6159_v24  ;;  %v3549_v24 = vld [vmem:[#allocation2 + $0x92] sm:$0xff] }
 0x3f1   : > { %v3468_v10 = vmax.f32 %v7999_v35, 0.0 }
 0x3f2   : > { %v3507_v20 = vld [vmem:[#allocation2 + $0x60] sm:$0xff] }
 0x3f3   : > { %3476 = vst [vmem:[#allocation2 + $0x71] sm:$0xff] %v3468_v10  ;;  %v3571_v37 = vpack.c.bf16 %v3507_v20, %v3483_v55  ;;  %v3578_v30 = vpack.c.bf16 %v3468_v10, %v7984_v46  ;;  %v3500_v18 = vld [vmem:[#allocation2 + $0x62] sm:$0xff] }
 0x3f4   : > { %4396 = vmatpush.bf16.msra.mxu3 %v6158_v22  ;;  %v3573_v28 = vpack.c.bf16 %v3500_v18, %v3499_v13 }
 0x3f5   : > { %4267 = vmatmul.bf16.gmra.mxu2 %v3571_v37  ;;  %4214 = vmatmul.bf16.gmra.mxu0 %v3578_v30 }
 0x3f6   : > { %v3451_v26 = vpop.f32.mrf.mxu2 }
 0x3f7   : > { %v8010_v58 = vadd.f32 %v3451_v26, %v7601_v6 }
 0x3f8   : > { %4397 = vmatpush.bf16.msra.mxu3 %v6157_v34 }
 0x3f9   : > { %v3469_v59 = vmax.f32 %v8010_v58, 0.0 }
 0x3fa   : > { %v3485_v62 = vld [vmem:[#allocation2 + $0x70] sm:$0xff] }
 0x3fb   : > { %v3501_v52 = vld [vmem:[#allocation2 + $0x72] sm:$0xff]  ;;  %3477 = vst [vmem:[#allocation2 + $0x81] sm:$0xff] %v3469_v59  ;;  %v3577_v45 = vpack.c.bf16 %v3485_v62, %v3507_v20  ;;  %v3581_v0 = vpack.c.bf16 %v3469_v59, %v3468_v10 }
 0x3fc   : > { %v8013_v43 = vpack.c.bf16 %v3501_v52, %v3500_v18  ;;  %4398 = vmatpush.bf16.msra.mxu3 %v6156_v23  ;;  %v6168_v23 = vld [vmem:[%s8194_s8 + $0x38] sm:$0xff] }
 0x3fd   : > { %4185 = vmatmul.bf16.gmra.mxu3 %v3577_v45  ;;  %4499 = vmatpush.bf16.msrb.mxu0 %v6168_v23 }
 0x3fe   : > { %4243 = vmatmul.bf16.gmra.mxu1 %v8013_v43  ;;  %6178 = vmatpush.bf16.msrb.mxu2 %v6168_v23 }
 0x400   : > { %4399 = vmatpush.bf16.msra.mxu3 %v6155_v4  ;;  %v6167_v4 = vld [vmem:[%s8194_s8 + $0x30] sm:$0xff] }
 0x401   : > { %4500 = vmatpush.bf16.msrb.mxu0 %v6167_v4 }
 0x402   : > { %v3509_v6 = vld [vmem:[#allocation2 + $0x80] sm:$0xff]  ;;  %6179 = vmatpush.bf16.msrb.mxu2 %v6167_v4 }
 0x403   : > { %v3580_v9 = vpack.c.bf16 %v3509_v6, %v3485_v62  ;;  %v3583_v12 = vpack.c.bf16 %v7641_v33, %v3509_v6 }
 0x404   : > { %4400 = vmatpush.bf16.msra.mxu3 %v6154_v25 }
 0x405   : > { %4272 = vmatmul.bf16.gmra.mxu2 %v3580_v9  ;;  %4315 = vmatmul.bf16.vlgmr.msra.gmra.mxu0 %v3555_v53 }
 0x40d   : > { %4286 = vmatmul.bf16.vlgmr.msrb.gmra.mxu3 %v3554_v60  ;;  %v6153_v60 = vld [vmem:[%s8193_s7 + $0x200] sm:$0xff] }
 0x40e   : > { %4344 = vmatmul.bf16.vlgmr.msrb.gmra.mxu1 %v7922_v48  ;;  %4401 = vmatpush.bf16.msra.mxu3 %v6153_v60  ;;  %v3584_v48 = vpack.c.bf16 %v3541_v7, %v3469_v59  ;;  %v6166_v60 = vld [vmem:[%s8194_s8 + $0x28] sm:$0xff] }
 0x40f   : > { %4501 = vmatpush.bf16.msrb.mxu0 %v6166_v60  ;;  %6180 = vmatpush.bf16.msrb.mxu2 %v6166_v60 }
 0x415   : > { %4373 = vmatmul.bf16.vlgmr.msra.gmra.mxu2 %v7887_v19  ;;  %4320 = vmatmul.bf16.gmra.mxu0 %v3564_v41  ;;  %v3525_v19 = vld [vmem:[#allocation2 + $0x82] sm:$0xff] }
 0x416   : > { %v3582_v44 = vpack.c.bf16 %v3525_v19, %v3501_v52  ;;  %v3585_v59 = vpack.c.bf16 %v3549_v24, %v3525_v19 }
 0x41d   : > { %4291 = vmatmul.bf16.gmra.mxu3 %v3563_v39 }
 0x41e   : > { %4349 = vmatmul.bf16.gmra.mxu1 %v3568_v5 }
 0x425   : > { %4378 = vmatmul.bf16.gmra.mxu2 %v7962_v31  ;;  %4325 = vmatmul.bf16.gmra.mxu0 %v3573_v28 }
 0x42d   : > { %4296 = vmatmul.bf16.gmra.mxu3 %v3572_v1 }
 0x42e   : > { %4354 = vmatmul.bf16.gmra.mxu1 %v3577_v45 }
 0x435   : > { %4383 = vmatmul.bf16.gmra.mxu2 %v3578_v30  ;;  %4330 = vmatmul.bf16.gmra.mxu0 %v3582_v44  ;;  %v6165_v44 = vld [vmem:[%s8194_s8 + $0x20] sm:$0xff] }
 0x436   : > { %4502 = vmatpush.bf16.msrb.mxu0 %v6165_v44  ;;  %6181 = vmatpush.bf16.msrb.mxu2 %v6165_v44 }
 0x43d   : > { %4301 = vmatmul.bf16.gmra.mxu3 %v3581_v0 }
 0x43e   : > { %4359 = vmatmul.bf16.gmra.mxu1 %v3583_v12  ;;  %v6164_v12 = vld [vmem:[%s8194_s8 + $0x18] sm:$0xff] }
 0x43f   : > { %4503 = vmatpush.bf16.msrb.mxu0 %v6164_v12  ;;  %6182 = vmatpush.bf16.msrb.mxu2 %v6164_v12 }
 0x442   : > { %v4200_v39 = vpop.f32.mrf.mxu0 }
 0x445   : > { %4388 = vmatmul.bf16.gmra.mxu2 %v3584_v48 }
 0x44a   : > { %v8048_v42 = vpop.f32.mrf.mxu0 }
 0x44b   : > { %v4229_v14 = vpop.f32.mrf.mxu1 }
 0x44d   : > { %4402 = vmatmul.bf16.vlgmr.msra.gmra.mxu3 %v7926_v51 }
 0x450   : > { %v4171_v11 = vpop.f32.mrf.mxu3 }
 0x451   : > { %v4201_v63 = vadd.f32 %v4200_v39, %v4171_v11  ;;  %v6163_v11 = vld [vmem:[%s8194_s8 + $0x10] sm:$0xff] }
 0x452   : > { %v4205_v31 = vpop.f32.mrf.mxu0  ;;  %4504 = vmatpush.bf16.msrb.mxu0 %v6163_v11  ;;  %6183 = vmatpush.bf16.msrb.mxu2 %v6163_v11 }
 0x453   : > { %v8050_v21 = vpop.f32.mrf.mxu1  ;;  %v4230_v47 = vadd.f32 %v4229_v14, %v4201_v63 }
 0x458   : > { %v8052_v50 = vpop.f32.mrf.mxu3  ;;  %v4258_v33 = vpop.f32.mrf.mxu2 }
 0x459   : > { %v4259_v56 = vadd.f32 %v4258_v33, %v4230_v47  ;;  %v6162_v47 = vld [vmem:[%s8194_s8 + $0x8] sm:$0xff] }
 0x45a   : > { %v8057_v51 = vpop.f32.mrf.mxu0  ;;  %4505 = vmatpush.bf16.msrb.mxu0 %v6162_v47  ;;  %6184 = vmatpush.bf16.msrb.mxu2 %v6162_v47 }
 0x45b   : > { %v4234_v3 = vpop.f32.mrf.mxu1 }
 0x45d   : > { %4407 = vmatmul.bf16.gmra.mxu3 %v7987_v49 }
 0x460   : > { %v4176_v17 = vpop.f32.mrf.mxu3  ;;  %v8055_v36 = vpop.f32.mrf.mxu2 }
 0x461   : > { %v4206_v29 = vadd.f32 %v4205_v31, %v4176_v17 }
 0x462   : > { %v4210_v1 = vpop.f32.mrf.mxu0 }
 0x463   : > { %v8059_v46 = vpop.f32.mrf.mxu1  ;;  %v4235_v55 = vadd.f32 %v4234_v3, %v4206_v29 }
 0x468   : > { %v8061_v27 = vpop.f32.mrf.mxu3  ;;  %v4263_v13 = vpop.f32.mrf.mxu2 }
 0x469   : > { %v4264_v5 = vadd.f32 %v4263_v13, %v4235_v55 }
 0x46a   : > { %v8066_v10 = vpop.f32.mrf.mxu0 }
 0x46b   : > { %v4239_v61 = vpop.f32.mrf.mxu1 }
 0x46d   : > { %4412 = vmatmul.bf16.gmra.mxu3 %v8013_v43 }
 0x470   : > { %v4181_v40 = vpop.f32.mrf.mxu3  ;;  %v8064_v32 = vpop.f32.mrf.mxu2 }
 0x471   : > { %v4211_v49 = vadd.f32 %v4210_v1, %v4181_v40 }
 0x472   : > { %v4215_v62 = vpop.f32.mrf.mxu0 }
 0x473   : > { %v4240_v16 = vadd.f32 %v4239_v61, %v4211_v49  ;;  %v8068_v20 = vpop.f32.mrf.mxu1 }
 0x478   : > { %v8070_v37 = vpop.f32.mrf.mxu3  ;;  %v4268_v30 = vpop.f32.mrf.mxu2 }
 0x479   : > { %v4269_v26 = vadd.f32 %v4268_v30, %v4240_v16 }
 0x47a   : > { %v8091_v7 = vpop.f32.mrf.mxu0 }
 0x47b   : > { %v4244_v43 = vpop.f32.mrf.mxu1 }
 0x47d   : > { %4417 = vmatmul.bf16.gmra.mxu3 %v3585_v59 }
 0x480   : > { %v4186_v18 = vpop.f32.mrf.mxu3  ;;  %v8072_v52 = vpop.f32.mrf.mxu2 }
 0x481   : > { %v4216_v45 = vadd.f32 %v4215_v62, %v4186_v18 }
 0x482   : > { %v4316_v33 = vpop.f32.mrf.mxu0 }
 0x483   : > { %v4245_v0 = vadd.f32 %v4244_v43, %v4216_v45  ;;  %v8095_v14 = vpop.f32.mrf.mxu1 }
 0x488   : > { %v8074_v22 = vpop.f32.mrf.mxu3  ;;  %v4273_v6 = vpop.f32.mrf.mxu2 }
 0x489   : > { %v4274_v9 = vadd.f32 %v4273_v6, %v4245_v0  ;;  %v4208_v0 = vadd.f32 %v8057_v51, %v8061_v27 }
 0x48a   : > { %v4318_v13 = vpop.f32.mrf.mxu0 }
 0x48b   : > { %v4345_v3 = vpop.f32.mrf.mxu1 }
 0x490   : > { %v4287_v53 = vpop.f32.mrf.mxu3  ;;  %v8100_v63 = vpop.f32.mrf.mxu2 }
 0x491   : > { %v4288_v34 = vadd.f32 %v4287_v53, %v4259_v56  ;;  %v6161_v56 = vld [vmem:[%s8194_s8] sm:$0xff] }
 0x492   : > { %4506 = vmatpush.bf16.msrb.mxu0 %v6161_v56  ;;  %6185 = vmatpush.bf16.msrb.mxu2 %v6161_v56  ;;  %v4321_v24 = vpop.f32.mrf.mxu0 }
 0x493   : > { %v4347_v1 = vpop.f32.mrf.mxu1 }
 0x498   : > { %v4289_v41 = vpop.f32.mrf.mxu3  ;;  %v4374_v17 = vpop.f32.mrf.mxu2 }
 0x49a   : > { %v4323_v53 = vpop.f32.mrf.mxu0 }
 0x49b   : > { %v4350_v18 = vpop.f32.mrf.mxu1 }
 0x4a0   : > { %v4292_v25 = vpop.f32.mrf.mxu3  ;;  %v4376_v61 = vpop.f32.mrf.mxu2 }
 0x4a1   : > { %v4293_v28 = vadd.f32 %v4292_v25, %v4264_v5  ;;  %v4203_v5 = vadd.f32 %v8048_v42, %v8052_v50 }
 0x4a2   : > { %v4326_v11 = vpop.f32.mrf.mxu0 }
 0x4a3   : > { %v4232_v49 = vadd.f32 %v8050_v21, %v4203_v5  ;;  %v4237_v21 = vadd.f32 %v8059_v46, %v4208_v0 }
 0x4a5   : > { %v4261_v16 = vadd.f32 %v8055_v36, %v4232_v49 }
 0x4a7   : > { %v4290_v30 = vadd.f32 %v4289_v41, %v4261_v16  ;;  %v4266_v41 = vadd.f32 %v8064_v32, %v4237_v21 }
 0x4a8   : > { %v4294_v19 = vpop.f32.mrf.mxu3  ;;  %v4379_v45 = vpop.f32.mrf.mxu2 }
 0x4a9   : > { %v4319_v62 = vadd.f32 %v4318_v13, %v4290_v30  ;;  %v4295_v44 = vadd.f32 %v4294_v19, %v4266_v41 }
 0x4aa   : > { %v4328_v49 = vpop.f32.mrf.mxu0 }
 0x4ab   : > { %v4348_v50 = vadd.f32 %v4347_v1, %v4319_v62  ;;  %v4324_v27 = vadd.f32 %v4323_v53, %v4295_v44 }
 0x4ad   : > { %v4377_v6 = vadd.f32 %v4376_v61, %v4348_v50 }
 0x4b0   : > { %v4297_v48 = vpop.f32.mrf.mxu3  ;;  %v4381_v60 = vpop.f32.mrf.mxu2 }
 0x4b1   : > { %v8093_v39 = vadd.f32 %v4297_v48, %v4269_v26  ;;  %v4317_v26 = vadd.f32 %v4316_v33, %v4288_v34  ;;  %v4352_v34 = vpop.f32.mrf.mxu1  ;;  %v4322_v48 = vadd.f32 %v4321_v24, %v4293_v28  ;;  %v4213_v33 = vadd.f32 %v8066_v10, %v8070_v37 }
 0x4b3   : > { %v4346_v43 = vadd.f32 %v4345_v3, %v4317_v26  ;;  %v4351_v47 = vadd.f32 %v4350_v18, %v4322_v48  ;;  %v4353_v3 = vadd.f32 %v4352_v34, %v4324_v27  ;;  %v4242_v5 = vadd.f32 %v8068_v20, %v4213_v33 }
 0x4b4   : > { %v4327_v24 = vadd.f32 %v4326_v11, %v8093_v39  ;;  %v4218_v18 = vadd.f32 %v8091_v7, %v8074_v22 }
 0x4b5   : > { %v4375_v42 = vadd.f32 %v4374_v17, %v4346_v43  ;;  %v4380_v56 = vadd.f32 %v4379_v45, %v4351_v47  ;;  %v4382_v32 = vadd.f32 %v4381_v60, %v4353_v3  ;;  %v4271_v28 = vadd.f32 %v8072_v52, %v4242_v5  ;;  %v4331_v43 = vpop.f32.mrf.mxu0 }
 0x4b8   : > { %v4299_v31 = vpop.f32.mrf.mxu3  ;;  %v4384_v17 = vpop.f32.mrf.mxu2 }
 0x4b9   : > { %v4355_v46 = vpop.f32.mrf.mxu1  ;;  %v4300_v16 = vadd.f32 %v4299_v31, %v4271_v28  ;;  %v4247_v31 = vadd.f32 %v8095_v14, %v4218_v18 }
 0x4ba   : > { %v4356_v62 = vadd.f32 %v4355_v46, %v4327_v24 }
 0x4bc   : > { %v4385_v20 = vadd.f32 %v4384_v17, %v4356_v62 }
 0x4bd   : > { %v4333_v7 = vpop.f32.mrf.mxu0 }
 0x4c0   : > { %v4302_v29 = vpop.f32.mrf.mxu3  ;;  %v4386_v37 = vpop.f32.mrf.mxu2 }
 0x4c1   : > { %v8108_v55 = vadd.f32 %v4302_v29, %v4274_v9  ;;  %v4357_v10 = vpop.f32.mrf.mxu1 }
 0x4c3   : > { %v4332_v22 = vadd.f32 %v4331_v43, %v8108_v55 }
 0x4c8   : > { %v8112_v40 = vpop.f32.mrf.mxu3  ;;  %v4389_v39 = vpop.f32.mrf.mxu2 }
 0x4d0   : > { %v4403_v59 = vpop.f32.mrf.mxu3 }
 0x4d1   : > { %v4404_v9 = vadd.f32 %v4403_v59, %v4375_v42  ;;  %v4329_v59 = vadd.f32 %v4328_v49, %v4300_v16 }
 0x4d3   : > { %v4423_v4 = vmax.f32 %v4404_v9, 0.0  ;;  %v4358_v45 = vadd.f32 %v4357_v10, %v4329_v59  ;;  %v4276_v9 = vadd.f32 %v8100_v63, %v4247_v31 }
 0x4d5   : > { %v4387_v52 = vadd.f32 %v4386_v37, %v4358_v45  ;;  %v4305_v21 = vadd.f32 %v8112_v40, %v4276_v9 }
 0x4d7   : > { %v4334_v34 = vadd.f32 %v4333_v7, %v4305_v21 }
 0x4d8   : > { %v4405_v23 = vpop.f32.mrf.mxu3 }
 0x4d9   : > { %v4406_v36 = vadd.f32 %v4405_v23, %v4377_v6  ;;  %v4360_v6 = vpop.f32.mrf.mxu1 }
 0x4db   : > { %v4424_v25 = vmax.f32 %v4406_v36, 0.0 }
 0x4dd   : > { %v4431_v12 = vpack.c.bf16 %v4424_v25, %v4423_v4  ;;  %v4361_v4 = vadd.f32 %v4360_v6, %v4332_v22  ;;  %v4391_v25 = vpop.f32.mrf.mxu2 }
 0x4df   : > { %4507 = vmatmul.bf16.vlgmr.msrb.gmra.mxu0 %v4431_v12  ;;  %v4390_v60 = vadd.f32 %v4389_v39, %v4361_v4 }
 0x4e0   : > { %v4408_v51 = vpop.f32.mrf.mxu3 }
 0x4e1   : > { %v4409_v29 = vadd.f32 %v4408_v51, %v4380_v56  ;;  %v4362_v14 = vpop.f32.mrf.mxu1 }
 0x4e2   : > { %v4363_v44 = vadd.f32 %v4362_v14, %v4334_v34 }
 0x4e3   : > { %v4425_v1 = vmax.f32 %v4409_v29, 0.0 }
 0x4e4   : > { %v4392_v12 = vadd.f32 %v4391_v25, %v4363_v44 }
 0x4e8   : > { %v4410_v13 = vpop.f32.mrf.mxu3 }
 0x4e9   : > { %v4411_v19 = vadd.f32 %v4410_v13, %v4382_v32 }
 0x4eb   : > { %v4426_v61 = vmax.f32 %v4411_v19, 0.0 }
 0x4ed   : > { %v4432_v30 = vpack.c.bf16 %v4426_v61, %v4425_v1 }
 0x4ef   : > { %4512 = vmatmul.bf16.gmra.mxu0 %v4432_v30 }
 0x4f0   : > { %v4413_v26 = vpop.f32.mrf.mxu3 }
 0x4f1   : > { %v4414_v0 = vadd.f32 %v4413_v26, %v4385_v20 }
 0x4f3   : > { %v4427_v53 = vmax.f32 %v4414_v0, 0.0 }
 0x4f8   : > { %v4415_v42 = vpop.f32.mrf.mxu3 }
 0x4f9   : > { %v4416_v50 = vadd.f32 %v4415_v42, %v4387_v52 }
 0x4fb   : > { %v4428_v23 = vmax.f32 %v4416_v50, 0.0 }
 0x4fd   : > { %v4433_v36 = vpack.c.bf16 %v4428_v23, %v4427_v53 }
 0x4ff   : > { %4517 = vmatmul.bf16.gmra.mxu0 %v4433_v36 }
 0x500   : > { %v4418_v41 = vpop.f32.mrf.mxu3 }
 0x501   : > { %v4419_v63 = vadd.f32 %v4418_v41, %v4390_v60 }
 0x503   : > { %v4429_v27 = vmax.f32 %v4419_v63, 0.0 }
 0x508   : > { %v4420_v48 = vpop.f32.mrf.mxu3 }
 0x509   : > { %v4421_v51 = vadd.f32 %v4420_v48, %v4392_v12 }
 0x50b   : > { %v4430_v40 = vmax.f32 %v4421_v51, 0.0 }
 0x50d   : > { %v4434_v11 = vpack.c.bf16 %v4430_v40, %v4429_v27 }
 0x50f   : > { %4522 = vmatmul.bf16.vlgmr.msrb.gmra.mxu2 %v4434_v11 }
 0x55c   : > { %v4508_v55 = vpop.f32.mrf.mxu0 }
 0x55d   : > { %v4528_v47 = vadd.f32 %v4508_v55, %v7834_v8 }
 0x55f   : > { %v4536_v33 = vmax.f32 %v4528_v47, 0.0 }
 0x561   : > { %4544 = vst [vmem:[%s8135_s29] sm:$0xff] %v4536_v33 }
 0x564   : > { %v4510_v56 = vpop.f32.mrf.mxu0 }
 0x565   : > { %v4529_v46 = vadd.f32 %v4510_v56, %v7848_v57 }
 0x567   : > { %v4537_v3 = vmax.f32 %v4529_v46, 0.0 }
 0x569   : > { %4545 = vst [vmem:[%s8135_s29 + $0x8] sm:$0xff] %v4537_v3 }
 0x56c   : > { %v4513_v17 = vpop.f32.mrf.mxu0 }
 0x56d   : > { %v4530_v32 = vadd.f32 %v4513_v17, %v7873_v2 }
 0x56f   : > { %v4538_v29 = vmax.f32 %v4530_v32, 0.0 }
 0x571   : > { %4546 = vst [vmem:[%s8135_s29 + $0x10] sm:$0xff] %v4538_v29 }
 0x574   : > { %v4515_v8 = vpop.f32.mrf.mxu0 }
 0x575   : > { %v4531_v13 = vadd.f32 %v4515_v8, %v7903_v15 }
 0x577   : > { %v4539_v5 = vmax.f32 %v4531_v13, 0.0 }
 0x579   : > { %4547 = vst [vmem:[%s8135_s29 + $0x18] sm:$0xff] %v4539_v5 }
 0x57c   : > { %v4518_v19 = vpop.f32.mrf.mxu0 }
 0x57d   : > { %v4532_v28 = vadd.f32 %v4518_v19, %v7945_v38 }
 0x57f   : > { %v4540_v57 = vmax.f32 %v4532_v28, 0.0 }
 0x581   : > { %4548 = vst [vmem:[%s8135_s29 + $0x20] sm:$0xff] %v4540_v57 }
 0x584   : > { %v4520_v1 = vpop.f32.mrf.mxu0 }
 0x585   : > { %v4533_v61 = vadd.f32 %v4520_v1, %v7975_v54 }
 0x587   : > { %v4541_v2 = vmax.f32 %v4533_v61, 0.0 }
 0x589   : > { %4549 = vst [vmem:[%s8135_s29 + $0x28] sm:$0xff] %v4541_v2 }
 0x592   : > { %v4523_v49 = vpop.f32.mrf.mxu2 }
 0x593   : > { %v4534_v16 = vadd.f32 %v4523_v49, %v7999_v35 }
 0x595   : > { %v4542_v15 = vmax.f32 %v4534_v16, 0.0 }
 0x597   : > { %4550 = vst [vmem:[%s8135_s29 + $0x30] sm:$0xff] %v4542_v15 }
 0x59a   : > { %v4525_v38 = vpop.f32.mrf.mxu2 }
 0x59b   : > { %v4535_v54 = vadd.f32 %v4525_v38, %v8010_v58 }
 0x59d   : > { %v4543_v30 = vmax.f32 %v4535_v54, 0.0 }
 0x59f   : > { %4551 = vst [vmem:[%s8135_s29 + $0x38] sm:$0xff] %v4543_v30 }
 0x5a0   : > { %6259 = shalt.err (!%p6256_p3)
}
 0x5a1   : > { %s6297_s16 = smov 128   ;;  %s6298_s29 = smov 8  }
 0x5a2   : > { %6187 = dma.vmem_to_hbm [thread:$0]  (%p6387_p5), %s4566_s26, 1024, %s4568_s24, %s4553_s27, %s6297_s16, %s6297_s16, %s6298_s29  }
 0x5a3 PF: > { %p6193_p4 = scmp.ge.s32.totalorder %s6294_s12, 2  ;;  %s4582_s25 = sand.u32 1, %s6282_s30  }
 0x5a4   : > { %s4583_s14 = scalar_lea.sflag [#allocation4], %s4582_s25 }
 0x5a5   : > { %p6190_p7 = pnand %p6193_p4, %p6391_p6 }
 0x5a7   : > { %p6191_p8 = pneg %p6190_p7 }
 0x5a9   : > { %6277 = dma.done.wait (%p6191_p8), %s4583_s14, 1024  }
 0x5aa   : > { %6279 = vsyncadd (%p6191_p8), %s4583_s14, 4294966272  ;;  %p19_p9 = scmp.ge.s32.totalorder %s6374_s15, 4   ;;  %s8198_s30 = smov %s6286_s10 }
 0x5ab   : > { %s8199_s10 = smov %s6290_s11  ;;  %s8200_s11 = smov %s6385_s18 }
 0x5ac   : > { %s8201_s12 = smov %s6374_s15  ;;  %21 = sbr.rel (!%p19_p9) target bundleno = 3 (0x3), region = 94 }
 0x5b1   :  { %4589 = vsyncpa [#allocation4], 1 }
 0x5b2   :  { %4591 = vsyncpa [#allocation4 + $0x1], 1 }

</bundles_post_ra>
